<compile_context>
chip_gen: v7x
topology: tpu7x:2x2x1
jax: 0.10.0
libtpu: 0.0.40
codegen_flags: <defaults>
</compile_context>

<pallas_src>
import functools

import jax
import jax.numpy as jnp
from jax import lax
from jax.experimental import pallas as pl
from jax.experimental.pallas import tpu as pltpu

NODE_DIM, EDGE_DIM, OMEGA_DIM = 3, 2, 2
HID, EHID, R = 64, 32, 8
ACTION_DIM = 1
PAD = 128           # lane padding for tiny encoder input dims / fused [n|o]
OUT_PAD = 128       # lane padding for classifier output
PW = 2 * HID        # 128: lane-aligned relation-pair width for conv2
RW = R * HID        # 512: all relations concatenated along lanes


# ----------------------------------------------------------------------------
# Pallas kernel: entire Actor forward, single grid point, everything in VMEM.
# ----------------------------------------------------------------------------
def _actor_kernel(xo_ref, ea_ref, srci_ref, dstj_ref, reli_ref,
                  wno_ref, bno_ref, we_ref, be_ref,
                  w1cat_ref, w1e_ref, w1root_ref, b1_ref,
                  w2cat_ref, w2root_ref, b2_ref,
                  blockI_ref, pairI_ref,
                  waggh_ref, waggo_ref, bagg_ref, wc_ref, bc_ref,
                  out_ref, *, compute_dtype):
    f32 = jnp.float32
    cdt = compute_dtype
    relu = lambda t: jnp.maximum(t, 0.0)
    NEG = f32(1e30)

    def mdot(a, b):
        # MXU matmul in the compute dtype, f32 accumulation.
        return jnp.dot(a.astype(cdt), b.astype(cdt), preferred_element_type=f32)

    N = xo_ref.shape[0]
    E = ea_ref.shape[0]

    # --- structural matrices built in VMEM from int32 indices (no dense one-hot DMA)
    src_idx = srci_ref[...]        # (E, 1) int32: source node per edge
    dst_row = dstj_ref[...]        # (1, E) int32: destination node per edge
    rel_idx = reli_ref[...]        # (E, 1) int32: relation per edge

    src_f = (lax.broadcasted_iota(jnp.int32, (E, N), 1) == src_idx).astype(f32)   # (E, N)
    dstT_f = (lax.broadcasted_iota(jnp.int32, (N, E), 0) == dst_row).astype(f32)  # (N, E)
    lane = lax.broadcasted_iota(jnp.int32, (E, RW), 1)
    lo = rel_idx * HID
    relmask_f = ((lane >= lo) & (lane < lo + HID)).astype(f32)    # (E, 512) block one-hot

    src_m = src_f.astype(cdt)
    dstT_m = dstT_f.astype(cdt)
    relmask_m = relmask_f.astype(cdt)

    # --- loop-invariant conv2 masks (hoisted out of the relation-pair loop) ----
    neg_dst = (dstT_f - 1.0) * NEG                                # (N, E): 0 / -1e30
    neg_dst3 = jnp.broadcast_to(neg_dst[:, :, None], (N, E, PW))  # (N, E, 128), built ONCE
    rel_neg = (relmask_f - 1.0) * NEG                             # (E, 512): 0 / -1e30
    has_full = (mdot(dstT_m, relmask_m) > 0.0).astype(f32)        # (N, 512) per-relation in-degree>0

    # --- fused node/omega encoder: one 128x128 matmul -> no = [n | o] ----------
    no = relu(mdot(xo_ref[...], wno_ref[...]) + bno_ref[...])     # (N, 128)

    # --- edge encoder -----------------------------------------------------------
    e = relu(mdot(ea_ref[...], we_ref[...]) + be_ref[...])        # (E, 32)

    # --- conv1: RGCNLayer(64, 64, 8, 32), sum aggregation -----------------------
    # TODO(synk): RGCNLayer is not defined in the provided source; implemented as
    # per-relation source transform + edge-feature projection, sum-aggregated at
    # destinations, plus root transform + bias.
    n_src = mdot(src_m, no)                                       # (E, 128) gather of [n | o]
    msg_all = mdot(n_src, w1cat_ref[...])                         # (E, 512) all relations at once
    msg = mdot(e, w1e_ref[...]) \
        + mdot(msg_all * relmask_f, blockI_ref[...])              # per-edge relation select on MXU
    agg1 = mdot(dstT_m, msg)                                      # (N, 64) scatter-sum
    h = relu(agg1 + mdot(no, w1root_ref[...]) + b1_ref[...])      # (N, 64)

    # --- conv2: PyG-style RGCNConv(64, 64, 8, aggr='max') -----------------------
    h_src = mdot(src_m, h)                                        # (E, 64)
    mr_masked = mdot(h_src, w2cat_ref[...]) + rel_neg             # (E, 512), non-r edges -> -1e30
    # relations in lane-aligned pairs: 128-wide slices at offsets 0/128/256/384
    out2_pairs = None
    for p in range(R // 2):
        chunk = mr_masked[:, p * PW:(p + 1) * PW]                 # (E, 128)
        mx = jnp.max(chunk[None, :, :] + neg_dst3, axis=1)        # (N, 128) masked segment max
        contrib = mx * has_full[:, p * PW:(p + 1) * PW]           # empty segment -> 0
        out2_pairs = contrib if out2_pairs is None else out2_pairs + contrib
    out2 = mdot(h, w2root_ref[...]) + b2_ref[...] + mdot(out2_pairs, pairI_ref[...])
    h2 = relu(out2)                                               # (N, 64)

    # --- head: agg(cat([h2, o])) as two K-padded matmuls (no lane concat) -------
    a = relu(mdot(h2, waggh_ref[...]) + mdot(no, waggo_ref[...]) + bagg_ref[...])

    # --- classifier, tanh * 5 ----------------------------------------------------
    y = mdot(a, wc_ref[...]) + bc_ref[...]                        # (N, OUT_PAD)
    out_ref[...] = jnp.tanh(y) * 5.0


# ----------------------------------------------------------------------------
# Parameter packing: fuse / concatenate / lane-pad weights for the kernel.
# ----------------------------------------------------------------------------
def _pack_kernel_params(p, cdt):
    f32 = jnp.float32

    # block-diagonal fused node+omega encoder weight (128 in -> 128 out)
    wno = jnp.zeros((PAD, 2 * HID), f32)
    wno = wno.at[:NODE_DIM, :HID].set(p['wn'].astype(f32))
    wno = wno.at[NODE_DIM:NODE_DIM + OMEGA_DIM, HID:].set(p['wo'].astype(f32))
    bno = jnp.concatenate([p['bn'], p['bo']], axis=1).astype(f32)       # (1, 128)

    we = jnp.pad(p['we'].astype(f32), ((0, PAD - EDGE_DIM), (0, 0)))    # (128, 32)

    # relation weights concatenated along the output dim: cols [r*64:(r+1)*64] == W_r.
    # conv1 weight is K-padded to 128 so the gathered [n|o] feeds it directly.
    w1cat = p['w1_rel'].astype(f32).transpose(1, 0, 2).reshape(HID, RW)
    w1cat = jnp.pad(w1cat, ((0, PAD - HID), (0, 0)))                    # (128, 512)
    w2cat = p['w2_rel'].astype(f32).transpose(1, 0, 2).reshape(HID, RW)  # (64, 512)

    w1root = jnp.pad(p['w1_root'].astype(f32), ((0, PAD - HID), (0, 0)))  # (128, 64)

    # block identity matrices: relation-block collapse on the MXU (no lane slices)
    blockI = jnp.tile(jnp.eye(HID, dtype=f32), (R, 1))                  # (512, 64)
    pairI = jnp.tile(jnp.eye(HID, dtype=f32), (2, 1))                   # (128, 64)

    wagg_h = p['wagg_h'].astype(f32)                                    # (64, 64)
    wagg_o = jnp.pad(p['wagg_o'].astype(f32), ((HID, 0), (0, 0)))       # (128, 64), top half zero

    wc = jnp.pad(p['wc'].astype(f32), ((0, 0), (0, OUT_PAD - ACTION_DIM)))
    bc = jnp.pad(p['bc'].astype(f32), ((0, 0), (0, OUT_PAD - ACTION_DIM)))

    c = lambda w: w.astype(cdt)   # MXU operands in compute dtype; biases stay f32
    return (c(wno), bno, c(we), p['be'].astype(f32),
            c(w1cat), c(p['w1_edge'].astype(f32)), c(w1root), p['b1'].astype(f32),
            c(w2cat), c(p['w2_root'].astype(f32)), p['b2'].astype(f32),
            c(blockI), c(pairI),
            c(wagg_h), c(wagg_o), p['bagg'].astype(f32), c(wc), bc)


# ----------------------------------------------------------------------------
# Wrapper: plain-JAX glue (padding, int32 index packing), one pallas_call.
# ----------------------------------------------------------------------------
def actor_forward(params, x, edge_index, edge_attr, edge_type, omega,
                  compute_dtype=jnp.bfloat16):
    f32 = jnp.float32
    N = x.shape[0]
    E = edge_index.shape[1]

    # packed [x | omega] input: x in lanes 0..2, omega in lanes 3..4, rest zero
    xo = jnp.zeros((N, PAD), f32)
    xo = xo.at[:, :NODE_DIM].set(x.astype(f32))
    xo = xo.at[:, NODE_DIM:NODE_DIM + OMEGA_DIM].set(omega.astype(f32))

    ea = jnp.pad(edge_attr.astype(f32), ((0, 0), (0, PAD - EDGE_DIM)))

    # graph structure as raw int32 indices (one-hots are built inside the kernel)
    src_idx = edge_index[0].astype(jnp.int32).reshape(E, 1)
    dst_row = edge_index[1].astype(jnp.int32).reshape(1, E)
    rel_idx = edge_type.astype(jnp.int32).reshape(E, 1)

    kparams = _pack_kernel_params(params, compute_dtype)
    inputs = (xo, ea, src_idx, dst_row, rel_idx) + kparams

    # rough cost estimate: lets XLA schedule this latency-bound kernel against
    # the surrounding glue ops instead of serializing around it
    flops = (
        2 * N * E * RW                          # per-relation in-degree (has mask)
        + 2 * N * PAD * 2 * HID                 # fused node/omega encoder
        + 2 * E * PAD * EHID                    # edge encoder
        + 2 * E * N * PAD + 2 * E * N * HID     # conv1 / conv2 source gathers
        + 2 * E * PAD * RW + 2 * E * HID * RW   # concatenated relation matmuls
        + 2 * E * EHID * HID                    # conv1 edge projection
        + 2 * E * RW * HID                      # conv1 block-identity collapse
        + 2 * N * E * HID                       # conv1 destination scatter-sum
        + 2 * N * PAD * HID + 2 * N * HID * HID  # root transforms
        + 2 * N * E * RW                        # conv2 masked-max VPU work (4 x (N,E,128))
        + 2 * N * PW * HID                      # conv2 pair collapse
        + 2 * N * HID * HID + 2 * N * PAD * HID  # fused agg head
        + 2 * N * HID * OUT_PAD                 # classifier (lane padded)
    )
    bytes_accessed = sum(int(a.size) * a.dtype.itemsize for a in inputs) + N * OUT_PAD * 4
    cost = pl.CostEstimate(flops=int(flops),
                           transcendentals=int(N * OUT_PAD),
                           bytes_accessed=int(bytes_accessed))

    vmem = pl.BlockSpec(memory_space=pltpu.MemorySpace.VMEM)
    kernel = functools.partial(_actor_kernel, compute_dtype=compute_dtype)
    out = pl.pallas_call(
        kernel,
        out_shape=jax.ShapeDtypeStruct((N, OUT_PAD), f32),
        in_specs=[vmem] * len(inputs),
        out_specs=vmem,
        compiler_params=pltpu.CompilerParams(vmem_limit_bytes=32 * 1024 * 1024),
        cost_estimate=cost,
    )(*inputs)
    return out[:, :ACTION_DIM]


# ----------------------------------------------------------------------------
# Deterministic parameter init (shapes exactly as in Actor.__init__).
# ----------------------------------------------------------------------------
def init_params(key):
    keys = iter(jax.random.split(key, 20))

    def nrm(shape, scale=0.1):
        return jax.random.normal(next(keys), shape, jnp.float32) * scale

    p = {}
    p['wn'] = nrm((NODE_DIM, HID));   p['bn'] = nrm((1, HID))      # n_enc: Linear(3, 64)
    p['we'] = nrm((EDGE_DIM, EHID));  p['be'] = nrm((1, EHID))     # e_enc: Linear(2, 32)
    p['wo'] = nrm((OMEGA_DIM, HID));  p['bo'] = nrm((1, HID))      # o_enc: Linear(2, 64)
    p['w1_rel'] = nrm((R, HID, HID))                               # RGCNLayer(64, 64, 8, 32)
    p['w1_edge'] = nrm((EHID, HID))
    p['w1_root'] = nrm((HID, HID))
    p['b1'] = nrm((1, HID))
    p['w2_rel'] = nrm((R, HID, HID))                               # RGCNConv(64, 64, 8, max)
    p['w2_root'] = nrm((HID, HID))
    p['b2'] = nrm((1, HID))
    p['wagg_h'] = nrm((HID, HID))                                  # agg: Linear(128, 64) split
    p['wagg_o'] = nrm((HID, HID))
    p['bagg'] = nrm((1, HID))
    p['wc'] = nrm((HID, ACTION_DIM))                               # classifier: Linear(64, 1)
    p['bc'] = nrm((1, ACTION_DIM))
    return p


# ----------------------------------------------------------------------------
# Pure-JAX reference (independent segment-op formulation) for validation.
# ----------------------------------------------------------------------------
def reference_forward(params, x, edge_index, edge_attr, edge_type, omega):
    f32 = jnp.float32
    N = x.shape[0]
    relu = lambda t: jnp.maximum(t, 0.0)

    n = relu(x.astype(f32) @ params['wn'] + params['bn'])
    e = relu(edge_attr.astype(f32) @ params['we'] + params['be'])
    o = relu(omega.astype(f32) @ params['wo'] + params['bo'])

    src, dst = edge_index[0], edge_index[1]

    # conv1 (sum aggregation)
    n_src = n[src]
    w1 = params['w1_rel'][edge_type]                       # (E, 64, 64)
    msg = jnp.einsum('ei,eio->eo', n_src, w1) + e @ params['w1_edge']
    agg1 = jax.ops.segment_sum(msg, dst, num_segments=N)
    h = relu(agg1 + n @ params['w1_root'] + params['b1'])

    # conv2 (per-relation max aggregation, summed over relations)
    h_src = h[src]
    out2 = h @ params['w2_root'] + params['b2']
    for r in range(R):
        mr = h_src @ params['w2_rel'][r]
        valid = (edge_type == r)
        seg = jnp.where(valid, dst, N)                     # invalid -> dump segment
        mx = jax.ops.segment_max(mr, seg, num_segments=N + 1)[:N]
        has = jax.ops.segment_sum(valid.astype(f32), seg, num_segments=N + 1)[:N] > 0
        out2 = out2 + jnp.where(has[:, None], mx, 0.0)
    h2 = relu(out2)

    a = relu(h2 @ params['wagg_h'] + o @ params['wagg_o'] + params['bagg'])
    y = a @ params['wc'] + params['bc']
    return jnp.tanh(y) * 5.0


if __name__ == "__main__":
    key = jax.random.PRNGKey(0)
    k1, k2, k3, k4, k5, kp = jax.random.split(key, 6)

    N, E = 16, 32
    x = jax.random.normal(k1, (N, NODE_DIM), jnp.float32)
    edge_index = jax.random.randint(k2, (2, E), 0, N)
    edge_attr = jax.random.normal(k3, (E, EDGE_DIM), jnp.float32)
    edge_type = jax.random.randint(k4, (E,), 0, R)
    omega = jax.random.normal(k5, (N, OMEGA_DIM), jnp.float32)

    params = init_params(kp)
    ref = reference_forward(params, x, edge_index, edge_attr, edge_type, omega)

    # exact-path check: f32 MXU operands, tight tolerance vs the f32 reference
    out_f32 = actor_forward(params, x, edge_index, edge_attr, edge_type, omega,
                            compute_dtype=jnp.float32)
    out_f32 = jax.block_until_ready(out_f32)
    assert out_f32.shape == (N, ACTION_DIM)
    assert jnp.allclose(out_f32, ref, atol=1e-3, rtol=1e-3), "f32 kernel/reference mismatch"

    # default fast path: bf16 MXU operands with f32 accumulation (one-hot /
    # structural matrices are exact in bf16; weights pick up ~0.3% rel. error,
    # so the tolerance vs the f32 reference is loosened accordingly).
    out_bf16 = actor_forward(params, x, edge_index, edge_attr, edge_type, omega,
                             compute_dtype=jnp.bfloat16)
    out_bf16 = jax.block_until_ready(out_bf16)
    assert out_bf16.shape == (N, ACTION_DIM)
    assert jnp.allclose(out_bf16, ref, atol=1e-1, rtol=5e-2), "bf16 kernel/reference mismatch"

    print("KERNEL_OK")
</pallas_src>

<mosaic_0001>
module attributes {stable_mosaic.version = 11 : i64} {
  func.func @_actor_kernel(%arg0: memref<16x128xf32, #tpu.memory_space<vmem>>, %arg1: memref<32x128xf32, #tpu.memory_space<vmem>>, %arg2: memref<32x1xi32, #tpu.memory_space<vmem>>, %arg3: memref<1x32xi32, #tpu.memory_space<vmem>>, %arg4: memref<32x1xi32, #tpu.memory_space<vmem>>, %arg5: memref<128x128xf32, #tpu.memory_space<vmem>>, %arg6: memref<1x128xf32, #tpu.memory_space<vmem>>, %arg7: memref<128x32xf32, #tpu.memory_space<vmem>>, %arg8: memref<1x32xf32, #tpu.memory_space<vmem>>, %arg9: memref<128x512xf32, #tpu.memory_space<vmem>>, %arg10: memref<32x64xf32, #tpu.memory_space<vmem>>, %arg11: memref<128x64xf32, #tpu.memory_space<vmem>>, %arg12: memref<1x64xf32, #tpu.memory_space<vmem>>, %arg13: memref<64x512xf32, #tpu.memory_space<vmem>>, %arg14: memref<64x64xf32, #tpu.memory_space<vmem>>, %arg15: memref<1x64xf32, #tpu.memory_space<vmem>>, %arg16: memref<512x64xf32, #tpu.memory_space<vmem>>, %arg17: memref<128x64xf32, #tpu.memory_space<vmem>>, %arg18: memref<64x64xf32, #tpu.memory_space<vmem>>, %arg19: memref<128x64xf32, #tpu.memory_space<vmem>>, %arg20: memref<1x64xf32, #tpu.memory_space<vmem>>, %arg21: memref<64x128xf32, #tpu.memory_space<vmem>>, %arg22: memref<1x128xf32, #tpu.memory_space<vmem>>, %arg23: memref<16x128xf32, #tpu.memory_space<vmem>>) attributes {dimension_semantics = [], scalar_prefetch = 0 : i64, scratch_operands = 0 : i64, tpu.core_type = #tpu.core_type<tc>} {
    %c0 = arith.constant 0 : index
    %c0_0 = arith.constant 0 : index
    %0 = vector.load %arg2[%c0, %c0_0] : memref<32x1xi32, #tpu.memory_space<vmem>>, vector<32x1xi32>
    %c0_1 = arith.constant 0 : index
    %c0_2 = arith.constant 0 : index
    %1 = vector.load %arg3[%c0_1, %c0_2] : memref<1x32xi32, #tpu.memory_space<vmem>>, vector<1x32xi32>
    %c0_3 = arith.constant 0 : index
    %c0_4 = arith.constant 0 : index
    %2 = vector.load %arg4[%c0_3, %c0_4] : memref<32x1xi32, #tpu.memory_space<vmem>>, vector<32x1xi32>
    %3 = tpu.iota {dimensions = array<i32: 1>} : vector<32x16xi32>
    %4 = vector.broadcast %0 : vector<32x1xi32> to vector<32x16xi32>
    %5 = arith.cmpi eq, %3, %4 : vector<32x16xi32>
    %6 = arith.extui %5 : vector<32x16xi1> to vector<32x16xi32>
    %7 = arith.sitofp %6 : vector<32x16xi32> to vector<32x16xf32>
    %8 = tpu.iota {dimensions = array<i32: 0>} : vector<16x32xi32>
    %9 = vector.broadcast %1 : vector<1x32xi32> to vector<16x32xi32>
    %10 = arith.cmpi eq, %8, %9 : vector<16x32xi32>
    %11 = arith.extui %10 : vector<16x32xi1> to vector<16x32xi32>
    %12 = arith.sitofp %11 : vector<16x32xi32> to vector<16x32xf32>
    %13 = tpu.iota {dimensions = array<i32: 1>} : vector<32x512xi32>
    %c64_i32 = arith.constant 64 : i32
    %14 = vector.broadcast %c64_i32 : i32 to vector<32x1xi32>
    %15 = arith.muli %2, %14 : vector<32x1xi32>
    %16 = vector.broadcast %15 : vector<32x1xi32> to vector<32x512xi32>
    %17 = arith.cmpi sge, %13, %16 : vector<32x512xi32>
    %c64_i32_5 = arith.constant 64 : i32
    %18 = vector.broadcast %c64_i32_5 : i32 to vector<32x1xi32>
    %19 = arith.addi %15, %18 : vector<32x1xi32>
    %20 = vector.broadcast %19 : vector<32x1xi32> to vector<32x512xi32>
    %21 = arith.cmpi slt, %13, %20 : vector<32x512xi32>
    %22 = arith.andi %17, %21 : vector<32x512xi1>
    %23 = arith.extui %22 : vector<32x512xi1> to vector<32x512xi32>
    %24 = arith.sitofp %23 : vector<32x512xi32> to vector<32x512xf32>
    %cst = arith.constant 1.000000e+00 : f32
    %25 = vector.broadcast %cst : f32 to vector<16x32xf32>
    %26 = arith.subf %12, %25 : vector<16x32xf32>
    %cst_6 = arith.constant 1.000000e+30 : f32
    %27 = vector.broadcast %cst_6 : f32 to vector<16x32xf32>
    %28 = arith.mulf %26, %27 : vector<16x32xf32>
    %29 = vector.shape_cast %28 : vector<16x32xf32> to vector<16x32x1xf32>
    %30 = vector.shape_cast %29 : vector<16x32x1xf32> to vector<16x32x1xf32>
    %31 = vector.broadcast %30 : vector<16x32x1xf32> to vector<16x32x128xf32>
    %cst_7 = arith.constant 1.000000e+00 : f32
    %32 = vector.broadcast %cst_7 : f32 to vector<32x512xf32>
    %33 = arith.subf %24, %32 : vector<32x512xf32>
    %cst_8 = arith.constant 1.000000e+30 : f32
    %34 = vector.broadcast %cst_8 : f32 to vector<32x512xf32>
    %35 = arith.mulf %33, %34 : vector<32x512xf32>
    %cst_9 = arith.constant dense<0.000000e+00> : vector<16x512xf32>
    %36 = tpu.matmul %12, %24, %cst_9 {dimension_numbers = #tpu.dot_dimension_numbers<[1], [0], [0], [1], [0, 0, 1, 1], [], []>} : vector<16x32xf32>, vector<32x512xf32>, vector<16x512xf32> -> vector<16x512xf32>
    %cst_10 = arith.constant 0.000000e+00 : f32
    %37 = vector.broadcast %cst_10 : f32 to vector<16x512xf32>
    %38 = arith.cmpf ogt, %36, %37 : vector<16x512xf32>
    %39 = arith.extui %38 : vector<16x512xi1> to vector<16x512xi32>
    %40 = arith.sitofp %39 : vector<16x512xi32> to vector<16x512xf32>
    %c0_11 = arith.constant 0 : index
    %c0_12 = arith.constant 0 : index
    %41 = vector.load %arg0[%c0_11, %c0_12] : memref<16x128xf32, #tpu.memory_space<vmem>>, vector<16x128xf32>
    %c0_13 = arith.constant 0 : index
    %c0_14 = arith.constant 0 : index
    %42 = vector.load %arg5[%c0_13, %c0_14] : memref<128x128xf32, #tpu.memory_space<vmem>>, vector<128x128xf32>
    %cst_15 = arith.constant dense<0.000000e+00> : vector<16x128xf32>
    %43 = tpu.matmul %41, %42, %cst_15 {dimension_numbers = #tpu.dot_dimension_numbers<[1], [0], [0], [1], [0, 0, 1, 1], [], []>} : vector<16x128xf32>, vector<128x128xf32>, vector<16x128xf32> -> vector<16x128xf32>
    %c0_16 = arith.constant 0 : index
    %c0_17 = arith.constant 0 : index
    %44 = vector.load %arg6[%c0_16, %c0_17] : memref<1x128xf32, #tpu.memory_space<vmem>>, vector<1x128xf32>
    %45 = vector.broadcast %44 : vector<1x128xf32> to vector<16x128xf32>
    %46 = arith.addf %43, %45 : vector<16x128xf32>
    %cst_18 = arith.constant 0.000000e+00 : f32
    %47 = vector.broadcast %cst_18 : f32 to vector<16x128xf32>
    %48 = arith.maximumf %46, %47 : vector<16x128xf32>
    %c0_19 = arith.constant 0 : index
    %c0_20 = arith.constant 0 : index
    %49 = vector.load %arg1[%c0_19, %c0_20] : memref<32x128xf32, #tpu.memory_space<vmem>>, vector<32x128xf32>
    %c0_21 = arith.constant 0 : index
    %c0_22 = arith.constant 0 : index
    %50 = vector.load %arg7[%c0_21, %c0_22] : memref<128x32xf32, #tpu.memory_space<vmem>>, vector<128x32xf32>
    %cst_23 = arith.constant dense<0.000000e+00> : vector<32x32xf32>
    %51 = tpu.matmul %49, %50, %cst_23 {dimension_numbers = #tpu.dot_dimension_numbers<[1], [0], [0], [1], [0, 0, 1, 1], [], []>} : vector<32x128xf32>, vector<128x32xf32>, vector<32x32xf32> -> vector<32x32xf32>
    %c0_24 = arith.constant 0 : index
    %c0_25 = arith.constant 0 : index
    %52 = vector.load %arg8[%c0_24, %c0_25] : memref<1x32xf32, #tpu.memory_space<vmem>>, vector<1x32xf32>
    %53 = vector.broadcast %52 : vector<1x32xf32> to vector<32x32xf32>
    %54 = arith.addf %51, %53 : vector<32x32xf32>
    %cst_26 = arith.constant 0.000000e+00 : f32
    %55 = vector.broadcast %cst_26 : f32 to vector<32x32xf32>
    %56 = arith.maximumf %54, %55 : vector<32x32xf32>
    %cst_27 = arith.constant dense<0.000000e+00> : vector<32x128xf32>
    %57 = tpu.matmul %7, %48, %cst_27 {dimension_numbers = #tpu.dot_dimension_numbers<[1], [0], [0], [1], [0, 0, 1, 1], [], []>} : vector<32x16xf32>, vector<16x128xf32>, vector<32x128xf32> -> vector<32x128xf32>
    %c0_28 = arith.constant 0 : index
    %c0_29 = arith.constant 0 : index
    %58 = vector.load %arg9[%c0_28, %c0_29] : memref<128x512xf32, #tpu.memory_space<vmem>>, vector<128x512xf32>
    %cst_30 = arith.constant dense<0.000000e+00> : vector<32x512xf32>
    %59 = tpu.matmul %57, %58, %cst_30 {dimension_numbers = #tpu.dot_dimension_numbers<[1], [0], [0], [1], [0, 0, 1, 1], [], []>} : vector<32x128xf32>, vector<128x512xf32>, vector<32x512xf32> -> vector<32x512xf32>
    %c0_31 = arith.constant 0 : index
    %c0_32 = arith.constant 0 : index
    %60 = vector.load %arg10[%c0_31, %c0_32] : memref<32x64xf32, #tpu.memory_space<vmem>>, vector<32x64xf32>
    %cst_33 = arith.constant dense<0.000000e+00> : vector<32x64xf32>
    %61 = tpu.matmul %56, %60, %cst_33 {dimension_numbers = #tpu.dot_dimension_numbers<[1], [0], [0], [1], [0, 0, 1, 1], [], []>} : vector<32x32xf32>, vector<32x64xf32>, vector<32x64xf32> -> vector<32x64xf32>
    %62 = arith.mulf %59, %24 : vector<32x512xf32>
    %c0_34 = arith.constant 0 : index
    %c0_35 = arith.constant 0 : index
    %63 = vector.load %arg16[%c0_34, %c0_35] : memref<512x64xf32, #tpu.memory_space<vmem>>, vector<512x64xf32>
    %cst_36 = arith.constant dense<0.000000e+00> : vector<32x64xf32>
    %64 = tpu.matmul %62, %63, %cst_36 {dimension_numbers = #tpu.dot_dimension_numbers<[1], [0], [0], [1], [0, 0, 1, 1], [], []>} : vector<32x512xf32>, vector<512x64xf32>, vector<32x64xf32> -> vector<32x64xf32>
    %65 = arith.addf %61, %64 : vector<32x64xf32>
    %cst_37 = arith.constant dense<0.000000e+00> : vector<16x64xf32>
    %66 = tpu.matmul %12, %65, %cst_37 {dimension_numbers = #tpu.dot_dimension_numbers<[1], [0], [0], [1], [0, 0, 1, 1], [], []>} : vector<16x32xf32>, vector<32x64xf32>, vector<16x64xf32> -> vector<16x64xf32>
    %c0_38 = arith.constant 0 : index
    %c0_39 = arith.constant 0 : index
    %67 = vector.load %arg11[%c0_38, %c0_39] : memref<128x64xf32, #tpu.memory_space<vmem>>, vector<128x64xf32>
    %cst_40 = arith.constant dense<0.000000e+00> : vector<16x64xf32>
    %68 = tpu.matmul %48, %67, %cst_40 {dimension_numbers = #tpu.dot_dimension_numbers<[1], [0], [0], [1], [0, 0, 1, 1], [], []>} : vector<16x128xf32>, vector<128x64xf32>, vector<16x64xf32> -> vector<16x64xf32>
    %69 = arith.addf %66, %68 : vector<16x64xf32>
    %c0_41 = arith.constant 0 : index
    %c0_42 = arith.constant 0 : index
    %70 = vector.load %arg12[%c0_41, %c0_42] : memref<1x64xf32, #tpu.memory_space<vmem>>, vector<1x64xf32>
    %71 = vector.broadcast %70 : vector<1x64xf32> to vector<16x64xf32>
    %72 = arith.addf %69, %71 : vector<16x64xf32>
    %cst_43 = arith.constant 0.000000e+00 : f32
    %73 = vector.broadcast %cst_43 : f32 to vector<16x64xf32>
    %74 = arith.maximumf %72, %73 : vector<16x64xf32>
    %cst_44 = arith.constant dense<0.000000e+00> : vector<32x64xf32>
    %75 = tpu.matmul %7, %74, %cst_44 {dimension_numbers = #tpu.dot_dimension_numbers<[1], [0], [0], [1], [0, 0, 1, 1], [], []>} : vector<32x16xf32>, vector<16x64xf32>, vector<32x64xf32> -> vector<32x64xf32>
    %c0_45 = arith.constant 0 : index
    %c0_46 = arith.constant 0 : index
    %76 = vector.load %arg13[%c0_45, %c0_46] : memref<64x512xf32, #tpu.memory_space<vmem>>, vector<64x512xf32>
    %cst_47 = arith.constant dense<0.000000e+00> : vector<32x512xf32>
    %77 = tpu.matmul %75, %76, %cst_47 {dimension_numbers = #tpu.dot_dimension_numbers<[1], [0], [0], [1], [0, 0, 1, 1], [], []>} : vector<32x64xf32>, vector<64x512xf32>, vector<32x512xf32> -> vector<32x512xf32>
    %78 = arith.addf %77, %35 : vector<32x512xf32>
    %79 = vector.extract_strided_slice %78 {offsets = [0, 0], sizes = [32, 128], strides = [1, 1]} : vector<32x512xf32> to vector<32x128xf32>
    %80 = vector.shape_cast %79 : vector<32x128xf32> to vector<1x32x128xf32>
    %81 = vector.broadcast %80 : vector<1x32x128xf32> to vector<16x32x128xf32>
    %82 = arith.addf %81, %31 : vector<16x32x128xf32>
    %cst_48 = arith.constant dense<0xFF800000> : vector<16x128xf32>
    %83 = vector.multi_reduction <maximumf>, %82, %cst_48 [1] : vector<16x32x128xf32> to vector<16x128xf32>
    %84 = vector.extract_strided_slice %40 {offsets = [0, 0], sizes = [16, 128], strides = [1, 1]} : vector<16x512xf32> to vector<16x128xf32>
    %85 = arith.mulf %83, %84 : vector<16x128xf32>
    %86 = vector.extract_strided_slice %78 {offsets = [0, 128], sizes = [32, 128], strides = [1, 1]} : vector<32x512xf32> to vector<32x128xf32>
    %87 = vector.shape_cast %86 : vector<32x128xf32> to vector<1x32x128xf32>
    %88 = vector.broadcast %87 : vector<1x32x128xf32> to vector<16x32x128xf32>
    %89 = arith.addf %88, %31 : vector<16x32x128xf32>
    %cst_49 = arith.constant dense<0xFF800000> : vector<16x128xf32>
    %90 = vector.multi_reduction <maximumf>, %89, %cst_49 [1] : vector<16x32x128xf32> to vector<16x128xf32>
    %91 = vector.extract_strided_slice %40 {offsets = [0, 128], sizes = [16, 128], strides = [1, 1]} : vector<16x512xf32> to vector<16x128xf32>
    %92 = arith.mulf %90, %91 : vector<16x128xf32>
    %93 = arith.addf %85, %92 : vector<16x128xf32>
    %94 = vector.extract_strided_slice %78 {offsets = [0, 256], sizes = [32, 128], strides = [1, 1]} : vector<32x512xf32> to vector<32x128xf32>
    %95 = vector.shape_cast %94 : vector<32x128xf32> to vector<1x32x128xf32>
    %96 = vector.broadcast %95 : vector<1x32x128xf32> to vector<16x32x128xf32>
    %97 = arith.addf %96, %31 : vector<16x32x128xf32>
    %cst_50 = arith.constant dense<0xFF800000> : vector<16x128xf32>
    %98 = vector.multi_reduction <maximumf>, %97, %cst_50 [1] : vector<16x32x128xf32> to vector<16x128xf32>
    %99 = vector.extract_strided_slice %40 {offsets = [0, 256], sizes = [16, 128], strides = [1, 1]} : vector<16x512xf32> to vector<16x128xf32>
    %100 = arith.mulf %98, %99 : vector<16x128xf32>
    %101 = arith.addf %93, %100 : vector<16x128xf32>
    %102 = vector.extract_strided_slice %78 {offsets = [0, 384], sizes = [32, 128], strides = [1, 1]} : vector<32x512xf32> to vector<32x128xf32>
    %103 = vector.shape_cast %102 : vector<32x128xf32> to vector<1x32x128xf32>
    %104 = vector.broadcast %103 : vector<1x32x128xf32> to vector<16x32x128xf32>
    %105 = arith.addf %104, %31 : vector<16x32x128xf32>
    %cst_51 = arith.constant dense<0xFF800000> : vector<16x128xf32>
    %106 = vector.multi_reduction <maximumf>, %105, %cst_51 [1] : vector<16x32x128xf32> to vector<16x128xf32>
    %107 = vector.extract_strided_slice %40 {offsets = [0, 384], sizes = [16, 128], strides = [1, 1]} : vector<16x512xf32> to vector<16x128xf32>
    %108 = arith.mulf %106, %107 : vector<16x128xf32>
    %109 = arith.addf %101, %108 : vector<16x128xf32>
    %c0_52 = arith.constant 0 : index
    %c0_53 = arith.constant 0 : index
    %110 = vector.load %arg14[%c0_52, %c0_53] : memref<64x64xf32, #tpu.memory_space<vmem>>, vector<64x64xf32>
    %cst_54 = arith.constant dense<0.000000e+00> : vector<16x64xf32>
    %111 = tpu.matmul %74, %110, %cst_54 {dimension_numbers = #tpu.dot_dimension_numbers<[1], [0], [0], [1], [0, 0, 1, 1], [], []>} : vector<16x64xf32>, vector<64x64xf32>, vector<16x64xf32> -> vector<16x64xf32>
    %c0_55 = arith.constant 0 : index
    %c0_56 = arith.constant 0 : index
    %112 = vector.load %arg15[%c0_55, %c0_56] : memref<1x64xf32, #tpu.memory_space<vmem>>, vector<1x64xf32>
    %113 = vector.broadcast %112 : vector<1x64xf32> to vector<16x64xf32>
    %114 = arith.addf %111, %113 : vector<16x64xf32>
    %c0_57 = arith.constant 0 : index
    %c0_58 = arith.constant 0 : index
    %115 = vector.load %arg17[%c0_57, %c0_58] : memref<128x64xf32, #tpu.memory_space<vmem>>, vector<128x64xf32>
    %cst_59 = arith.constant dense<0.000000e+00> : vector<16x64xf32>
    %116 = tpu.matmul %109, %115, %cst_59 {dimension_numbers = #tpu.dot_dimension_numbers<[1], [0], [0], [1], [0, 0, 1, 1], [], []>} : vector<16x128xf32>, vector<128x64xf32>, vector<16x64xf32> -> vector<16x64xf32>
    %117 = arith.addf %114, %116 : vector<16x64xf32>
    %cst_60 = arith.constant 0.000000e+00 : f32
    %118 = vector.broadcast %cst_60 : f32 to vector<16x64xf32>
    %119 = arith.maximumf %117, %118 : vector<16x64xf32>
    %c0_61 = arith.constant 0 : index
    %c0_62 = arith.constant 0 : index
    %120 = vector.load %arg18[%c0_61, %c0_62] : memref<64x64xf32, #tpu.memory_space<vmem>>, vector<64x64xf32>
    %cst_63 = arith.constant dense<0.000000e+00> : vector<16x64xf32>
    %121 = tpu.matmul %119, %120, %cst_63 {dimension_numbers = #tpu.dot_dimension_numbers<[1], [0], [0], [1], [0, 0, 1, 1], [], []>} : vector<16x64xf32>, vector<64x64xf32>, vector<16x64xf32> -> vector<16x64xf32>
    %c0_64 = arith.constant 0 : index
    %c0_65 = arith.constant 0 : index
    %122 = vector.load %arg19[%c0_64, %c0_65] : memref<128x64xf32, #tpu.memory_space<vmem>>, vector<128x64xf32>
    %cst_66 = arith.constant dense<0.000000e+00> : vector<16x64xf32>
    %123 = tpu.matmul %48, %122, %cst_66 {dimension_numbers = #tpu.dot_dimension_numbers<[1], [0], [0], [1], [0, 0, 1, 1], [], []>} : vector<16x128xf32>, vector<128x64xf32>, vector<16x64xf32> -> vector<16x64xf32>
    %124 = arith.addf %121, %123 : vector<16x64xf32>
    %c0_67 = arith.constant 0 : index
    %c0_68 = arith.constant 0 : index
    %125 = vector.load %arg20[%c0_67, %c0_68] : memref<1x64xf32, #tpu.memory_space<vmem>>, vector<1x64xf32>
    %126 = vector.broadcast %125 : vector<1x64xf32> to vector<16x64xf32>
    %127 = arith.addf %124, %126 : vector<16x64xf32>
    %cst_69 = arith.constant 0.000000e+00 : f32
    %128 = vector.broadcast %cst_69 : f32 to vector<16x64xf32>
    %129 = arith.maximumf %127, %128 : vector<16x64xf32>
    %c0_70 = arith.constant 0 : index
    %c0_71 = arith.constant 0 : index
    %130 = vector.load %arg21[%c0_70, %c0_71] : memref<64x128xf32, #tpu.memory_space<vmem>>, vector<64x128xf32>
    %cst_72 = arith.constant dense<0.000000e+00> : vector<16x128xf32>
    %131 = tpu.matmul %129, %130, %cst_72 {dimension_numbers = #tpu.dot_dimension_numbers<[1], [0], [0], [1], [0, 0, 1, 1], [], []>} : vector<16x64xf32>, vector<64x128xf32>, vector<16x128xf32> -> vector<16x128xf32>
    %c0_73 = arith.constant 0 : index
    %c0_74 = arith.constant 0 : index
    %132 = vector.load %arg22[%c0_73, %c0_74] : memref<1x128xf32, #tpu.memory_space<vmem>>, vector<1x128xf32>
    %133 = vector.broadcast %132 : vector<1x128xf32> to vector<16x128xf32>
    %134 = arith.addf %131, %133 : vector<16x128xf32>
    %135 = math.tanh %134 : vector<16x128xf32>
    %cst_75 = arith.constant 5.000000e+00 : f32
    %136 = vector.broadcast %cst_75 : f32 to vector<16x128xf32>
    %137 = arith.mulf %135, %136 : vector<16x128xf32>
    %c0_76 = arith.constant 0 : index
    %c0_77 = arith.constant 0 : index
    %138 = vector.load %arg23[%c0_76, %c0_77] : memref<16x128xf32, #tpu.memory_space<vmem>>, vector<16x128xf32>
    tpu.vector_store %arg23[%c0_76, %c0_77], %137 {strides = array<i32>} : memref<16x128xf32, #tpu.memory_space<vmem>>, vector<16x128xf32>,
    return
  }
}

</mosaic_0001>

<bundles_post_ra>
// kernel: tpu_custom_call.1
= control target key start
LH: loop header
LB: loop body
LE: loop exit
PB: predicated region body
PF: predicated region fallthrough
CT: control target
= control target key end

     0   :  { %s7575_s0 = inlined_call_operand.hbm [shape: f32[16,128], index: 0, kind: input, shape index: {}]   ;;  %s7576_s1 = inlined_call_operand.vmem [shape: f32[32,128], index: 1, kind: input, shape index: {}]   ;;  %s7577_s2 = inlined_call_operand.vmem [shape: s32[32,1], index: 2, kind: input, shape index: {}]   ;;  %s7578_s3 = inlined_call_operand.vmem [shape: s32[1,32], index: 3, kind: input, shape index: {}]   ;;  %s7579_s4 = inlined_call_operand.vmem [shape: s32[32,1], index: 4, kind: input, shape index: {}]   ;;  %s7580_s5 = inlined_call_operand.vmem [shape: f32[128,128], index: 5, kind: input, shape index: {}]   ;;  %s7581_s6 = inlined_call_operand.vmem [shape: f32[1,128], index: 6, kind: input, shape index: {}]   ;;  %s7582_s7 = inlined_call_operand.vmem [shape: f32[128,32], index: 7, kind: input, shape index: {}]   ;;  %s7583_s8 = inlined_call_operand.vmem [shape: f32[1,32], index: 8, kind: input, shape index: {}]   ;;  %s7584_s9 = inlined_call_operand.vmem [shape: f32[128,512], index: 9, kind: input, shape index: {}]   ;;  %s7585_s10 = inlined_call_operand.vmem [shape: f32[32,64], index: 10, kind: input, shape index: {}]   ;;  %s7586_s11 = inlined_call_operand.vmem [shape: f32[128,64], index: 11, kind: input, shape index: {}]   ;;  %s7587_s12 = inlined_call_operand.vmem [shape: f32[1,64], index: 12, kind: input, shape index: {}]   ;;  %s7588_s13 = inlined_call_operand.vmem [shape: f32[64,512], index: 13, kind: input, shape index: {}]   ;;  %s7589_s14 = inlined_call_operand.vmem [shape: f32[64,64], index: 14, kind: input, shape index: {}]   ;;  %s7590_s15 = inlined_call_operand.vmem [shape: f32[1,64], index: 15, kind: input, shape index: {}]   ;;  %s7591_s16 = inlined_call_operand.vmem [shape: f32[512,64], index: 16, kind: input, shape index: {}]   ;;  %s7592_s17 = inlined_call_operand.vmem [shape: f32[128,64], index: 17, kind: input, shape index: {}]   ;;  %s7593_s18 = inlined_call_operand.vmem [shape: f32[64,64], index: 18, kind: input, shape index: {}]   ;;  %s7594_s19 = inlined_call_operand.vmem [shape: f32[128,64], index: 19, kind: input, shape index: {}]   ;;  %s7595_s20 = inlined_call_operand.vmem [shape: f32[1,64], index: 20, kind: input, shape index: {}]   ;;  %s7596_s21 = inlined_call_operand.vmem [shape: f32[64,128], index: 21, kind: input, shape index: {}]   ;;  %s7597_s22 = inlined_call_operand.vmem [shape: f32[1,128], index: 22, kind: input, shape index: {}]   ;;  %s7598_s23 = inlined_call_operand.hbm [shape: f32[16,128], index: 23, kind: output, shape index: {}]  }
   0x1   :  { %7783 = sst [smem:[#allocation100_spill]] %s7575_s0 }
   0x2   :  { %7784 = sst [smem:[#allocation101_spill]] %s7576_s1 }
   0x3   :  { %7785 = sst [smem:[#allocation102_spill]] %s7577_s2 }
   0x4   :  { %7786 = sst [smem:[#allocation103_spill]] %s7578_s3 }
   0x5   :  { %7787 = sst [smem:[#allocation104_spill]] %s7579_s4 }
   0x6   :  { %7788 = sst [smem:[#allocation105_spill]] %s7580_s5 }
   0x7   :  { %7789 = sst [smem:[#allocation106_spill]] %s7581_s6 }
   0x8   :  { %7790 = sst [smem:[#allocation107_spill]] %s7582_s7 }
   0x9   :  { %28 = vsyncpa [#allocation3], 0 }
   0xa   :  { %29 = vsyncpa [#allocation4], 0  ;;  %s4893_s4 = smov [#allocation2]   ;;  %s7791_s5 = sld [smem:[#allocation100_spill]] }
   0xb   :  { %s35_s30 = sshll.u32 %s4893_s4, 4  ;;  %s36_s30 = int_to_ptr.vmem [resolvable:$true] %s35_s30 }
  0x10   :  { %s4845_s1 = scalar_lea.hbm %s7791_s5, 256 }
  0x11   :  { %p4846_p0 = scmp.ne.s32.totalorder %s7791_s5, %s4845_s1  ;;  %p4849_p1 = scmp.lt.u32.totalorder %s4845_s1, %s7791_s5 }
  0x13   :  { %p4851_p2 = pnand %p4849_p1, %p4846_p0 }
  0x15   :  { %4854 = shalt.err (!%p4851_p2)
}
  0x16   :  { %s4855_s7 = scalar_lea.vmem %s36_s30, 256  ;;  %p4860_p4 = scmp.lt.s32.totalorder %s36_s30, %s36_s30 }
  0x17   :  { %p4856_p3 = scmp.ne.s32.totalorder %s36_s30, %s4855_s7  ;;  %p4861_p5 = scmp.lt.s32.totalorder %s4855_s7, %s4855_s7 }
  0x19   :  { %p4862_p6 = por %p4861_p5, %p4860_p4 }
  0x1b   :  { %p4863_p7 = pnand %p4862_p6, %p4856_p3 }
  0x1d   :  { %4866 = shalt.err (!%p4863_p7)
}
  0x1e   :  { %s4894_s28 = smov 128   ;;  %s4895_s29 = smov 8  }
  0x1f   :  { %41 = dma.hbm_to_vmem [thread:$0]  %s7791_s5, 256, %s36_s30, [#allocation3], %s4894_s28, %s4894_s28, %s4895_s29  }
  0x20   :  { %4889 = dma.done.wait [#allocation3], 256  }
  0x21   :  { %4890 = vsyncadd [#allocation3], 4294967040  ;;  %v4896_v0 = vmov 0   ;;  %s7792_s25 = sld [smem:[#allocation104_spill]]  ;;  %s7793_s3 = sld [smem:[#allocation102_spill]]  ;;  %v7613_v15 = vmov 0.0   ;;  %v98_v18 = vlaneseq }
  0x22   :  { %4840 = vset.pattern.permute.xlu1 %v4896_v0  ;;  %4839 = vset.pattern.permute.xlu0 %v4896_v0  ;;  %v4898_v35 = vmov 1.0|1.0   ;;  %v7804_v36 = vmov 0  ;;  %v7806_v38 = vmov 0  ;;  %v7808_v39 = vmov 0  ;;  %s7814_s30 = sld [smem:[#allocation105_spill]] }
  0x23   :  { %663 = vmatprep.mubr.f32.mxu0 %v7613_v15  ;;  %740 = vmatprep.mubr.f32.mxu1 %v7613_v15  ;;  %v5061_v19 = vand.u32 127, %v98_v18  ;;  %v7810_v40 = vmov 0  ;;  %v7812_v41 = vmov 0  ;;  %v5143_v42 = vshrl.u32 %v98_v18, 7  ;;  %s7817_s0 = sld [smem:[#allocation103_spill]]  ;;  %v777_v62 = vld [vmem:[#allocation2] sm:$0xff] }
  0x24   :  { %v7815_v45 = vmov 0  ;;  %v7818_v47 = vmov 0  ;;  %v7822_v51 = vmov 0  ;;  %s7828_s2 = sld [smem:[#allocation107_spill]]  ;;  %s7829_s6 = sld [smem:[#allocation101_spill]]  ;;  %v1690_v31 = vld [vmem:[%s7586_s11 + $0x20] sm:$0xff] }
  0x25   :  { %v137_v22 = vadd.s32 128, %v5061_v19  ;;  %v139_v23 = vadd.s32 384, %v5061_v19  ;;  %v5068_v26 = vadd.s32 256, %v5061_v19  ;;  %v126_v50 = vadd.s32 8, %v5143_v42  ;;  %s7830_s24 = sld [smem:[#allocation106_spill]]  ;;  %v1691_v32 = vld [vmem:[%s7586_s11 + $0x28] sm:$0xff] }
  0x26   :  { %v1694_v54 = vld [vmem:[%s7586_s11 + $0x40] sm:$0xff]  ;;  %v1696_v56 = vld [vmem:[%s7586_s11 + $0x50] sm:$0xff] }
  0x27   :  { %v97_v1 = vld [vmem:[%s7792_s25 + $0x18] sm:$0xff]  ;;  %v94_v2 = vld [vmem:[%s7792_s25] sm:$0xff]  ;;  %v95_v3 = vld [vmem:[%s7792_s25 + $0x8] sm:$0xff] }
  0x28   :  { %v143_v4 = vmul.u32 64, %v97_v1  ;;  %v140_v5 = vmul.u32 64, %v94_v2  ;;  %v96_v8 = vld [vmem:[%s7792_s25 + $0x10] sm:$0xff]  ;;  %v90_v13 = vld [vmem:[%s7793_s3 + $0x8] sm:$0xff]  ;;  %v89_v14 = vld [vmem:[%s7793_s3] sm:$0xff] }
  0x29   :  { %v141_v7 = vmul.u32 64, %v95_v3  ;;  %v142_v9 = vmul.u32 64, %v96_v8  ;;  %v92_v16 = vld [vmem:[%s7793_s3 + $0x18] sm:$0xff]  ;;  %v91_v17 = vld [vmem:[%s7793_s3 + $0x10] sm:$0xff]  ;;  %v779_v43 = vld [vmem:[%s7814_s30] sm:$0xff] }
  0x2a   :  { %154 = vperm.xlu1 %4840, %v143_v4   ;;  %145 = vperm.xlu0 %4839, %v140_v5   ;;  %v172_v6 = vadd.s32 64, %v140_v5  ;;  %v175_v11 = vadd.s32 64, %v143_v4  ;;  %v780_v44 = vld [vmem:[%s7814_s30 + $0x8] sm:$0xff]  ;;  %v3801_v46 = vld [vmem:[%s7817_s0] ss:$0 sm:$0xff]  ;;  %v781_v52 = vld [vmem:[%s7814_s30 + $0x10] sm:$0xff] }
  0x2b   :  { %v173_v10 = vadd.s32 64, %v141_v7  ;;  %v174_v12 = vadd.s32 64, %v142_v9  ;;  %v4432_v48 = vpack.c.bf16 %v780_v44, %v779_v43  ;;  %v782_v53 = vld [vmem:[%s7814_s30 + $0x18] sm:$0xff]  ;;  %v783_v58 = vld [vmem:[%s7814_s30 + $0x20] sm:$0xff]  ;;  %v784_v59 = vld [vmem:[%s7814_s30 + $0x28] sm:$0xff] }
  0x2c   :  { %v4436_v57 = vpack.c.bf16 %v782_v53, %v781_v52  ;;  %v4440_v61 = vpack.c.bf16 %v784_v59, %v783_v58  ;;  %v785_v63 = vld [vmem:[%s7814_s30 + $0x30] sm:$0xff]  ;;  %v786_v0 = vld [vmem:[%s7814_s30 + $0x38] sm:$0xff]  ;;  %v787_v2 = vld [vmem:[%s7814_s30 + $0x40] sm:$0xff] }
  0x2d   :  { %v4444_v1 = vpack.c.bf16 %v786_v0, %v785_v63  ;;  %v788_v3 = vld [vmem:[%s7814_s30 + $0x48] sm:$0xff]  ;;  %v789_v5 = vld [vmem:[%s7814_s30 + $0x50] sm:$0xff]  ;;  %v791_v8 = vld [vmem:[%s7814_s30 + $0x60] sm:$0xff] }
  0x2e   :  { %148 = vperm.xlu0 %4839, %v141_v7   ;;  %177 = vperm.xlu1 %4840, %v172_v6   ;;  %v4448_v4 = vpack.c.bf16 %v788_v3, %v787_v2  ;;  %v790_v6 = vld [vmem:[%s7814_s30 + $0x58] sm:$0xff]  ;;  %v883_v18 = vld [vmem:[%s7828_s2] sm:$0xff]  ;;  %v892_v44 = vld [vmem:[%s7828_s2 + $0x48] sm:$0xff] }
  0x2f   :  { %v4452_v7 = vpack.c.bf16 %v790_v6, %v789_v5  ;;  %v891_v43 = vld [vmem:[%s7828_s2 + $0x40] sm:$0xff]  ;;  %v897_v59 = vld [vmem:[%s7828_s2 + $0x70] sm:$0xff]  ;;  %v1094_v63 = vld [vmem:[%s7584_s9 + $0x8] sm:$0xff] }
  0x30   :  { %v895_v53 = vld [vmem:[%s7828_s2 + $0x60] sm:$0xff]  ;;  %v1098_v0 = vld [vmem:[%s7584_s9 + $0x28] sm:$0xff] }
  0x31   :  { %v1093_v2 = vld [vmem:[%s7584_s9] sm:$0xff]  ;;  %v1106_v5 = vld [vmem:[%s7584_s9 + $0x68] sm:$0xff] }
  0x32   :  { %151 = vperm.xlu0 %4839, %v142_v9   ;;  %180 = vperm.xlu1 %4840, %v173_v10   ;;  %v792_v9 = vld [vmem:[%s7814_s30 + $0x68] sm:$0xff]  ;;  %v1097_v3 = vld [vmem:[%s7584_s9 + $0x20] sm:$0xff] }
  0x33   :  { %v4456_v10 = vpack.c.bf16 %v792_v9, %v791_v8  ;;  %v880_v6 = vld [vmem:[%s7829_s6 + $0x8] sm:$0xff]  ;;  %v1101_v9 = vld [vmem:[%s7584_s9 + $0x40] sm:$0xff] }
  0x36   :  { %183 = vperm.xlu0 %4839, %v174_v12   ;;  %186 = vperm.xlu1 %4840, %v175_v11   ;;  %v793_v11 = vld [vmem:[%s7814_s30 + $0x70] sm:$0xff]  ;;  %v794_v12 = vld [vmem:[%s7814_s30 + $0x78] sm:$0xff] }
  0x3a   :  { %104 = vperm.xlu1 %4840, %v90_v13   ;;  %101 = vperm.xlu0 %4839, %v89_v14   ;;  %v4460_v13 = vpack.c.bf16 %v794_v12, %v793_v11  ;;  %v881_v11 = vld [vmem:[%s7829_s6 + $0x10] sm:$0xff]  ;;  %v1110_v12 = vld [vmem:[%s7584_s9 + $0x88] sm:$0xff] }
  0x3e   :  { %110 = vperm.xlu1 %4840, %v92_v16   ;;  %107 = vperm.xlu0 %4839, %v91_v17   ;;  %v778_v16 = vld [vmem:[#allocation2 + $0x8] sm:$0xff] }
  0xa9   :  { %v5063_v20 = vpop.permute.xlu1 %154  ;;  %v146_v21 = vpop.permute.xlu0 %145 }
  0xaa   :  { %vm157_vm0 = vcmp.ge.s32.totalorder %v137_v22, %v146_v21  ;;  %vm159_vm4 = vcmp.ge.s32.totalorder %v139_v23, %v146_v21  ;;  %vm156_vm8 = vcmp.ge.s32.totalorder %v5061_v19, %v146_v21  ;;  %vm158_vm10 = vcmp.ge.s32.totalorder %v5068_v26, %v146_v21  ;;  %v885_v21 = vld [vmem:[%s7828_s2 + $0x10] sm:$0xff] }
  0xad   :  { %v149_v24 = vpop.permute.xlu0 %148  ;;  %v178_v25 = vpop.permute.xlu1 %177 }
  0xae   :  { %vm189_vm1 = vcmp.lt.s32.totalorder %v137_v22, %v178_v25  ;;  %vm191_vm2 = vcmp.lt.s32.totalorder %v139_v23, %v178_v25  ;;  %vm188_vm5 = vcmp.lt.s32.totalorder %v5061_v19, %v178_v25  ;;  %vm190_vm6 = vcmp.lt.s32.totalorder %v5068_v26, %v178_v25  ;;  %v887_v25 = vld [vmem:[%s7828_s2 + $0x20] sm:$0xff] }
  0xaf   :  { %vm5070_vm3 = vmand %vm157_vm0, %vm189_vm1  ;;  %vm161_vm11 = vcmp.ge.s32.totalorder %v137_v22, %v149_v24  ;;  %vm163_vm1 = vcmp.ge.s32.totalorder %v139_v23, %v149_v24 }
  0xb0   :  { %vm5076_vm7 = vmand %vm159_vm4, %vm191_vm2 }
  0xb1   :  { %v5081_v29 = vpop.permute.xlu0 %151  ;;  %v181_v30 = vpop.permute.xlu1 %180  ;;  %vm5083_vm9 = vmand %vm156_vm8, %vm188_vm5 }
  0xb2   :  { %vm193_vm12 = vcmp.lt.s32.totalorder %v137_v22, %v181_v30  ;;  %vm195_vm13 = vcmp.lt.s32.totalorder %v139_v23, %v181_v30  ;;  %vm5088_vm14 = vmand %vm158_vm10, %vm190_vm6  ;;  %vm192_vm2 = vcmp.lt.s32.totalorder %v5061_v19, %v181_v30  ;;  %vm160_vm6 = vcmp.ge.s32.totalorder %v5061_v19, %v149_v24 }
  0xb3   :  { %vm5092_vm15 = vmand %vm161_vm11, %vm193_vm12  ;;  %vm194_vm8 = vcmp.lt.s32.totalorder %v5068_v26, %v181_v30  ;;  %vm162_vm12 = vcmp.ge.s32.totalorder %v5068_v26, %v149_v24  ;;  %v879_v30 = vld [vmem:[%s7829_s6] sm:$0xff] }
  0xb4   :  { %vm4416_vm0 = vmpackc.low %vm5092_vm15, %vm5070_vm3 }
  0xb5   :  { %v184_v34 = vpop.permute.xlu0 %183  ;;  %4417 = vmatprep.subr.msk.bf16.mxu0 %vm4416_vm0, %v4898_v35  ;;  %vm5101_vm4 = vmand %vm163_vm1, %vm195_vm13  ;;  %v187_v37 = vpop.permute.xlu1 %186 }
  0xb6   :  { %v7805_v36 = vsel %vm5101_vm4, 4294967295, %v7804_v36  ;;  %vm4424_vm5 = vmpackc.low %vm5101_vm4, %vm5076_vm7  ;;  %vm197_vm13 = vcmp.lt.s32.totalorder %v137_v22, %v184_v34  ;;  %vm201_vm1 = vcmp.lt.s32.totalorder %v137_v22, %v187_v37  ;;  %vm167_vm4 = vcmp.ge.s32.totalorder %v139_v23, %v5081_v29 }
  0xb7   :  { %4425 = vmatprep.subr.msk.bf16.mxu1 %vm4424_vm5, %v4898_v35  ;;  %vm5111_vm10 = vmand %vm160_vm6, %vm192_vm2  ;;  %vm165_vm5 = vcmp.ge.s32.totalorder %v137_v22, %v5081_v29  ;;  %vm169_vm6 = vcmp.ge.s32.totalorder %v137_v22, %v5063_v20 }
  0xb8   :  { %v7807_v38 = vsel %vm5111_vm10, 4294967295, %v7806_v38  ;;  %vm4418_vm11 = vmpackc.low %vm5111_vm10, %vm5083_vm9 }
  0xb9   :  { %4419 = vmatpush1.bf16.msk.msra.mxu0 %vm4418_vm11, %v4898_v35  ;;  %vm5120_vm0 = vmand %vm162_vm12, %vm194_vm8  ;;  %vm199_vm11 = vcmp.lt.s32.totalorder %v139_v23, %v184_v34  ;;  %vm203_vm12 = vcmp.lt.s32.totalorder %v139_v23, %v187_v37  ;;  %v102_v14 = vpop.permute.xlu0 %101 }
  0xba   :  { %v7809_v39 = vsel %vm5120_vm0, 4294967295, %v7808_v39  ;;  %vm4426_vm2 = vmpackc.low %vm5120_vm0, %vm5088_vm14 }
  0xbb   :  { %4427 = vmatpush1.bf16.msk.msra.mxu1 %vm4426_vm2, %v4898_v35  ;;  %vm5130_vm10 = vmand %vm165_vm5, %vm197_vm13  ;;  %vm171_vm13 = vcmp.ge.s32.totalorder %v139_v23, %v5063_v20  ;;  %vm196_vm2 = vcmp.lt.s32.totalorder %v5061_v19, %v184_v34  ;;  %v886_v23 = vld [vmem:[%s7828_s2 + $0x18] sm:$0xff] }
  0xbc   :  { %v7811_v40 = vsel %vm5130_vm10, 4294967295, %v7810_v40  ;;  %vm5134_vm8 = vmand %vm169_vm6, %vm201_vm1  ;;  %vm200_vm6 = vcmp.lt.s32.totalorder %v5061_v19, %v187_v37  ;;  %v4468_v24 = vpack.c.bf16 %v886_v23, %v885_v21  ;;  %v1113_v21 = vld [vmem:[%s7584_s9 + $0xa0] sm:$0xff]  ;;  %v1122_v23 = vld [vmem:[%s7584_s9 + $0xe8] sm:$0xff] }
  0xbd   :  { %v7813_v41 = vsel %vm5134_vm8, 4294967295, %v7812_v41  ;;  %vm4420_vm0 = vmpackc.low %vm5134_vm8, %vm5130_vm10 }
  0xbe   :  { %4421 = vmatprep.subr.msk.bf16.mxu0 %vm4420_vm0, %v4898_v35  ;;  %vm5152_vm1 = vmand %vm167_vm4, %vm199_vm11  ;;  %vm164_vm0 = vcmp.ge.s32.totalorder %v5061_v19, %v5081_v29  ;;  %vm168_vm11 = vcmp.ge.s32.totalorder %v5061_v19, %v5063_v20 }
  0xbf   :  { %v7816_v45 = vsel %vm5152_vm1, 4294967295, %v7815_v45  ;;  %vm5160_vm5 = vmand %vm171_vm13, %vm203_vm12  ;;  %vm198_vm12 = vcmp.lt.s32.totalorder %v5068_v26, %v184_v34  ;;  %vm131_vm13 = vcmp.eq.s32.totalorder %v5143_v42, %v3801_v46  ;;  %v889_v34 = vld [vmem:[%s7828_s2 + $0x30] sm:$0xff] }
  0xc0   :  { %v7819_v47 = vsel %vm5160_vm5, 4294967295, %v7818_v47  ;;  %vm4428_vm4 = vmpackc.low %vm5160_vm5, %vm5152_vm1  ;;  %vm202_vm5 = vcmp.lt.s32.totalorder %v5068_v26, %v187_v37  ;;  %v5204_v55 = vsel %vm131_vm13, 1.0, %v7613_v15 }
  0xc1   :  { %4429 = vmatprep.subr.msk.bf16.mxu1 %vm4428_vm4, %v4898_v35  ;;  %vm5173_vm8 = vmand %vm164_vm0, %vm196_vm2  ;;  %vm170_vm4 = vcmp.ge.s32.totalorder %v5068_v26, %v5063_v20  ;;  %v884_v20 = vld [vmem:[%s7828_s2 + $0x8] sm:$0xff] }
  0xc2   :  { %vm5180_vm10 = vmand %vm168_vm11, %vm200_vm6  ;;  %vm166_vm6 = vcmp.ge.s32.totalorder %v5068_v26, %v5081_v29  ;;  %vm592_vm11 = vcmask 261120   ;;  %v4464_v22 = vpack.c.bf16 %v884_v20, %v883_v18  ;;  %v888_v26 = vld [vmem:[%s7828_s2 + $0x28] sm:$0xff]  ;;  %v1109_v20 = vld [vmem:[%s7584_s9 + $0x80] sm:$0xff] }
  0xc3   :  { %v7823_v51 = vsel %vm5180_vm10, 4294967295, %v7822_v51  ;;  %vm4422_vm2 = vmpackc.low %vm5180_vm10, %vm5173_vm8  ;;  %vm132_vm10 = vcmp.eq.s32.totalorder %v126_v50, %v3801_v46  ;;  %v4472_v29 = vpack.c.bf16 %v888_v26, %v887_v25  ;;  %v4480_v46 = vpack.c.bf16 %v892_v44, %v891_v43  ;;  %v894_v50 = vld [vmem:[%s7828_s2 + $0x58] sm:$0xff]  ;;  %v1117_v26 = vld [vmem:[%s7584_s9 + $0xc0] sm:$0xff] }
  0xc4   :  { %4423 = vmatpush1.bf16.msk.msra.mxu0 %vm4422_vm2, %v4898_v35  ;;  %vm5199_vm0 = vmand %vm166_vm6, %vm198_vm12  ;;  %v5224_v60 = vsel %vm132_vm10, 1.0, %v7613_v15  ;;  %vm112_vm10 = vcmp.eq.s32.totalorder %v5061_v19, %v102_v14  ;;  %v1125_v43 = vld [vmem:[%s7584_s9 + $0x100] sm:$0xff] }
  0xc5   :  { %vm5206_vm1 = vmand %vm170_vm4, %vm202_vm5  ;;  %4433 = vmatprep.subr.bf16.mxu0 %v4432_v48  ;;  %vm995_vm5 = vcmask 130048   ;;  %v5265_v17 = vsel %vm112_vm10, 1.0, %v7613_v15  ;;  %v1129_v44 = vld [vmem:[%s7584_s9 + $0x120] sm:$0xff]  ;;  %vm7837_vm4 = vnez %v7819_v47 }
  0xc6   :  { %vm4430_vm2 = vmpackc.low %vm5206_vm1, %vm5199_vm0 }
  0xc7   :  { %4431 = vmatpush1.bf16.msk.msra.mxu1 %vm4430_vm2, %v4898_v35  ;;  %3846 = vmatmul.mubr.msk.f32.vlgmr.msra.gmra.mrb[0].mxu0 %vm592_vm11, %v5204_v55  ;;  %v890_v35 = vld [vmem:[%s7828_s2 + $0x38] sm:$0xff] }
  0xc8   :  { %4435 = vmatpush3.bf16.msra.mxu0 %v4432_v48  ;;  %669 = vmatprep.mubr.f32.mxu0 %v7613_v15  ;;  %v4476_v37 = vpack.c.bf16 %v890_v35, %v889_v34  ;;  %v893_v48 = vld [vmem:[%s7828_s2 + $0x50] sm:$0xff]  ;;  %v1130_v34 = vld [vmem:[%s7584_s9 + $0x128] sm:$0xff] }
  0xc9   :  { %4437 = vmatprep.subr.bf16.mxu0 %v4436_v57  ;;  %4465 = vmatprep.subr.bf16.mxu1 %v4464_v22  ;;  %v4484_v52 = vpack.c.bf16 %v894_v50, %v893_v48  ;;  %v1138_v48 = vld [vmem:[%s7584_s9 + $0x168] sm:$0xff]  ;;  %v4518_v50 = vpack.c.bf16 %v1129_v44, %v1125_v43 }
  0xca   :  { %3856 = vmatmul.mubr.msk.f32.vlgmr.msra.gmra.mrb[0].mxu1 %vm592_vm11, %v5204_v55 }
  0xcb   :  { %3847 = vmatmul.mubr.msk.f32.gmra.mrb[2].mxu0 %vm592_vm11, %v5224_v60  ;;  %746 = vmatprep.mubr.f32.mxu1 %v7613_v15 }
  0xcc   :  { %4439 = vmatpush3.bf16.msra.mxu0 %v4436_v57  ;;  %4168 = vmatprep.mubr.f32.mxu0 %v777_v62  ;;  %v896_v57 = vld [vmem:[%s7828_s2 + $0x68] sm:$0xff] }
  0xcd   :  { %4441 = vmatprep.subr.bf16.mxu0 %v4440_v61  ;;  %4467 = vmatpush3.bf16.msra.mxu1 %v4464_v22  ;;  %v4488_v58 = vpack.c.bf16 %v896_v57, %v895_v53  ;;  %v1118_v22 = vld [vmem:[%s7584_s9 + $0xc8] sm:$0xff]  ;;  %v1133_v53 = vld [vmem:[%s7584_s9 + $0x140] sm:$0xff] }
  0xce   :  { %3857 = vmatmul.mubr.msk.f32.gmra.mrb[2].mxu1 %vm592_vm11, %v5224_v60  ;;  %4469 = vmatprep.subr.bf16.mxu1 %v4468_v24  ;;  %v4512_v25 = vpack.c.bf16 %v1122_v23, %v1118_v22  ;;  %v1137_v57 = vld [vmem:[%s7584_s9 + $0x160] sm:$0xff]  ;;  %v1096_v22 = vld [vmem:[%s7584_s9 + $0x18] sm:$0xff] }
  0xcf   :  { %4203 = vmatprep.mubr.f32.mxu1 %v879_v30  ;;  %v1126_v30 = vld [vmem:[%s7584_s9 + $0x108] sm:$0xff]  ;;  %v1100_v23 = vld [vmem:[%s7584_s9 + $0x38] sm:$0xff] }
  0xd0   :  { %4443 = vmatpush3.bf16.msra.mxu0 %v4440_v61  ;;  %v898_v61 = vld [vmem:[%s7828_s2 + $0x78] sm:$0xff] }
  0xd1   :  { %4445 = vmatprep.subr.bf16.mxu0 %v4444_v1  ;;  %4471 = vmatpush3.bf16.msra.mxu1 %v4468_v24  ;;  %v4492_v62 = vpack.c.bf16 %v898_v61, %v897_v59  ;;  %v4510_v24 = vpack.c.bf16 %v1113_v21, %v1109_v20  ;;  %v1146_v59 = vld [vmem:[%s7584_s9 + $0x1a8] sm:$0xff]  ;;  %v4522_v61 = vpack.c.bf16 %v1137_v57, %v1133_v53  ;;  %v105_v20 = vpop.permute.xlu1 %104  ;;  %v1112_v53 = vld [vmem:[%s7584_s9 + $0x98] sm:$0xff] }
  0xd2   :  { %4473 = vmatprep.subr.bf16.mxu1 %v4472_v29  ;;  %vm113_vm12 = vcmp.eq.s32.totalorder %v5061_v19, %v105_v20  ;;  %v1116_v57 = vld [vmem:[%s7584_s9 + $0xb8] sm:$0xff] }
  0xd3   :  { %v1140_v20 = vld [vmem:[%s7584_s9 + $0x178] sm:$0xff] }
  0xd4   :  { %4447 = vmatpush3.bf16.msra.mxu0 %v4444_v1  ;;  %v4500_v1 = vpack.c.bf16 %v1098_v0, %v1094_v63  ;;  %v1141_v63 = vld [vmem:[%s7584_s9 + $0x180] sm:$0xff] }
  0xd5   :  { %4449 = vmatprep.subr.bf16.mxu0 %v4448_v4  ;;  %4475 = vmatpush3.bf16.msra.mxu1 %v4472_v29  ;;  %v1121_v29 = vld [vmem:[%s7584_s9 + $0xe0] sm:$0xff]  ;;  %v111_v43 = vpop.permute.xlu1 %110 }
  0xd6   :  { %4477 = vmatprep.subr.bf16.mxu1 %v4476_v37  ;;  %v4514_v35 = vpack.c.bf16 %v1121_v29, %v1117_v26  ;;  %v1145_v0 = vld [vmem:[%s7584_s9 + $0x1a0] sm:$0xff]  ;;  %v4532_v29 = vpack.c.bf16 %v1100_v23, %v1096_v22  ;;  %vm115_vm6 = vcmp.eq.s32.totalorder %v5061_v19, %v111_v43  ;;  %v1147_v43 = vld [vmem:[%s7584_s9 + $0x1b0] sm:$0xff] }
  0xd8   :  { %4451 = vmatpush3.bf16.msra.mxu0 %v4448_v4  ;;  %v1102_v4 = vld [vmem:[%s7584_s9 + $0x48] sm:$0xff] }
  0xd9   :  { %4453 = vmatprep.subr.bf16.mxu0 %v4452_v7  ;;  %4479 = vmatpush3.bf16.msra.mxu1 %v4476_v37  ;;  %v4504_v8 = vpack.c.bf16 %v1106_v5, %v1102_v4  ;;  %v4516_v37 = vpack.c.bf16 %v1130_v34, %v1126_v30  ;;  %v1149_v5 = vld [vmem:[%s7584_s9 + $0x1c0] sm:$0xff]  ;;  %v1095_v30 = vld [vmem:[%s7584_s9 + $0x10] sm:$0xff] }
  0xda   :  { %4481 = vmatprep.subr.bf16.mxu1 %v4480_v46  ;;  %v1099_v34 = vld [vmem:[%s7584_s9 + $0x30] sm:$0xff] }
  0xdb   :  { %v4534_v44 = vpack.c.bf16 %v1099_v34, %v1095_v30  ;;  %v1148_v30 = vld [vmem:[%s7584_s9 + $0x1b8] sm:$0xff] }
  0xdc   :  { %4455 = vmatpush3.bf16.msra.mxu0 %v4452_v7  ;;  %v4502_v7 = vpack.c.bf16 %v1097_v3, %v1093_v2  ;;  %v1154_v2 = vld [vmem:[%s7584_s9 + $0x1e8] sm:$0xff]  ;;  %v4526_v3 = vpack.c.bf16 %v1145_v0, %v1141_v63  ;;  %v5493_v63 = vsel %vm115_vm6, 1.0, %v7613_v15  ;;  %v1120_v0 = vld [vmem:[%s7584_s9 + $0xd8] sm:$0xff] }
  0xdd   :  { %4457 = vmatprep.subr.bf16.mxu0 %v4456_v10  ;;  %4483 = vmatpush3.bf16.msra.mxu1 %v4480_v46  ;;  %v1134_v46 = vld [vmem:[%s7584_s9 + $0x148] sm:$0xff] }
  0xde   :  { %4485 = vmatprep.subr.bf16.mxu1 %v4484_v52 }
  0xe0   :  { %4459 = vmatpush3.bf16.msra.mxu0 %v4456_v10  ;;  %v1105_v10 = vld [vmem:[%s7584_s9 + $0x60] sm:$0xff] }
  0xe1   :  { %4461 = vmatprep.subr.bf16.mxu0 %v4460_v13  ;;  %4487 = vmatpush3.bf16.msra.mxu1 %v4484_v52  ;;  %v4506_v14 = vpack.c.bf16 %v1105_v10, %v1101_v9  ;;  %v4520_v52 = vpack.c.bf16 %v1138_v48, %v1134_v46  ;;  %v1103_v48 = vld [vmem:[%s7584_s9 + $0x50] sm:$0xff] }
  0xe2   :  { %4489 = vmatprep.subr.bf16.mxu1 %v4488_v58 }
  0xe4   :  { %4463 = vmatpush3.bf16.msra.mxu0 %v4460_v13  ;;  %v1114_v13 = vld [vmem:[%s7584_s9 + $0xa8] sm:$0xff] }
  0xe5   :  { %4491 = vmatpush3.bf16.msra.mxu1 %v4488_v58  ;;  %v4508_v18 = vpack.c.bf16 %v1114_v13, %v1110_v12  ;;  %v1142_v58 = vld [vmem:[%s7584_s9 + $0x188] sm:$0xff]  ;;  %v3866_v12 = vld [vmem:[%s7830_s24] ss:$0 sm:$0xff] }
  0xe6   :  { %4493 = vmatprep.subr.bf16.mxu1 %v4492_v62 }
  0xe7   :  { %4169 = vmatmul.mubr.f32.vlgmr.msra.gmra.mrb[4].mxu0 %v778_v16  ;;  %v882_v16 = vld [vmem:[%s7829_s6 + $0x18] sm:$0xff] }
  0xe8   :  { %4213 = vmatprep.mubr.msk.f32.mxu0 %vm995_vm5, %v5265_v17 }
  0xe9   :  { %4495 = vmatpush3.bf16.msra.mxu1 %v4492_v62  ;;  %v4524_v62 = vpack.c.bf16 %v1146_v59, %v1142_v58 }
  0xea   :  { %4501 = vmatprep.subr.bf16.mxu1 %v4500_v1  ;;  %v1150_v1 = vld [vmem:[%s7584_s9 + $0x1c8] sm:$0xff] }
  0xeb   :  { %v4528_v4 = vpack.c.bf16 %v1154_v2, %v1150_v1  ;;  %v1124_v1 = vld [vmem:[%s7584_s9 + $0xf8] sm:$0xff] }
  0xec   :  { %4204 = vmatmul.mubr.f32.vlgmr.msra.gmra.mrb[4].mxu1 %v880_v6  ;;  %v1153_v6 = vld [vmem:[%s7584_s9 + $0x1e0] sm:$0xff] }
  0xed   :  { %4503 = vmatpush1.bf16.msra.mxu1 %v4502_v7  ;;  %4206 = vmatprep.mubr.f32.mxu1 %v881_v11  ;;  %v4530_v7 = vpack.c.bf16 %v1153_v6, %v1149_v5  ;;  %v1123_v5 = vld [vmem:[%s7584_s9 + $0xf0] sm:$0xff]  ;;  %v1128_v6 = vld [vmem:[%s7584_s9 + $0x118] sm:$0xff] }
  0xee   :  { %4505 = vmatprep.subr.bf16.mxu1 %v4504_v8 }
  0xf0   :  { %4207 = vmatmul.mubr.f32.gmra.mrb[6].mxu1 %v882_v16 }
  0xf1   :  { %4507 = vmatpush1.bf16.msra.mxu1 %v4506_v14  ;;  %1221 = vmatprep.mubr.f32.mxu1 %v7613_v15 }
  0xf2   :  { %4509 = vmatprep.subr.bf16.mxu1 %v4508_v18 }
  0xf5   :  { %4511 = vmatpush1.bf16.msra.mxu1 %v4510_v24 }
  0xf6   :  { %4513 = vmatprep.subr.bf16.mxu1 %v4512_v25  ;;  %v108_v25 = vpop.permute.xlu0 %107 }
  0xf7   :  { %vm114_vm13 = vcmp.eq.s32.totalorder %v5061_v19, %v108_v25  ;;  %v1115_v19 = vld [vmem:[%s7584_s9 + $0xb0] sm:$0xff] }
  0xf8   :  { %v5480_v58 = vsel %vm114_vm13, 1.0, %v7613_v15  ;;  %v1135_v25 = vld [vmem:[%s7584_s9 + $0x150] sm:$0xff] }
  0xf9   :  { %4515 = vmatpush1.bf16.msra.mxu1 %v4514_v35  ;;  %v1104_v35 = vld [vmem:[%s7584_s9 + $0x58] sm:$0xff] }
  0xfa   :  { %4517 = vmatprep.subr.bf16.mxu1 %v4516_v37  ;;  %v1108_v37 = vld [vmem:[%s7584_s9 + $0x78] sm:$0xff] }
  0xfb   :  { %v4536_v46 = vpack.c.bf16 %v1108_v37, %v1104_v35  ;;  %v1143_v37 = vld [vmem:[%s7584_s9 + $0x190] sm:$0xff] }
  0xfd   :  { %4519 = vmatpush1.bf16.msra.mxu1 %v4518_v50  ;;  %v1107_v50 = vld [vmem:[%s7584_s9 + $0x70] sm:$0xff] }
  0xfe   :  { %4521 = vmatprep.subr.bf16.mxu1 %v4520_v52  ;;  %v5470_v52 = vsel %vm113_vm12, 1.0, %v7613_v15  ;;  %v4538_v59 = vpack.c.bf16 %v1107_v50, %v1103_v48  ;;  %v4558_v48 = vpack.c.bf16 %v1147_v43, %v1143_v37  ;;  %v1389_v37 = vld [vmem:[%s7591_s16 + $0x110] sm:$0xff]  ;;  %v1390_v43 = vld [vmem:[%s7591_s16 + $0x118] sm:$0xff] }
 0x101   :  { %4523 = vmatpush1.bf16.msra.mxu1 %v4522_v61  ;;  %v4540_v61 = vpack.c.bf16 %v1116_v57, %v1112_v53  ;;  %v1151_v53 = vld [vmem:[%s7584_s9 + $0x1d0] sm:$0xff] }
 0x102   :  { %4525 = vmatprep.subr.bf16.mxu1 %v4524_v62  ;;  %v1111_v62 = vld [vmem:[%s7584_s9 + $0x90] sm:$0xff] }
 0x103   :  { %v4542_v2 = vpack.c.bf16 %v1115_v19, %v1111_v62  ;;  %v1155_v57 = vld [vmem:[%s7584_s9 + $0x1f0] sm:$0xff]  ;;  %v1403_v62 = vld [vmem:[%s7591_s16 + $0x180] sm:$0xff]  ;;  %v1404_v19 = vld [vmem:[%s7591_s16 + $0x188] sm:$0xff] }
 0x105   :  { %4527 = vmatpush1.bf16.msra.mxu1 %v4526_v3  ;;  %v4544_v3 = vpack.c.bf16 %v1124_v1, %v1120_v0  ;;  %v4596_v1 = vpack.c.bf16 %v1404_v19, %v1403_v62  ;;  %v1375_v62 = vld [vmem:[%s7591_s16 + $0xa0] sm:$0xff]  ;;  %v1376_v19 = vld [vmem:[%s7591_s16 + $0xa8] sm:$0xff] }
 0x106   :  { %4529 = vmatprep.subr.bf16.mxu1 %v4528_v4  ;;  %v1119_v4 = vld [vmem:[%s7584_s9 + $0xd0] sm:$0xff] }
 0x109   :  { %4531 = vmatpush1.bf16.msra.mxu1 %v4530_v7  ;;  %v1132_v7 = vld [vmem:[%s7584_s9 + $0x138] sm:$0xff] }
 0x19a   :  { %v5426_v8 = vpop.f32.mrb[0].mxu0 }
 0x19b   :  { %v5428_v9 = vpop.f32.mrb[1].mxu0 }
 0x19c   :  { %vm754_vm2 = vcmp.gt.f32.partialorder %v5428_v9, 0.0 }
 0x19e   :  { %v5430_v10 = vpop.f32.mrb[2].mxu0 }
 0x19f   :  { %v5432_v11 = vpop.f32.mrb[3].mxu0  ;;  %vm757_vm10 = vcmp.gt.f32.partialorder %v5430_v10, 0.0 }
 0x1ba   :  { %v4170_v13 = vpop.f32.mrb[4].mxu0 }
 0x1bb   :  { %v874_v14 = vadd.f32 %v4170_v13, %v3866_v12  ;;  %v868_v16 = vpop.f32.mrb[5].mxu0  ;;  %v4548_v13 = vpack.c.bf16 %v1132_v7, %v1128_v6 }
 0x1bc   :  { %v869_v18 = vadd.f32 %v3866_v12, %v868_v16  ;;  %v4546_v12 = vpack.c.bf16 %v1123_v5, %v1119_v4  ;;  %v1131_v16 = vld [vmem:[%s7584_s9 + $0x130] sm:$0xff] }
 0x1bd   :  { %v5437_v21 = vmax.f32 %v874_v14, 0.0  ;;  %v1127_v14 = vld [vmem:[%s7584_s9 + $0x110] sm:$0xff] }
 0x1be   :  { %v5445_v24 = vmax.f32 %v869_v18, 0.0  ;;  %v1136_v18 = vld [vmem:[%s7584_s9 + $0x158] sm:$0xff]  ;;  %v4550_v22 = vpack.c.bf16 %v1131_v16, %v1127_v14  ;;  %v1387_v16 = vld [vmem:[%s7591_s16 + $0x100] sm:$0xff] }
 0x1bf   :  { %v4552_v23 = vpack.c.bf16 %v1140_v20, %v1136_v18  ;;  %v1388_v18 = vld [vmem:[%s7591_s16 + $0x108] sm:$0xff]  ;;  %v1355_v20 = vld [vmem:[%s7591_s16] sm:$0xff] }
 0x1c0   :  { %v4496_v26 = vpack.c.bf16 %v5437_v21, %v5445_v24 }
 0x1c2   :  { %4497 = vmatprep.subr.bf16.mxu0 %v4496_v26 }
 0x1c3   :  { %4499 = vmatpush3.bf16.msra.mxu0 %v4496_v26  ;;  %v1139_v26 = vld [vmem:[%s7584_s9 + $0x170] sm:$0xff] }
 0x1c4   :  { %4533 = vmatprep.subr.bf16.mxu0 %v4532_v29  ;;  %v1144_v29 = vld [vmem:[%s7584_s9 + $0x198] sm:$0xff]  ;;  %v4554_v34 = vpack.c.bf16 %v1139_v26, %v1135_v25  ;;  %v1373_v26 = vld [vmem:[%s7591_s16 + $0x90] sm:$0xff] }
 0x1c5   :  { %v4556_v35 = vpack.c.bf16 %v1148_v30, %v1144_v29  ;;  %v1406_v25 = vld [vmem:[%s7591_s16 + $0x198] sm:$0xff] }
 0x1c6   :  { %4214 = vmatmul.mubr.msk.f32.vlgmr.msra.gmra.mrb[6].mxu0 %vm995_vm5, %v5470_v52  ;;  %v1374_v29 = vld [vmem:[%s7591_s16 + $0x98] sm:$0xff] }
 0x1c7   :  { %4216 = vmatprep.mubr.msk.f32.mxu0 %vm995_vm5, %v5480_v58  ;;  %4535 = vmatpush1.bf16.msra.mxu0 %v4534_v44  ;;  %v1152_v44 = vld [vmem:[%s7584_s9 + $0x1d8] sm:$0xff] }
 0x1c8   :  { %4537 = vmatprep.subr.bf16.mxu0 %v4536_v46  ;;  %v1156_v46 = vld [vmem:[%s7584_s9 + $0x1f8] sm:$0xff] }
 0x1c9   :  { %v4560_v50 = vpack.c.bf16 %v1156_v46, %v1152_v44 }
 0x1ca   :  { %4217 = vmatmul.mubr.msk.f32.gmra.mrb[8].mxu0 %vm995_vm5, %v5493_v63 }
 0x1cb   :  { %4539 = vmatpush1.bf16.msra.mxu0 %v4538_v59  ;;  %1310 = vmatprep.mubr.f32.mxu0 %v7613_v15  ;;  %v4562_v59 = vpack.c.bf16 %v1155_v57, %v1151_v53  ;;  %v1358_v53 = vld [vmem:[%s7591_s16 + $0x18] sm:$0xff]  ;;  %v1407_v57 = vld [vmem:[%s7591_s16 + $0x1a0] sm:$0xff] }
 0x1cc   :  { %4541 = vmatprep.subr.bf16.mxu0 %v4540_v61  ;;  %v5558_v61 = vpop.f32.mrb[0].mxu1 }
 0x1cd   :  { %v5566_v0 = vpop.f32.mrb[1].mxu1  ;;  %vm755_vm12 = vcmp.gt.f32.partialorder %v5558_v61, 0.0 }
 0x1ce   :  { %v5574_v4 = vpop.f32.mrb[2].mxu1  ;;  %vm756_vm13 = vcmp.gt.f32.partialorder %v5566_v0, 0.0 }
 0x1cf   :  { %4543 = vmatpush1.bf16.msra.mxu0 %v4542_v2  ;;  %v1371_v2 = vld [vmem:[%s7591_s16 + $0x80] sm:$0xff]  ;;  %v5576_v6 = vpop.f32.mrb[3].mxu1  ;;  %vm759_vm6 = vcmp.gt.f32.partialorder %v5574_v4, 0.0 }
 0x1d0   :  { %4545 = vmatprep.subr.bf16.mxu0 %v4544_v3  ;;  %v1372_v3 = vld [vmem:[%s7591_s16 + $0x88] sm:$0xff]  ;;  %v5578_v7 = vpop.f32.mrb[4].mxu1 }
 0x1d1   :  { %v4564_v5 = vpack.c.bf16 %v1372_v3, %v1371_v2  ;;  %v4602_v2 = vpack.c.bf16 %v1390_v43, %v1389_v37  ;;  %v1393_v43 = vld [vmem:[%s7591_s16 + $0x130] sm:$0xff] }
 0x1d3   :  { %4547 = vmatpush1.bf16.msra.mxu0 %v4546_v12  ;;  %4565 = vmatprep.subr.bf16.mxu1 %v4564_v5  ;;  %v5580_v12 = vpop.f32.mrb[5].mxu1  ;;  %v1391_v5 = vld [vmem:[%s7591_s16 + $0x120] sm:$0xff] }
 0x1d4   :  { %4549 = vmatprep.subr.bf16.mxu0 %v4548_v13  ;;  %v5582_v13 = vpop.f32.mrb[6].mxu1 }
 0x1d5   :  { %v5584_v14 = vpop.f32.mrb[7].mxu1 }
 0x1d7   :  { %4551 = vmatpush1.bf16.msra.mxu0 %v4550_v22  ;;  %v1356_v22 = vld [vmem:[%s7591_s16 + $0x8] sm:$0xff] }
 0x1d8   :  { %4553 = vmatprep.subr.bf16.mxu0 %v4552_v23  ;;  %v1405_v23 = vld [vmem:[%s7591_s16 + $0x190] sm:$0xff] }
 0x1d9   :  { %v4600_v46 = vpack.c.bf16 %v1406_v25, %v1405_v23  ;;  %v1359_v23 = vld [vmem:[%s7591_s16 + $0x20] sm:$0xff]  ;;  %v1360_v25 = vld [vmem:[%s7591_s16 + $0x28] sm:$0xff] }
 0x1db   :  { %4555 = vmatpush1.bf16.msra.mxu0 %v4554_v34  ;;  %v4598_v34 = vpack.c.bf16 %v1388_v18, %v1387_v16  ;;  %v1392_v16 = vld [vmem:[%s7591_s16 + $0x128] sm:$0xff] }
 0x1dc   :  { %4557 = vmatprep.subr.bf16.mxu0 %v4556_v35  ;;  %v4566_v35 = vpack.c.bf16 %v1356_v22, %v1355_v20  ;;  %v4572_v22 = vpack.c.bf16 %v1376_v19, %v1375_v62  ;;  %v4606_v37 = vpack.c.bf16 %v1392_v16, %v1391_v5  ;;  %v1379_v62 = vld [vmem:[%s7591_s16 + $0xc0] sm:$0xff]  ;;  %v1380_v19 = vld [vmem:[%s7591_s16 + $0xc8] sm:$0xff] }
 0x1dd   :  { %v1395_v5 = vld [vmem:[%s7591_s16 + $0x140] sm:$0xff]  ;;  %v1396_v16 = vld [vmem:[%s7591_s16 + $0x148] sm:$0xff] }
 0x1df   :  { %4559 = vmatpush1.bf16.msra.mxu0 %v4558_v48  ;;  %v4568_v48 = vpack.c.bf16 %v1374_v29, %v1373_v26  ;;  %v1409_v26 = vld [vmem:[%s7591_s16 + $0x1b0] sm:$0xff]  ;;  %v1410_v29 = vld [vmem:[%s7591_s16 + $0x1b8] sm:$0xff] }
 0x1e0   :  { %4561 = vmatprep.subr.bf16.mxu0 %v4560_v50  ;;  %v1357_v50 = vld [vmem:[%s7591_s16 + $0x10] sm:$0xff] }
 0x1e1   :  { %v4570_v3 = vpack.c.bf16 %v1358_v53, %v1357_v50  ;;  %v1361_v50 = vld [vmem:[%s7591_s16 + $0x30] sm:$0xff]  ;;  %v1362_v53 = vld [vmem:[%s7591_s16 + $0x38] sm:$0xff] }
 0x1e3   :  { %4563 = vmatpush1.bf16.msra.mxu0 %v4562_v59  ;;  %v1408_v59 = vld [vmem:[%s7591_s16 + $0x1a8] sm:$0xff] }
 0x1e4   :  { %4597 = vmatprep.subr.bf16.mxu0 %v4596_v1  ;;  %v4604_v20 = vpack.c.bf16 %v1408_v59, %v1407_v57  ;;  %v1411_v57 = vld [vmem:[%s7591_s16 + $0x1c0] sm:$0xff]  ;;  %v1412_v59 = vld [vmem:[%s7591_s16 + $0x1c8] sm:$0xff] }
 0x299   :  { %v4215_v30 = vpop.f32.mrb[6].mxu0 }
 0x29a   :  { %v1074_v44 = vpop.f32.mrb[7].mxu0 }
 0x29b   :  { %1222 = vmatmul.mubr.f32.vlgmr.msra.gmra.mrb[8].mxu1 %v1074_v44  ;;  %1311 = vmatmul.mubr.f32.vlgmr.msra.gmra.mrb[10].mxu0 %v1074_v44  ;;  %v1394_v44 = vld [vmem:[%s7591_s16 + $0x138] sm:$0xff] }
 0x29c   :  { %1227 = vmatprep.mubr.f32.mxu1 %v7613_v15  ;;  %1316 = vmatprep.mubr.f32.mxu0 %v7613_v15 }
 0x29d   :  { %v4218_v1 = vpop.f32.mrb[8].mxu0  ;;  %4599 = vmatpush3.bf16.msra.mxu0 %v4598_v34  ;;  %4567 = vmatpush3.bf16.msra.mxu1 %v4566_v35  ;;  %v1377_v34 = vld [vmem:[%s7591_s16 + $0xb0] sm:$0xff]  ;;  %v1378_v35 = vld [vmem:[%s7591_s16 + $0xb8] sm:$0xff] }
 0x29e   :  { %v1084_v18 = vpop.f32.mrb[9].mxu0  ;;  %4601 = vmatprep.subr.bf16.mxu0 %v4600_v46  ;;  %4569 = vmatprep.subr.bf16.mxu1 %v4568_v48  ;;  %v4608_v46 = vpack.c.bf16 %v1410_v29, %v1409_v26  ;;  %v4576_v48 = vpack.c.bf16 %v1378_v35, %v1377_v34  ;;  %v1414_v26 = vld [vmem:[%s7591_s16 + $0x1d8] sm:$0xff]  ;;  %v1381_v29 = vld [vmem:[%s7591_s16 + $0xd0] sm:$0xff]  ;;  %v4614_v35 = vpack.c.bf16 %v1396_v16, %v1395_v5  ;;  %v1400_v16 = vld [vmem:[%s7591_s16 + $0x168] sm:$0xff] }
 0x29f   :  { %1228 = vmatmul.mubr.f32.gmra.mrb[10].mxu1 %v4215_v30  ;;  %1317 = vmatmul.mubr.f32.gmra.mrb[12].mxu0 %v4215_v30  ;;  %v4574_v30 = vpack.c.bf16 %v1360_v25, %v1359_v23  ;;  %v1364_v23 = vld [vmem:[%s7591_s16 + $0x48] sm:$0xff]  ;;  %v1413_v25 = vld [vmem:[%s7591_s16 + $0x1d0] sm:$0xff]  ;;  %v1382_v34 = vld [vmem:[%s7591_s16 + $0xd8] sm:$0xff] }
 0x2a0   :  { %1233 = vmatprep.mubr.f32.mxu1 %v7613_v15  ;;  %1322 = vmatprep.mubr.f32.mxu0 %v7613_v15 }
 0x2a1   :  { %4603 = vmatpush3.bf16.msra.mxu0 %v4602_v2  ;;  %4571 = vmatpush3.bf16.msra.mxu1 %v4570_v3  ;;  %v4610_v2 = vpack.c.bf16 %v1394_v44, %v1393_v43  ;;  %v4578_v3 = vpack.c.bf16 %v1362_v53, %v1361_v50  ;;  %v4616_v43 = vpack.c.bf16 %v1414_v26, %v1413_v25  ;;  %v1415_v50 = vld [vmem:[%s7591_s16 + $0x1e0] sm:$0xff]  ;;  %v1416_v53 = vld [vmem:[%s7591_s16 + $0x1e8] sm:$0xff]  ;;  %v1417_v25 = vld [vmem:[%s7591_s16 + $0x1f0] sm:$0xff] }
 0x2a2   :  { %4605 = vmatprep.subr.bf16.mxu0 %v4604_v20  ;;  %4573 = vmatprep.subr.bf16.mxu1 %v4572_v22  ;;  %v4580_v20 = vpack.c.bf16 %v1380_v19, %v1379_v62  ;;  %v1363_v22 = vld [vmem:[%s7591_s16 + $0x40] sm:$0xff]  ;;  %v4584_v44 = vpack.c.bf16 %v1382_v34, %v1381_v29  ;;  %v1418_v26 = vld [vmem:[%s7591_s16 + $0x1f8] sm:$0xff]  ;;  %v1385_v34 = vld [vmem:[%s7591_s16 + $0xf0] sm:$0xff] }
 0x2a3   :  { %1234 = vmatmul.mubr.f32.gmra.mrb[12].mxu1 %v1084_v18  ;;  %1323 = vmatmul.mubr.f32.gmra.mrb[14].mxu0 %v1084_v18  ;;  %v4612_v18 = vpack.c.bf16 %v1412_v59, %v1411_v57  ;;  %v1383_v57 = vld [vmem:[%s7591_s16 + $0xe0] sm:$0xff]  ;;  %v1384_v59 = vld [vmem:[%s7591_s16 + $0xe8] sm:$0xff]  ;;  %v4624_v29 = vpack.c.bf16 %v1418_v26, %v1417_v25  ;;  %v5804_v25 = vsel %vm5076_vm7, 1.0, %v7613_v15  ;;  %vm7832_vm7 = vnez %v7807_v38 }
 0x2a4   :  { %1239 = vmatprep.mubr.f32.mxu1 %v7613_v15  ;;  %1328 = vmatprep.mubr.f32.mxu0 %v7613_v15  ;;  %v4588_v5 = vpack.c.bf16 %v1384_v59, %v1383_v57  ;;  %v1335_v59 = vld [vmem:[%s7585_s10] sm:$0xff] }
 0x2a5   :  { %4607 = vmatpush3.bf16.msra.mxu0 %v4606_v37  ;;  %4575 = vmatpush3.bf16.msra.mxu1 %v4574_v30  ;;  %v4582_v37 = vpack.c.bf16 %v1364_v23, %v1363_v22  ;;  %v1398_v30 = vld [vmem:[%s7591_s16 + $0x158] sm:$0xff] }
 0x2a6   :  { %4609 = vmatprep.subr.bf16.mxu0 %v4608_v46  ;;  %4577 = vmatprep.subr.bf16.mxu1 %v4576_v48  ;;  %v1365_v46 = vld [vmem:[%s7591_s16 + $0x50] sm:$0xff]  ;;  %v1366_v48 = vld [vmem:[%s7591_s16 + $0x58] sm:$0xff] }
 0x2a7   :  { %1240 = vmatmul.mubr.f32.gmra.mrb[14].mxu1 %v4218_v1  ;;  %1329 = vmatmul.mubr.f32.gmra.mrb[16].mxu0 %v4218_v1  ;;  %v1397_v1 = vld [vmem:[%s7591_s16 + $0x150] sm:$0xff]  ;;  %v4586_v19 = vpack.c.bf16 %v1366_v48, %v1365_v46 }
 0x2a8   :  { %v4618_v62 = vpack.c.bf16 %v1398_v30, %v1397_v1  ;;  %v1402_v30 = vld [vmem:[%s7591_s16 + $0x178] sm:$0xff] }
 0x2a9   :  { %4611 = vmatpush3.bf16.msra.mxu0 %v4610_v2  ;;  %4579 = vmatpush3.bf16.msra.mxu1 %v4578_v3  ;;  %v1399_v2 = vld [vmem:[%s7591_s16 + $0x160] sm:$0xff]  ;;  %v4620_v3 = vpack.c.bf16 %v1416_v53, %v1415_v50  ;;  %v1687_v53 = vld [vmem:[%s7586_s11 + $0x8] sm:$0xff] }
 0x2aa   :  { %4613 = vmatprep.subr.bf16.mxu0 %v4612_v18  ;;  %4581 = vmatprep.subr.bf16.mxu1 %v4580_v20  ;;  %v1367_v18 = vld [vmem:[%s7591_s16 + $0x60] sm:$0xff]  ;;  %v1368_v20 = vld [vmem:[%s7591_s16 + $0x68] sm:$0xff]  ;;  %v4622_v22 = vpack.c.bf16 %v1400_v16, %v1399_v2  ;;  %v1688_v2 = vld [vmem:[%s7586_s11 + $0x10] sm:$0xff] }
 0x2ab   :  { %v4590_v23 = vpack.c.bf16 %v1368_v20, %v1367_v18  ;;  %v1686_v50 = vld [vmem:[%s7586_s11] sm:$0xff]  ;;  %v1689_v16 = vld [vmem:[%s7586_s11 + $0x18] sm:$0xff]  ;;  %v1337_v18 = vld [vmem:[%s7585_s10 + $0x10] sm:$0xff] }
 0x2ac   :  { %v4636_v57 = vpack.c.bf16 %v1687_v53, %v1686_v50  ;;  %v1338_v20 = vld [vmem:[%s7585_s10 + $0x18] sm:$0xff] }
 0x2ad   :  { %4615 = vmatpush3.bf16.msra.mxu0 %v4614_v35  ;;  %4583 = vmatpush3.bf16.msra.mxu1 %v4582_v37  ;;  %v1386_v35 = vld [vmem:[%s7591_s16 + $0xf8] sm:$0xff]  ;;  %v1401_v37 = vld [vmem:[%s7591_s16 + $0x170] sm:$0xff] }
 0x2ae   :  { %4617 = vmatprep.subr.bf16.mxu0 %v4616_v43  ;;  %4585 = vmatprep.subr.bf16.mxu1 %v4584_v44  ;;  %v4592_v1 = vpack.c.bf16 %v1386_v35, %v1385_v34  ;;  %v1369_v43 = vld [vmem:[%s7591_s16 + $0x70] sm:$0xff]  ;;  %v1370_v44 = vld [vmem:[%s7591_s16 + $0x78] sm:$0xff]  ;;  %v4626_v46 = vpack.c.bf16 %v1402_v30, %v1401_v37  ;;  %v5814_v34 = vsel %vm5088_vm14, 1.0, %v7613_v15  ;;  %v4632_v30 = vpack.c.bf16 %v1338_v20, %v1337_v18 }
 0x2af   :  { %v4594_v48 = vpack.c.bf16 %v1370_v44, %v1369_v43  ;;  %vm7834_vm14 = vnez %v7811_v40  ;;  %v5877_v40 = vsel %vm5199_vm0, 1.0, %v7613_v15  ;;  %vm7838_vm0 = vnez %v7823_v51 }
 0x2b0   :  { %v5862_v18 = vsel %vm7834_vm14, 1.0, %v7613_v15  ;;  %vm3378_vm14 = vcmask 1043459  }
 0x2b1   :  { %4619 = vmatpush3.bf16.msra.mxu0 %v4618_v62  ;;  %4587 = vmatpush3.bf16.msra.mxu1 %v4586_v19  ;;  %v1336_v62 = vld [vmem:[%s7585_s10 + $0x8] sm:$0xff] }
 0x2b2   :  { %4621 = vmatprep.subr.bf16.mxu0 %v4620_v3  ;;  %4589 = vmatprep.subr.bf16.mxu1 %v4588_v5  ;;  %v4628_v19 = vpack.c.bf16 %v1336_v62, %v1335_v59  ;;  %v5839_v59 = vsel %vm7832_vm7, 1.0, %v7613_v15  ;;  %vm3372_vm7 = vcmask 1041409  }
 0x2b5   :  { %4623 = vmatpush3.bf16.msra.mxu0 %v4622_v22  ;;  %4591 = vmatpush3.bf16.msra.mxu1 %v4590_v23  ;;  %v5799_v22 = vsel %vm5070_vm3, 1.0, %v7613_v15  ;;  %vm7831_vm3 = vnez %v7805_v36 }
 0x2b6   :  { %4625 = vmatprep.subr.bf16.mxu0 %v4624_v29  ;;  %4593 = vmatprep.subr.bf16.mxu1 %v4592_v1  ;;  %v5809_v29 = vsel %vm5083_vm9, 1.0, %v7613_v15  ;;  %v4640_v1 = vpack.c.bf16 %v1689_v16, %v1688_v2  ;;  %v5834_v50 = vsel %vm7831_vm3, 1.0, %v7613_v15  ;;  %vm7833_vm9 = vnez %v7809_v39  ;;  %v1692_v39 = vld [vmem:[%s7586_s11 + $0x30] sm:$0xff] }
 0x2b7   :  { %v5844_v33 = vsel %vm7833_vm9, 1.0, %v7613_v15  ;;  %vm760_vm3 = vcmp.gt.f32.partialorder %v5576_v6, 0.0  ;;  %vm3375_vm9 = vcmask 1042434  }
 0x2b9   :  { %4627 = vmatpush3.bf16.msra.mxu0 %v4626_v46  ;;  %4595 = vmatpush3.bf16.msra.mxu1 %v4594_v48  ;;  %v5829_v46 = vsel %vm5092_vm15, 1.0, %v7613_v15  ;;  %vm7835_vm15 = vnez %v7816_v45 }
 0x2ba   :  { %4637 = vmatprep.subr.bf16.mxu0 %v4636_v57  ;;  %4629 = vmatprep.subr.bf16.mxu1 %v4628_v19 }
 0x36e   :  { %v1223_v3 = vpop.f32.mrb[8].mxu1  ;;  %v1312_v5 = vpop.f32.mrb[10].mxu0 }
 0x36f   :  { %v1225_v23 = vpop.f32.mrb[9].mxu1  ;;  %v1314_v26 = vpop.f32.mrb[11].mxu0  ;;  %v1339_v37 = vmul.f32 %v5809_v29, %v1223_v3  ;;  %v1341_v28 = vmul.f32 %v5814_v34, %v1312_v5  ;;  %v4644_v5 = vpack.c.bf16 %v1691_v32, %v1690_v31 }
 0x370   :  { %v1340_v27 = vmul.f32 %v5799_v22, %v1225_v23  ;;  %v1342_v35 = vmul.f32 %v5804_v25, %v1314_v26  ;;  %v5867_v23 = vsel %vm7835_vm15, 1.0, %v7613_v15  ;;  %vm3381_vm15 = vcmask 1044484  }
 0x372   :  { %v1229_v43 = vpop.f32.mrb[10].mxu1  ;;  %v1318_v44 = vpop.f32.mrb[12].mxu0  ;;  %1483 = vmatprep.mubr.f32.mxu1 %v1340_v27  ;;  %1568 = vmatprep.mubr.f32.mxu0 %v1342_v35  ;;  %v5872_v27 = vsel %vm5173_vm8, 1.0, %v7613_v15  ;;  %vm7836_vm8 = vnez %v7813_v41  ;;  %v5908_v41 = vsel %vm5206_vm1, 1.0, %v7613_v15  ;;  %vm1980_vm1 = vcmask 523264  }
 0x373   :  { %v1231_v48 = vpop.f32.mrb[11].mxu1  ;;  %v1320_v53 = vpop.f32.mrb[13].mxu0  ;;  %1484 = vmatmul.mubr.f32.vlgmr.msra.gmra.mrb[16].mxu1 %v1339_v37  ;;  %1569 = vmatmul.mubr.f32.vlgmr.msra.gmra.mrb[18].mxu0 %v1341_v28  ;;  %v1343_v36 = vmul.f32 %v5839_v59, %v1229_v43  ;;  %v1345_v3 = vmul.f32 %v5844_v33, %v1318_v44 }
 0x374   :  { %v1344_v62 = vmul.f32 %v5829_v46, %v1231_v48  ;;  %v1346_v2 = vmul.f32 %v5834_v50, %v1320_v53  ;;  %4639 = vmatpush3.bf16.msra.mxu0 %v4636_v57  ;;  %4631 = vmatpush3.bf16.msra.mxu1 %v4628_v19  ;;  %v1693_v57 = vld [vmem:[%s7586_s11 + $0x38] sm:$0xff]  ;;  %v3867_v19 = vld [vmem:[%s7583_s8] ss:$0 sm:$0xff]  ;;  %v5903_v53 = vsel %vm7838_vm0, 1.0, %v7613_v15  ;;  %vm3390_vm0 = vcmask 1047559  }
 0x375   :  { %4641 = vmatprep.subr.bf16.mxu0 %v4640_v1  ;;  %4633 = vmatprep.subr.bf16.mxu1 %v4632_v30  ;;  %v4648_v43 = vpack.c.bf16 %v1693_v57, %v1692_v39  ;;  %v973_v49 = vadd.f32 %v3867_v19, %v5580_v12  ;;  %v5898_v12 = vsel %vm7837_vm4, 1.0, %v7613_v15  ;;  %v978_v47 = vadd.f32 %v5578_v7, %v3867_v19 }
 0x376   :  { %v1235_v38 = vpop.f32.mrb[12].mxu1  ;;  %v1324_v16 = vpop.f32.mrb[14].mxu0  ;;  %1488 = vmatprep.mubr.f32.mxu1 %v1344_v62  ;;  %1573 = vmatprep.mubr.f32.mxu0 %v1346_v2  ;;  %v988_v39 = vadd.f32 %v5582_v13, %v3867_v19  ;;  %vm3387_vm4 = vcmask 1046534  }
 0x377   :  { %v1237_v20 = vpop.f32.mrb[13].mxu1  ;;  %v1326_v26 = vpop.f32.mrb[15].mxu0  ;;  %1489 = vmatmul.mubr.f32.gmra.mrb[18].mxu1 %v1343_v36  ;;  %1574 = vmatmul.mubr.f32.gmra.mrb[20].mxu0 %v1345_v3  ;;  %v1347_v45 = vmul.f32 %v5872_v27, %v1235_v38  ;;  %v1349_v28 = vmul.f32 %v5877_v40, %v1324_v16  ;;  %v991_v38 = vmax.f32 %v973_v49, 0.0  ;;  %v983_v16 = vadd.f32 %v3867_v19, %v5584_v14  ;;  %v1700_v19 = vld [vmem:[%s7586_s11 + $0x70] sm:$0xff] }
 0x378   :  { %v1348_v35 = vmul.f32 %v5862_v18, %v1237_v20  ;;  %v1350_v37 = vmul.f32 %v5867_v23, %v1326_v26  ;;  %4643 = vmatpush3.bf16.msra.mxu0 %v4640_v1  ;;  %4635 = vmatpush3.bf16.msra.mxu1 %v4632_v30  ;;  %v1695_v1 = vld [vmem:[%s7586_s11 + $0x48] sm:$0xff]  ;;  %v5893_v30 = vsel %vm7836_vm8, 1.0, %v7613_v15  ;;  %v992_v7 = vmax.f32 %v978_v47, 0.0  ;;  %v1698_v20 = vld [vmem:[%s7586_s11 + $0x60] sm:$0xff] }
 0x379   :  { %4645 = vmatprep.subr.bf16.mxu0 %v4644_v5  ;;  %v4652_v51 = vpack.c.bf16 %v1695_v1, %v1694_v54  ;;  %v993_v57 = vmax.f32 %v983_v16, 0.0  ;;  %v1699_v26 = vld [vmem:[%s7586_s11 + $0x68] sm:$0xff]  ;;  %vm3384_vm8 = vcmask 1045509  }
 0x37a   :  { %v1241_v44 = vpop.f32.mrb[14].mxu1  ;;  %v1330_v31 = vpop.f32.mrb[16].mxu0  ;;  %1493 = vmatprep.mubr.f32.mxu1 %v1348_v35  ;;  %1578 = vmatprep.mubr.f32.mxu0 %v1350_v37  ;;  %v994_v35 = vmax.f32 %v988_v39, 0.0  ;;  %v4660_v13 = vpack.c.bf16 %v1699_v26, %v1698_v20  ;;  %v1701_v37 = vld [vmem:[%s7586_s11 + $0x78] sm:$0xff] }
 0x37b   :  { %v1243_v32 = vpop.f32.mrb[15].mxu1  ;;  %v1332_v48 = vpop.f32.mrb[17].mxu0  ;;  %1494 = vmatmul.mubr.f32.gmra.mrb[20].mxu1 %v1347_v45  ;;  %1579 = vmatmul.mubr.f32.gmra.mrb[22].mxu0 %v1349_v28  ;;  %v1351_v36 = vmul.f32 %v5903_v53, %v1241_v44  ;;  %v1353_v3 = vmul.f32 %v5908_v41, %v1330_v31  ;;  %v4664_v45 = vpack.c.bf16 %v1701_v37, %v1700_v19 }
 0x37c   :  { %v1352_v62 = vmul.f32 %v5893_v30, %v1243_v32  ;;  %v1354_v2 = vmul.f32 %v5898_v12, %v1332_v48  ;;  %4647 = vmatpush3.bf16.msra.mxu0 %v4644_v5  ;;  %v1697_v5 = vld [vmem:[%s7586_s11 + $0x58] sm:$0xff] }
 0x37d   :  { %4649 = vmatprep.subr.bf16.mxu0 %v4648_v43  ;;  %v4656_v14 = vpack.c.bf16 %v1697_v5, %v1696_v56 }
 0x37e   :  { %1498 = vmatprep.mubr.f32.mxu1 %v1352_v62  ;;  %1583 = vmatprep.mubr.f32.mxu0 %v1354_v2 }
 0x37f   :  { %1499 = vmatmul.mubr.f32.gmra.mrb[22].mxu1 %v1351_v36  ;;  %1584 = vmatmul.mubr.f32.gmra.mrb[24].mxu0 %v1353_v3 }
 0x380   :  { %4651 = vmatpush3.bf16.msra.mxu0 %v4648_v43  ;;  %4227 = vmatprep.mubr.msk.f32.mxu1 %vm592_vm11, %v991_v38 }
 0x381   :  { %4265 = vmatprep.mubr.f32.mxu0 %v5445_v24  ;;  %4653 = vmatprep.subr.bf16.mxu0 %v4652_v51 }
 0x383   :  { %4228 = vmatmul.mubr.msk.f32.vlgmr.msra.gmra.mrb[24].mxu1 %vm592_vm11, %v992_v7 }
 0x384   :  { %4655 = vmatpush3.bf16.msra.mxu0 %v4652_v51  ;;  %4230 = vmatprep.mubr.msk.f32.mxu1 %vm592_vm11, %v993_v57 }
 0x385   :  { %4657 = vmatprep.subr.bf16.mxu0 %v4656_v14 }
 0x387   :  { %4231 = vmatmul.mubr.msk.f32.gmra.mrb[26].mxu1 %vm592_vm11, %v994_v35 }
 0x388   :  { %4659 = vmatpush3.bf16.msra.mxu0 %v4656_v14  ;;  %4283 = vmatprep.mubr.msk.f32.mxu1 %vm995_vm5, %v5265_v17 }
 0x389   :  { %4661 = vmatprep.subr.bf16.mxu0 %v4660_v13 }
 0x38c   :  { %4663 = vmatpush3.bf16.msra.mxu0 %v4660_v13 }
 0x38d   :  { %4665 = vmatprep.subr.bf16.mxu0 %v4664_v45 }
 0x390   :  { %4667 = vmatpush3.bf16.msra.mxu0 %v4664_v45 }
 0x393   :  { %4266 = vmatmul.mubr.f32.vlgmr.msra.gmra.mrb[26].mxu0 %v5437_v21 }
 0x394   :  { %4276 = vmatprep.mubr.msk.f32.mxu0 %vm592_vm11, %v5204_v55 }
 0x446   :  { %v3976_v28 = vpop.f32.mrb[16].mxu1  ;;  %v4020_v43 = vpop.f32.mrb[18].mxu0 }
 0x447   :  { %v3977_v49 = vpop.f32.mrb[17].mxu1  ;;  %v4021_v44 = vpop.f32.mrb[19].mxu0 }
 0x448   :  { %v3978_v31 = vadd.f32 %v3977_v49, %v3976_v28  ;;  %v4022_v54 = vadd.f32 %v4021_v44, %v4020_v43 }
 0x44a   :  { %v3979_v1 = vpop.f32.mrb[18].mxu1  ;;  %v4023_v32 = vpop.f32.mrb[20].mxu0  ;;  %v1571_v48 = vadd.f32 %v4022_v54, %v3978_v31  ;;  %v3243_v54 = vld [vmem:[%s7589_s14] sm:$0xff] }
 0x44b   :  { %v3980_v17 = vpop.f32.mrb[19].mxu1  ;;  %v4024_v62 = vpop.f32.mrb[21].mxu0 }
 0x44c   :  { %v3981_v2 = vadd.f32 %v3980_v17, %v3979_v1  ;;  %v4025_v47 = vadd.f32 %v4024_v62, %v4023_v32  ;;  %v3244_v1 = vld [vmem:[%s7589_s14 + $0x8] sm:$0xff] }
 0x44d   :  { %v4712_v62 = vpack.c.bf16 %v3244_v1, %v3243_v54  ;;  %v1948_v1 = vld [vmem:[%s7588_s13] sm:$0xff] }
 0x44e   :  { %v3982_v36 = vpop.f32.mrb[20].mxu1  ;;  %v4026_v3 = vpop.f32.mrb[22].mxu0  ;;  %v1576_v51 = vadd.f32 %v4025_v47, %v3981_v2  ;;  %v3246_v2 = vld [vmem:[%s7589_s14 + $0x18] sm:$0xff] }
 0x44f   :  { %v3983_v38 = vpop.f32.mrb[21].mxu1  ;;  %v4027_v16 = vpop.f32.mrb[23].mxu0 }
 0x450   :  { %v3984_v56 = vadd.f32 %v3983_v38, %v3982_v36  ;;  %v4028_v5 = vadd.f32 %v4027_v16, %v4026_v3  ;;  %v3247_v36 = vld [vmem:[%s7589_s14 + $0x20] sm:$0xff]  ;;  %v3248_v3 = vld [vmem:[%s7589_s14 + $0x28] sm:$0xff]  ;;  %v3249_v38 = vld [vmem:[%s7589_s14 + $0x30] sm:$0xff] }
 0x451   :  { %v3250_v16 = vld [vmem:[%s7589_s14 + $0x38] sm:$0xff] }
 0x452   :  { %v3985_v7 = vpop.f32.mrb[22].mxu1  ;;  %v4029_v39 = vpop.f32.mrb[24].mxu0  ;;  %v1581_v14 = vadd.f32 %v4028_v5, %v3984_v56  ;;  %v4724_v56 = vpack.c.bf16 %v3250_v16, %v3249_v38  ;;  %v3820_v5 = vadd.f32 -1.0, %v5204_v55 }
 0x453   :  { %v3986_v57 = vpop.f32.mrb[23].mxu1  ;;  %v4030_v20 = vpop.f32.mrb[25].mxu0 }
 0x454   :  { %v3987_v26 = vadd.f32 %v3986_v57, %v3985_v7  ;;  %v4031_v35 = vadd.f32 %v4030_v20, %v4029_v39  ;;  %v5972_v7 = vmul.f32 1e+30, %v3820_v5  ;;  %v3821_v39 = vadd.f32 -1.0, %v5224_v60  ;;  %v1968_v5 = vld [vmem:[%s7588_s13 + $0xa0] sm:$0xff] }
 0x455   :  { %v296_v57 = vsub.s32 2, %v5143_v42 }
 0x456   :  { %v4229_v13 = vpop.f32.mrb[24].mxu1  ;;  %v1586_v19 = vadd.f32 %v4031_v35, %v3987_v26  ;;  %v5980_v26 = vmul.f32 1e+30, %v3821_v39  ;;  %v3878_v35 = vld [vmem:[%s7587_s12] ss:$0 sm:$0xff]  ;;  %v1973_v39 = vld [vmem:[%s7588_s13 + $0xc8] sm:$0xff] }
 0x457   :  { %v1673_v37 = vadd.f32 %v4229_v13, %v1576_v51  ;;  %v1667_v45 = vpop.f32.mrb[25].mxu1  ;;  %v4720_v51 = vpack.c.bf16 %v3248_v3, %v3247_v36  ;;  %v5987_v55 = vrot.slane %v5972_v7, %v296_v57  ;;  %v1960_v36 = vld [vmem:[%s7588_s13 + $0x60] sm:$0xff]  ;;  %v1965_v3 = vld [vmem:[%s7588_s13 + $0x88] sm:$0xff] }
 0x458   :  { %v1668_v28 = vadd.f32 %v1667_v45, %v1571_v48  ;;  %v3245_v48 = vld [vmem:[%s7589_s14 + $0x10] sm:$0xff] }
 0x459   :  { %v4716_v47 = vpack.c.bf16 %v3246_v2, %v3245_v48 }
 0x45a   :  { %v4668_v43 = vpack.c.bf16 %v1673_v37, %v1668_v28  ;;  %v4232_v49 = vpop.f32.mrb[26].mxu1 }
 0x45b   :  { %v1683_v44 = vadd.f32 %v4232_v49, %v1586_v19  ;;  %v1677_v31 = vpop.f32.mrb[27].mxu1  ;;  %v1953_v49 = vld [vmem:[%s7588_s13 + $0x28] sm:$0xff] }
 0x45c   :  { %v1678_v32 = vadd.f32 %v1677_v31, %v1581_v14  ;;  %4669 = vmatprep.subr.bf16.mxu0 %v4668_v43  ;;  %v277_v14 = vsub.s32 1, %v5143_v42 }
 0x45d   :  { %4671 = vmatpush3.bf16.msra.mxu0 %v4668_v43  ;;  %v1949_v43 = vld [vmem:[%s7588_s13 + $0x8] sm:$0xff] }
 0x45e   :  { %v4672_v17 = vpack.c.bf16 %v1683_v44, %v1678_v32  ;;  %v5978_v20 = vrot.slane %v5972_v7, %v277_v14  ;;  %v4680_v54 = vpack.c.bf16 %v1953_v49, %v1949_v43  ;;  %v1952_v32 = vld [vmem:[%s7588_s13 + $0x20] sm:$0xff]  ;;  %v315_v49 = vsub.s32 3, %v5143_v42 }
 0x45f   :  { %v4682_v48 = vpack.c.bf16 %v1952_v32, %v1948_v1 }
 0x460   :  { %4673 = vmatprep.subr.bf16.mxu0 %v4672_v17  ;;  %284 = vbcast.lane.b32.xlu1 %v5978_v20, 264 }
 0x461   :  { %4675 = vmatpush3.bf16.msra.mxu0 %v4672_v17  ;;  %280 = vbcast.lane.b32.xlu0 %v5978_v20, 256  ;;  %v1957_v17 = vld [vmem:[%s7588_s13 + $0x48] sm:$0xff] }
 0x462   :  { %4713 = vmatprep.subr.bf16.mxu0 %v4712_v62 }
 0x464   :  { %4277 = vmatmul.mubr.msk.f32.vlgmr.msra.gmra.mrb[26].mxu0 %vm592_vm11, %v5224_v60  ;;  %303 = vbcast.lane.b32.xlu1 %v5987_v55, 264  ;;  %v5992_v60 = vrot.slane %v5980_v26, %v277_v14  ;;  %vm753_vm11 = vcmp.gt.f32.partialorder %v5426_v8, 0.0 }
 0x465   :  { %4715 = vmatpush3.bf16.msra.mxu0 %v4712_v62  ;;  %299 = vbcast.lane.b32.xlu0 %v5987_v55, 256  ;;  %v1961_v62 = vld [vmem:[%s7588_s13 + $0x68] sm:$0xff] }
 0x466   :  { %4717 = vmatprep.subr.bf16.mxu0 %v4716_v47  ;;  %v4684_v2 = vpack.c.bf16 %v1961_v62, %v1957_v17  ;;  %v468_v17 = vrot.slane %v5980_v26, %v315_v49 }
 0x468   :  { %436 = vbcast.lane.b32.xlu1 %v5992_v60, 264 }
 0x469   :  { %4719 = vmatpush3.bf16.msra.mxu0 %v4716_v47  ;;  %432 = vbcast.lane.b32.xlu0 %v5992_v60, 256  ;;  %v1956_v47 = vld [vmem:[%s7588_s13 + $0x40] sm:$0xff] }
 0x46a   :  { %4721 = vmatprep.subr.bf16.mxu0 %v4720_v51  ;;  %v4686_v38 = vpack.c.bf16 %v1960_v36, %v1956_v47  ;;  %v391_v36 = vsub.s32 7, %v5143_v42 }
 0x46d   :  { %4723 = vmatpush3.bf16.msra.mxu0 %v4720_v51  ;;  %v1969_v51 = vld [vmem:[%s7588_s13 + $0xa8] sm:$0xff] }
 0x46e   :  { %4725 = vmatprep.subr.bf16.mxu0 %v4724_v56  ;;  %v4688_v16 = vpack.c.bf16 %v1969_v51, %v1965_v3  ;;  %v1963_v51 = vld [vmem:[%s7588_s13 + $0x78] sm:$0xff] }
 0x471   :  { %4727 = vmatpush3.bf16.msra.mxu0 %v4724_v56  ;;  %v1964_v56 = vld [vmem:[%s7588_s13 + $0x80] sm:$0xff] }
 0x537   :  { %v4278_v13 = vpop.f32.mrb[26].mxu0 }
 0x538   :  { %v1860_v19 = vadd.f32 %v4278_v13, %v3878_v35  ;;  %v1843_v37 = vpop.f32.mrb[27].mxu0  ;;  %v1976_v13 = vld [vmem:[%s7588_s13 + $0xe0] sm:$0xff] }
 0x539   :  { %v1859_v45 = vadd.f32 %v3878_v35, %v1843_v37  ;;  %v1972_v35 = vld [vmem:[%s7588_s13 + $0xc0] sm:$0xff]  ;;  %v1951_v37 = vld [vmem:[%s7588_s13 + $0x18] sm:$0xff] }
 0x53a   :  { %v1862_v28 = vmax.f32 %v1860_v19, 0.0  ;;  %v4694_v19 = vpack.c.bf16 %v1976_v13, %v1972_v35 }
 0x53b   :  { %v1861_v44 = vmax.f32 %v1859_v45, 0.0  ;;  %v1955_v45 = vld [vmem:[%s7588_s13 + $0x38] sm:$0xff] }
 0x53c   :  { %v4696_v43 = vpack.c.bf16 %v1955_v45, %v1951_v37  ;;  %v1970_v37 = vld [vmem:[%s7588_s13 + $0xb0] sm:$0xff] }
 0x53d   :  { %v4676_v31 = vpack.c.bf16 %v1862_v28, %v1861_v44  ;;  %4305 = vmatprep.mubr.msk.f32.mxu0 %vm1980_vm1, %v1861_v44  ;;  %v316_v44 = vrot.slane %v5972_v7, %v315_v49 }
 0x53e   :  { %4306 = vmatmul.mubr.msk.f32.vlgmr.msra.gmra.mrb[28].mxu0 %vm1980_vm1, %v1862_v28 }
 0x53f   :  { %4677 = vmatprep.subr.bf16.mxu1 %v4676_v31 }
 0x540   :  { %4679 = vmatpush3.bf16.msra.mxu1 %v4676_v31  ;;  %v449_v31 = vrot.slane %v5980_v26, %v296_v57  ;;  %v353_v57 = vsub.s32 5, %v5143_v42 }
 0x541   :  { %4681 = vmatprep.subr.bf16.mxu1 %v4680_v54  ;;  %v334_v54 = vsub.s32 4, %v5143_v42 }
 0x542   :  { %v354_v62 = vrot.slane %v5972_v7, %v353_v57 }
 0x543   :  { %4284 = vmatmul.mubr.msk.f32.vlgmr.msra.gmra.mrb[28].mxu1 %vm995_vm5, %v5470_v52  ;;  %v1977_v52 = vld [vmem:[%s7588_s13 + $0xe8] sm:$0xff]  ;;  %v335_v1 = vrot.slane %v5972_v7, %v334_v54 }
 0x544   :  { %4286 = vmatprep.mubr.msk.f32.mxu1 %vm995_vm5, %v5480_v58  ;;  %4683 = vmatpush1.bf16.msra.mxu1 %v4682_v48  ;;  %v4690_v58 = vpack.c.bf16 %v1968_v5, %v1964_v56  ;;  %v4692_v14 = vpack.c.bf16 %v1977_v52, %v1973_v39  ;;  %v487_v48 = vrot.slane %v5980_v26, %v334_v54  ;;  %v1958_v5 = vld [vmem:[%s7588_s13 + $0x50] sm:$0xff] }
 0x545   :  { %4685 = vmatprep.subr.bf16.mxu1 %v4684_v2  ;;  %v372_v2 = vsub.s32 6, %v5143_v42  ;;  %v1962_v39 = vld [vmem:[%s7588_s13 + $0x70] sm:$0xff] }
 0x546   :  { %v4702_v35 = vpack.c.bf16 %v1962_v39, %v1958_v5  ;;  %v1978_v54 = vld [vmem:[%s7588_s13 + $0xf0] sm:$0xff]  ;;  %v3508_v5 = vld [vmem:[%s7594_s19 + $0x68] sm:$0xff] }
 0x547   :  { %4287 = vmatmul.mubr.msk.f32.gmra.mrb[30].mxu1 %vm995_vm5, %v5493_v63  ;;  %v258_v63 = vsub.s32 0, %v5143_v42  ;;  %v373_v47 = vrot.slane %v5972_v7, %v372_v2  ;;  %v525_v3 = vrot.slane %v5980_v26, %v372_v2  ;;  %v544_v42 = vrot.slane %v5980_v26, %v391_v36 }
 0x548   :  { %4687 = vmatpush1.bf16.msra.mxu1 %v4686_v38  ;;  %2057 = vmatprep.mubr.f32.mxu1 %v7613_v15  ;;  %vm758_vm5 = vcmp.gt.f32.partialorder %v5432_v11, 0.0 }
 0x549   :  { %4689 = vmatprep.subr.bf16.mxu1 %v4688_v16  ;;  %v259_v28 = vrot.slane %v5972_v7, %v258_v63  ;;  %v411_v32 = vrot.slane %v5980_v26, %v258_v63  ;;  %v1966_v63 = vld [vmem:[%s7588_s13 + $0x90] sm:$0xff] }
 0x54a   :  { %v4706_v49 = vpack.c.bf16 %v1970_v37, %v1966_v63 }
 0x54b   :  { %265 = vbcast.lane.b32.xlu1 %v259_v28, 264  ;;  %261 = vbcast.lane.b32.xlu0 %v259_v28, 256 }
 0x54c   :  { %4691 = vmatpush1.bf16.msra.mxu1 %v4690_v58  ;;  %v1967_v58 = vld [vmem:[%s7588_s13 + $0x98] sm:$0xff] }
 0x54d   :  { %4693 = vmatprep.subr.bf16.mxu1 %v4692_v14  ;;  %v1971_v14 = vld [vmem:[%s7588_s13 + $0xb8] sm:$0xff] }
 0x54f   :  { %318 = vbcast.lane.b32.xlu1 %v316_v44, 256  ;;  %288 = vbcast.lane.b32.xlu0 %v5978_v20, 272 }
 0x550   :  { %4695 = vmatpush1.bf16.msra.mxu1 %v4694_v19  ;;  %v4704_v19 = vpack.c.bf16 %v1971_v14, %v1967_v58  ;;  %v6195_v58 = vpop.permute.xlu1 %284  ;;  %v6197_v14 = vpop.permute.xlu0 %280 }
 0x551   :  { %4697 = vmatprep.subr.bf16.mxu1 %v4696_v43  ;;  %v1979_v43 = vld [vmem:[%s7588_s13 + $0xf8] sm:$0xff]  ;;  %7839 = vst [vmem:[#allocation8_spill] sm:$0xff] %v6195_v58  ;;  %7840 = vst [vmem:[#allocation9_spill] sm:$0xff] %v6197_v14 }
 0x553   :  { %451 = vbcast.lane.b32.xlu1 %v449_v31, 256  ;;  %322 = vbcast.lane.b32.xlu0 %v316_v44, 264 }
 0x557   :  { %307 = vbcast.lane.b32.xlu1 %v5987_v55, 272  ;;  %455 = vbcast.lane.b32.xlu0 %v449_v31, 264 }
 0x55b   :  { %341 = vbcast.lane.b32.xlu1 %v335_v1, 264  ;;  %337 = vbcast.lane.b32.xlu0 %v335_v1, 256 }
 0x55f   :  { %417 = vbcast.lane.b32.xlu1 %v411_v32, 264  ;;  %413 = vbcast.lane.b32.xlu0 %v411_v32, 256 }
 0x563   :  { %470 = vbcast.lane.b32.xlu1 %v468_v17, 256  ;;  %440 = vbcast.lane.b32.xlu0 %v5992_v60, 272 }
 0x567   :  { %269 = vbcast.lane.b32.xlu1 %v259_v28, 272  ;;  %474 = vbcast.lane.b32.xlu0 %v468_v17, 264 }
 0x56b   :  { %326 = vbcast.lane.b32.xlu1 %v316_v44, 272  ;;  %292 = vbcast.lane.b32.xlu0 %v5978_v20, 280  ;;  %v506_v20 = vrot.slane %v5980_v26, %v353_v57  ;;  %v1954_v26 = vld [vmem:[%s7588_s13 + $0x30] sm:$0xff] }
 0x56f   :  { %360 = vbcast.lane.b32.xlu1 %v354_v62, 264  ;;  %356 = vbcast.lane.b32.xlu0 %v354_v62, 256 }
 0x573   :  { %489 = vbcast.lane.b32.xlu1 %v487_v48, 256  ;;  %459 = vbcast.lane.b32.xlu0 %v449_v31, 272 }
 0x577   :  { %311 = vbcast.lane.b32.xlu1 %v5987_v55, 280  ;;  %493 = vbcast.lane.b32.xlu0 %v487_v48, 264  ;;  %v392_v55 = vrot.slane %v5972_v7, %v391_v36  ;;  %v1950_v7 = vld [vmem:[%s7588_s13 + $0x10] sm:$0xff] }
 0x578   :  { %v4698_v38 = vpack.c.bf16 %v1954_v26, %v1950_v7  ;;  %v3503_v7 = vld [vmem:[%s7594_s19 + $0x40] sm:$0xff]  ;;  %v3504_v26 = vld [vmem:[%s7594_s19 + $0x48] sm:$0xff] }
 0x57b   :  { %375 = vbcast.lane.b32.xlu1 %v373_v47, 256  ;;  %345 = vbcast.lane.b32.xlu0 %v335_v1, 272 }
 0x57f   :  { %421 = vbcast.lane.b32.xlu1 %v411_v32, 272  ;;  %379 = vbcast.lane.b32.xlu0 %v373_v47, 264 }
 0x583   :  { %478 = vbcast.lane.b32.xlu1 %v468_v17, 272  ;;  %444 = vbcast.lane.b32.xlu0 %v5992_v60, 280  ;;  %v1959_v60 = vld [vmem:[%s7588_s13 + $0x58] sm:$0xff] }
 0x584   :  { %v4700_v56 = vpack.c.bf16 %v1963_v51, %v1959_v60  ;;  %v4776_v60 = vpack.c.bf16 %v3504_v26, %v3503_v7  ;;  %v3505_v51 = vld [vmem:[%s7594_s19 + $0x50] sm:$0xff]  ;;  %v3339_v26 = vld [vmem:[%s7592_s17] sm:$0xff] }
 0x587   :  { %512 = vbcast.lane.b32.xlu1 %v506_v20, 264  ;;  %508 = vbcast.lane.b32.xlu0 %v506_v20, 256 }
 0x58b   :  { %330 = vbcast.lane.b32.xlu1 %v316_v44, 280  ;;  %273 = vbcast.lane.b32.xlu0 %v259_v28, 280  ;;  %v1975_v28 = vld [vmem:[%s7588_s13 + $0xd8] sm:$0xff] }
 0x58c   :  { %v4708_v44 = vpack.c.bf16 %v1979_v43, %v1975_v28 }
 0x58f   :  { %394 = vbcast.lane.b32.xlu1 %v392_v55, 256  ;;  %364 = vbcast.lane.b32.xlu0 %v354_v62, 272 }
 0x593   :  { %463 = vbcast.lane.b32.xlu1 %v449_v31, 280  ;;  %398 = vbcast.lane.b32.xlu0 %v392_v55, 264  ;;  %v1974_v31 = vld [vmem:[%s7588_s13 + $0xd0] sm:$0xff] }
 0x597   :  { %527 = vbcast.lane.b32.xlu1 %v525_v3, 256  ;;  %497 = vbcast.lane.b32.xlu0 %v487_v48, 272 }
 0x59b   :  { %349 = vbcast.lane.b32.xlu1 %v335_v1, 280  ;;  %531 = vbcast.lane.b32.xlu0 %v525_v3, 264  ;;  %v3495_v1 = vld [vmem:[%s7594_s19] sm:$0xff] }
 0x59f   :  { %425 = vbcast.lane.b32.xlu1 %v411_v32, 280  ;;  %383 = vbcast.lane.b32.xlu0 %v373_v47, 272  ;;  %v3496_v32 = vld [vmem:[%s7594_s19 + $0x8] sm:$0xff] }
 0x5a0   :  { %v4760_v57 = vpack.c.bf16 %v3496_v32, %v3495_v1 }
 0x5a3   :  { %516 = vbcast.lane.b32.xlu1 %v506_v20, 272  ;;  %482 = vbcast.lane.b32.xlu0 %v468_v17, 280  ;;  %v4710_v17 = vpack.c.bf16 %v1978_v54, %v1974_v31 }
 0x5a7   :  { %550 = vbcast.lane.b32.xlu1 %v544_v42, 264  ;;  %546 = vbcast.lane.b32.xlu0 %v544_v42, 256 }
 0x5ab   :  { %402 = vbcast.lane.b32.xlu1 %v392_v55, 272  ;;  %368 = vbcast.lane.b32.xlu0 %v354_v62, 280  ;;  %v3497_v62 = vld [vmem:[%s7594_s19 + $0x10] sm:$0xff] }
 0x5af   :  { %535 = vbcast.lane.b32.xlu1 %v525_v3, 272  ;;  %501 = vbcast.lane.b32.xlu0 %v487_v48, 280  ;;  %v3498_v48 = vld [vmem:[%s7594_s19 + $0x18] sm:$0xff] }
 0x5b0   :  { %v4764_v2 = vpack.c.bf16 %v3498_v48, %v3497_v62 }
 0x5b3   :  { %520 = vbcast.lane.b32.xlu1 %v506_v20, 280  ;;  %387 = vbcast.lane.b32.xlu0 %v373_v47, 280  ;;  %v3499_v47 = vld [vmem:[%s7594_s19 + $0x20] sm:$0xff]  ;;  %v3500_v20 = vld [vmem:[%s7594_s19 + $0x28] sm:$0xff] }
 0x5b4   :  { %v4768_v36 = vpack.c.bf16 %v3500_v20, %v3499_v47 }
 0x5b7   :  { %406 = vbcast.lane.b32.xlu1 %v392_v55, 280  ;;  %554 = vbcast.lane.b32.xlu0 %v544_v42, 272  ;;  %v3501_v55 = vld [vmem:[%s7594_s19 + $0x30] sm:$0xff] }
 0x5bb   :  { %558 = vbcast.lane.b32.xlu1 %v544_v42, 280  ;;  %539 = vbcast.lane.b32.xlu0 %v525_v3, 280  ;;  %v3502_v3 = vld [vmem:[%s7594_s19 + $0x38] sm:$0xff] }
 0x5bc   :  { %v4772_v42 = vpack.c.bf16 %v3502_v3, %v3501_v55 }
 0x616   :  { %v4285_v16 = vpop.f32.mrb[28].mxu1 }
 0x617   :  { %v1929_v52 = vpop.f32.mrb[29].mxu1 }
 0x618   :  { %3883 = vmatmul.mubr.msk.f32.vlgmr.msra.gmra.mrb[32].mxu1 %vm1980_vm1, %v1929_v52 }
 0x619   :  { %4699 = vmatpush1.bf16.msra.mxu1 %v4698_v38  ;;  %2063 = vmatprep.mubr.f32.mxu1 %v7613_v15  ;;  %v3506_v38 = vld [vmem:[%s7594_s19 + $0x58] sm:$0xff] }
 0x61a   :  { %v4288_v13 = vpop.f32.mrb[30].mxu1  ;;  %4701 = vmatprep.subr.bf16.mxu1 %v4700_v56  ;;  %v3507_v56 = vld [vmem:[%s7594_s19 + $0x60] sm:$0xff] }
 0x61b   :  { %v1939_v45 = vpop.f32.mrb[31].mxu1  ;;  %v4784_v39 = vpack.c.bf16 %v3508_v5, %v3507_v56  ;;  %v3343_v5 = vld [vmem:[%s7592_s17 + $0x20] sm:$0xff] }
 0x61c   :  { %3884 = vmatmul.mubr.msk.f32.gmra.mrb[34].mxu1 %vm1980_vm1, %v4285_v16 }
 0x61d   :  { %4703 = vmatpush1.bf16.msra.mxu1 %v4702_v35  ;;  %2069 = vmatprep.mubr.f32.mxu1 %v7613_v15 }
 0x61e   :  { %4705 = vmatprep.subr.bf16.mxu1 %v4704_v19  ;;  %v6201_v19 = vpop.permute.xlu0 %299 }
 0x61f   :  { %7842 = vst [vmem:[#allocation11_spill] sm:$0xff] %v6201_v19 }
 0x620   :  { %3885 = vmatmul.mubr.msk.f32.gmra.mrb[36].mxu1 %vm1980_vm1, %v1939_v45 }
 0x621   :  { %4707 = vmatpush1.bf16.msra.mxu1 %v4706_v49  ;;  %2075 = vmatprep.mubr.f32.mxu1 %v7613_v15 }
 0x622   :  { %4709 = vmatprep.subr.bf16.mxu1 %v4708_v44  ;;  %v6206_v37 = vpop.permute.xlu0 %432 }
 0x623   :  { %7844 = vst [vmem:[#allocation13_spill] sm:$0xff] %v6206_v37  ;;  %v3824_v37 = vadd.f32 -1.0, %v5814_v34  ;;  %v3835_v34 = vadd.f32 -1.0, %v5893_v30  ;;  %v7890_v30 = vmov 0.0  }
 0x624   :  { %3886 = vmatmul.mubr.msk.f32.gmra.mrb[38].mxu1 %vm1980_vm1, %v4288_v13  ;;  %v6457_v4 = vsel %vm759_vm6, 1.0, %v7890_v30 }
 0x625   :  { %4711 = vmatpush1.bf16.msra.mxu1 %v4710_v17  ;;  %2146 = vmatprep.mubr.f32.mxu1 %v7613_v15  ;;  %7903 = vst [vmem:[#allocation71_spill] sm:$0xff] %v6457_v4 }
 0x626   :  { %4761 = vmatprep.subr.bf16.mxu1 %v4760_v57  ;;  %v6210_v28 = vpop.permute.xlu0 %261 }
 0x627   :  { %7845 = vst [vmem:[#allocation14_spill] sm:$0xff] %v6210_v28 }
 0x628   :  { %3887 = vmatmul.mubr.msk.f32.vlgmr.msra.gmra.mrb[40].mxu1 %vm1980_vm1, %v1929_v52  ;;  %v3509_v52 = vld [vmem:[%s7594_s19 + $0x70] sm:$0xff] }
 0x629   :  { %4763 = vmatpush3.bf16.msra.mxu1 %v4760_v57  ;;  %2152 = vmatprep.mubr.f32.mxu1 %v7613_v15 }
 0x62a   :  { %4765 = vmatprep.subr.bf16.mxu1 %v4764_v2  ;;  %v6214_v49 = vpop.permute.xlu0 %288 }
 0x62b   :  { %7847 = vst [vmem:[#allocation16_spill] sm:$0xff] %v6214_v49 }
 0x62c   :  { %3888 = vmatmul.mubr.msk.f32.gmra.mrb[42].mxu1 %vm1980_vm1, %v4285_v16  ;;  %v4780_v16 = vpack.c.bf16 %v3506_v38, %v3505_v51  ;;  %v3341_v51 = vld [vmem:[%s7592_s17 + $0x10] sm:$0xff] }
 0x62d   :  { %4767 = vmatpush3.bf16.msra.mxu1 %v4764_v2  ;;  %2158 = vmatprep.mubr.f32.mxu1 %v7613_v15 }
 0x62e   :  { %4769 = vmatprep.subr.bf16.mxu1 %v4768_v36  ;;  %v6218_v31 = vpop.permute.xlu0 %322 }
 0x62f   :  { %7849 = vst [vmem:[#allocation18_spill] sm:$0xff] %v6218_v31 }
 0x630   :  { %3889 = vmatmul.mubr.msk.f32.gmra.mrb[44].mxu1 %vm1980_vm1, %v1939_v45 }
 0x631   :  { %4771 = vmatpush3.bf16.msra.mxu1 %v4768_v36  ;;  %2164 = vmatprep.mubr.f32.mxu1 %v7613_v15 }
 0x632   :  { %4773 = vmatprep.subr.bf16.mxu1 %v4772_v42  ;;  %v6222_v1 = vpop.permute.xlu0 %455 }
 0x633   :  { %7851 = vst [vmem:[#allocation20_spill] sm:$0xff] %v6222_v1 }
 0x634   :  { %3890 = vmatmul.mubr.msk.f32.gmra.mrb[46].mxu1 %vm1980_vm1, %v4288_v13  ;;  %v6199_v13 = vpop.permute.xlu1 %303 }
 0x635   :  { %4775 = vmatpush3.bf16.msra.mxu1 %v4772_v42  ;;  %4375 = vmatprep.mubr.f32.mxu1 %v5445_v24  ;;  %v3510_v24 = vld [vmem:[%s7594_s19 + $0x78] sm:$0xff]  ;;  %7841 = vst [vmem:[#allocation10_spill] sm:$0xff] %v6199_v13 }
 0x636   :  { %4777 = vmatprep.subr.bf16.mxu1 %v4776_v60  ;;  %v4788_v35 = vpack.c.bf16 %v3510_v24, %v3509_v52  ;;  %v6226_v32 = vpop.permute.xlu0 %337 }
 0x637   :  { %7853 = vst [vmem:[#allocation22_spill] sm:$0xff] %v6226_v32 }
 0x638   :  { %v6204_v63 = vpop.permute.xlu1 %436 }
 0x639   :  { %4779 = vmatpush3.bf16.msra.mxu1 %v4776_v60  ;;  %7843 = vst [vmem:[#allocation12_spill] sm:$0xff] %v6204_v63  ;;  %v3340_v60 = vld [vmem:[%s7592_s17 + $0x8] sm:$0xff] }
 0x63a   :  { %4781 = vmatprep.subr.bf16.mxu1 %v4780_v16  ;;  %v6230_v57 = vpop.permute.xlu0 %413  ;;  %v4728_v38 = vpack.c.bf16 %v3340_v60, %v3339_v26  ;;  %v3345_v26 = vld [vmem:[%s7592_s17 + $0x30] sm:$0xff]  ;;  %v3346_v60 = vld [vmem:[%s7592_s17 + $0x38] sm:$0xff] }
 0x63b   :  { %7855 = vst [vmem:[#allocation24_spill] sm:$0xff] %v6230_v57 }
 0x63c   :  { %v6208_v45 = vpop.permute.xlu1 %265  ;;  %4729 = vmatprep.subr.bf16.mxu0 %v4728_v38 }
 0x63d   :  { %4783 = vmatpush3.bf16.msra.mxu1 %v4780_v16  ;;  %v3342_v16 = vld [vmem:[%s7592_s17 + $0x18] sm:$0xff]  ;;  %4731 = vmatpush3.bf16.msra.mxu0 %v4728_v38  ;;  %v3347_v38 = vld [vmem:[%s7592_s17 + $0x40] sm:$0xff] }
 0x63e   :  { %4785 = vmatprep.subr.bf16.mxu1 %v4784_v39  ;;  %v6234_v48 = vpop.permute.xlu0 %440  ;;  %v4732_v56 = vpack.c.bf16 %v3342_v16, %v3341_v51  ;;  %v4740_v51 = vpack.c.bf16 %v3346_v60, %v3345_v26  ;;  %v3348_v16 = vld [vmem:[%s7592_s17 + $0x48] sm:$0xff]  ;;  %v3350_v26 = vld [vmem:[%s7592_s17 + $0x58] sm:$0xff] }
 0x63f   :  { %7857 = vst [vmem:[#allocation26_spill] sm:$0xff] %v6234_v48  ;;  %v4744_v15 = vpack.c.bf16 %v3348_v16, %v3347_v38  ;;  %v3352_v38 = vld [vmem:[%s7592_s17 + $0x68] sm:$0xff]  ;;  %v3822_v48 = vadd.f32 -1.0, %v5809_v29  ;;  %v3831_v29 = vadd.f32 -1.0, %v5862_v18  ;;  %v3832_v18 = vadd.f32 -1.0, %v5877_v40 }
 0x640   :  { %v6212_v43 = vpop.permute.xlu1 %318  ;;  %4733 = vmatprep.subr.bf16.mxu0 %v4732_v56  ;;  %v6391_v40 = vmul.f32 1e+30, %v3835_v34  ;;  %v6467_v34 = vsel %vm760_vm3, 1.0, %v7890_v30 }
 0x641   :  { %4787 = vmatpush3.bf16.msra.mxu1 %v4784_v39  ;;  %7846 = vst [vmem:[#allocation15_spill] sm:$0xff] %v6212_v43  ;;  %v3344_v39 = vld [vmem:[%s7592_s17 + $0x28] sm:$0xff]  ;;  %4735 = vmatpush3.bf16.msra.mxu0 %v4732_v56  ;;  %v3349_v56 = vld [vmem:[%s7592_s17 + $0x50] sm:$0xff]  ;;  %7905 = vst [vmem:[#allocation73_spill] sm:$0xff] %v6467_v34 }
 0x642   :  { %4789 = vmatprep.subr.bf16.mxu1 %v4788_v35  ;;  %v6238_v47 = vpop.permute.xlu0 %474  ;;  %v4736_v24 = vpack.c.bf16 %v3344_v39, %v3343_v5 }
 0x643   :  { %7858 = vst [vmem:[#allocation27_spill] sm:$0xff] %v6238_v47 }
 0x644   :  { %v6216_v44 = vpop.permute.xlu1 %451  ;;  %4737 = vmatprep.subr.bf16.mxu0 %v4736_v24 }
 0x645   :  { %4791 = vmatpush3.bf16.msra.mxu1 %v4788_v35  ;;  %7848 = vst [vmem:[#allocation17_spill] sm:$0xff] %v6216_v44  ;;  %4739 = vmatpush3.bf16.msra.mxu0 %v4736_v24  ;;  %v3351_v24 = vld [vmem:[%s7592_s17 + $0x60] sm:$0xff] }
 0x646   :  { %v6242_v36 = vpop.permute.xlu0 %292  ;;  %4741 = vmatprep.subr.bf16.mxu0 %v4740_v51  ;;  %v4752_v16 = vpack.c.bf16 %v3352_v38, %v3351_v24 }
 0x647   :  { %7860 = vst [vmem:[#allocation29_spill] sm:$0xff] %v6242_v36 }
 0x648   :  { %4376 = vmatmul.mubr.f32.vlgmr.msra.gmra.mrb[48].mxu1 %v5437_v21  ;;  %v6220_v54 = vpop.permute.xlu1 %307 }
 0x649   :  { %7850 = vst [vmem:[#allocation19_spill] sm:$0xff] %v6220_v54  ;;  %4743 = vmatpush3.bf16.msra.mxu0 %v4740_v51  ;;  %v3353_v51 = vld [vmem:[%s7592_s17 + $0x70] sm:$0xff] }
 0x64a   :  { %v6246_v3 = vpop.permute.xlu0 %356  ;;  %4745 = vmatprep.subr.bf16.mxu0 %v4744_v15 }
 0x64b   :  { %7862 = vst [vmem:[#allocation31_spill] sm:$0xff] %v6246_v3 }
 0x64c   :  { %v6224_v21 = vpop.permute.xlu1 %341 }
 0x64d   :  { %7852 = vst [vmem:[#allocation21_spill] sm:$0xff] %v6224_v21  ;;  %4747 = vmatpush3.bf16.msra.mxu0 %v4744_v15 }
 0x64e   :  { %v6250_v7 = vpop.permute.xlu0 %459 }
 0x64f   :  { %7864 = vst [vmem:[#allocation33_spill] sm:$0xff] %v6250_v7 }
 0x650   :  { %v6228_v17 = vpop.permute.xlu1 %417 }
 0x651   :  { %7854 = vst [vmem:[#allocation23_spill] sm:$0xff] %v6228_v17  ;;  %v3826_v17 = vadd.f32 -1.0, %v5839_v59  ;;  %v3837_v59 = vadd.f32 -1.0, %v5898_v12  ;;  %v6382_v12 = vsel %vm753_vm11, 1.0, %v7890_v30 }
 0x652   :  { %v6272_v35 = vpop.permute.xlu0 %493  ;;  %7891 = vst [vmem:[#allocation59_spill] sm:$0xff] %v6382_v12 }
 0x653   :  { %7866 = vst [vmem:[#allocation35_spill] sm:$0xff] %v6272_v35  ;;  %v4748_v35 = vpack.c.bf16 %v3350_v26, %v3349_v56  ;;  %v3354_v56 = vld [vmem:[%s7592_s17 + $0x78] sm:$0xff]  ;;  %v6377_v8 = vmul.f32 1e+30, %v3826_v17 }
 0x654   :  { %v6232_v62 = vpop.permute.xlu1 %470 }
 0x655   :  { %7856 = vst [vmem:[#allocation25_spill] sm:$0xff] %v6232_v62  ;;  %4749 = vmatprep.subr.bf16.mxu0 %v4748_v35  ;;  %v4756_v62 = vpack.c.bf16 %v3354_v56, %v3353_v51 }
 0x656   :  { %v6288_v39 = vpop.permute.xlu0 %345  ;;  %4751 = vmatpush3.bf16.msra.mxu0 %v4748_v35 }
 0x657   :  { %7868 = vst [vmem:[#allocation37_spill] sm:$0xff] %v6288_v39  ;;  %4753 = vmatprep.subr.bf16.mxu0 %v4752_v16 }
 0x658   :  { %v6236_v2 = vpop.permute.xlu1 %269 }
 0x65a   :  { %4755 = vmatpush3.bf16.msra.mxu0 %v4752_v16 }
 0x65b   :  { %4757 = vmatprep.subr.bf16.mxu0 %v4756_v62 }
 0x65c   :  { %v6240_v20 = vpop.permute.xlu1 %326 }
 0x65d   :  { %7859 = vst [vmem:[#allocation28_spill] sm:$0xff] %v6240_v20 }
 0x65e   :  { %4759 = vmatpush3.bf16.msra.mxu0 %v4756_v62 }
 0x660   :  { %v6244_v55 = vpop.permute.xlu1 %360 }
 0x661   :  { %7861 = vst [vmem:[#allocation30_spill] sm:$0xff] %v6244_v55 }
 0x664   :  { %v6248_v42 = vpop.permute.xlu1 %489 }
 0x665   :  { %7863 = vst [vmem:[#allocation32_spill] sm:$0xff] %v6248_v42  ;;  %v6298_v42 = vpop.permute.xlu0 %379 }
 0x666   :  { %7870 = vst [vmem:[#allocation39_spill] sm:$0xff] %v6298_v42 }
 0x668   :  { %v6270_v52 = vpop.permute.xlu1 %311 }
 0x669   :  { %7865 = vst [vmem:[#allocation34_spill] sm:$0xff] %v6270_v52  ;;  %v6314_v47 = vpop.permute.xlu0 %444 }
 0x66a   :  { %7872 = vst [vmem:[#allocation41_spill] sm:$0xff] %v6314_v47  ;;  %v3823_v47 = vadd.f32 -1.0, %v5799_v22  ;;  %v3828_v22 = vadd.f32 -1.0, %v5844_v33 }
 0x66c   :  { %v6286_v5 = vpop.permute.xlu1 %375  ;;  %v6355_v57 = vmul.f32 1e+30, %v3823_v47  ;;  %v3834_v47 = vadd.f32 -1.0, %v5903_v53  ;;  %v6387_v53 = vmul.f32 1e+30, %v3831_v29 }
 0x66d   :  { %7867 = vst [vmem:[#allocation36_spill] sm:$0xff] %v6286_v5  ;;  %v6318_v15 = vpop.permute.xlu0 %508  ;;  %v6406_v29 = vmul.f32 1e+30, %v3832_v18 }
 0x66e   :  { %7874 = vst [vmem:[#allocation43_spill] sm:$0xff] %v6318_v15 }
 0x670   :  { %v6296_v60 = vpop.permute.xlu1 %421 }
 0x671   :  { %7869 = vst [vmem:[#allocation38_spill] sm:$0xff] %v6296_v60  ;;  %v6322_v38 = vpop.permute.xlu0 %273 }
 0x672   :  { %7876 = vst [vmem:[#allocation45_spill] sm:$0xff] %v6322_v38 }
 0x674   :  { %v6312_v26 = vpop.permute.xlu1 %478 }
 0x675   :  { %7871 = vst [vmem:[#allocation40_spill] sm:$0xff] %v6312_v26  ;;  %v6326_v44 = vpop.permute.xlu0 %364 }
 0x676   :  { %7878 = vst [vmem:[#allocation47_spill] sm:$0xff] %v6326_v44 }
 0x678   :  { %v6316_v7 = vpop.permute.xlu1 %512 }
 0x679   :  { %7873 = vst [vmem:[#allocation42_spill] sm:$0xff] %v6316_v7  ;;  %v6330_v35 = vpop.permute.xlu0 %398 }
 0x67a   :  { %7880 = vst [vmem:[#allocation49_spill] sm:$0xff] %v6330_v35  ;;  %v6359_v35 = vmul.f32 1e+30, %v3822_v48  ;;  %v3836_v48 = vadd.f32 -1.0, %v5908_v41 }
 0x67c   :  { %v6320_v24 = vpop.permute.xlu1 %330 }
 0x67d   :  { %7875 = vst [vmem:[#allocation44_spill] sm:$0xff] %v6320_v24  ;;  %v6334_v16 = vpop.permute.xlu0 %497 }
 0x67e   :  { %7882 = vst [vmem:[#allocation51_spill] sm:$0xff] %v6334_v16  ;;  %v3825_v16 = vadd.f32 -1.0, %v5804_v25  ;;  %v3833_v25 = vadd.f32 -1.0, %v5867_v23 }
 0x680   :  { %v6324_v1 = vpop.permute.xlu1 %394  ;;  %v6371_v33 = vmul.f32 1e+30, %v3825_v16  ;;  %v6393_v41 = vmul.f32 1e+30, %v3833_v25  ;;  %v6395_v16 = vmul.f32 1e+30, %v3837_v59 }
 0x681   :  { %7877 = vst [vmem:[#allocation46_spill] sm:$0xff] %v6324_v1  ;;  %v6338_v7 = vpop.permute.xlu0 %531  ;;  %v6452_v25 = vsel %vm756_vm13, 1.0, %v7890_v30 }
 0x682   :  { %7884 = vst [vmem:[#allocation53_spill] sm:$0xff] %v6338_v7  ;;  %7893 = vst [vmem:[#allocation61_spill] sm:$0xff] %v6395_v16  ;;  %v6430_v16 = vsel %vm758_vm5, 1.0, %v7890_v30 }
 0x683   :  { %7899 = vst [vmem:[#allocation67_spill] sm:$0xff] %v6430_v16  ;;  %7901 = vst [vmem:[#allocation69_spill] sm:$0xff] %v6452_v25 }
 0x684   :  { %v6328_v26 = vpop.permute.xlu1 %463 }
 0x685   :  { %7879 = vst [vmem:[#allocation48_spill] sm:$0xff] %v6328_v26  ;;  %v6342_v15 = vpop.permute.xlu0 %383  ;;  %v3827_v26 = vadd.f32 -1.0, %v5829_v46 }
 0x686   :  { %7886 = vst [vmem:[#allocation55_spill] sm:$0xff] %v6342_v15 }
 0x687   :  { %v6361_v46 = vmul.f32 1e+30, %v3827_v26 }
 0x688   :  { %v6332_v51 = vpop.permute.xlu1 %527 }
 0x689   :  { %7881 = vst [vmem:[#allocation50_spill] sm:$0xff] %v6332_v51  ;;  %v6351_v60 = vpop.permute.xlu0 %482 }
 0x68a   :  { %7888 = vst [vmem:[#allocation57_spill] sm:$0xff] %v6351_v60  ;;  %v6404_v60 = vsel %vm754_vm2, 1.0, %v7890_v30 }
 0x68b   :  { %7894 = vst [vmem:[#allocation62_spill] sm:$0xff] %v6404_v60 }
 0x68c   :  { %v6336_v56 = vpop.permute.xlu1 %349 }
 0x68d   :  { %7883 = vst [vmem:[#allocation52_spill] sm:$0xff] %v6336_v56 }
 0x690   :  { %v6340_v62 = vpop.permute.xlu1 %425 }
 0x691   :  { %7885 = vst [vmem:[#allocation54_spill] sm:$0xff] %v6340_v62  ;;  %v3829_v62 = vadd.f32 -1.0, %v5834_v50  ;;  %v3830_v50 = vadd.f32 -1.0, %v5872_v27  ;;  %v6385_v27 = vpop.permute.xlu0 %546 }
 0x692   :  { %7892 = vst [vmem:[#allocation60_spill] sm:$0xff] %v6385_v27 }
 0x693   :  { %v6379_v23 = vmul.f32 1e+30, %v3829_v62  ;;  %v6398_v17 = vmul.f32 1e+30, %v3830_v50  ;;  %v6400_v62 = vmul.f32 1e+30, %v3834_v47 }
 0x694   :  { %v6347_v63 = vpop.permute.xlu1 %516  ;;  %v6416_v50 = vsel %vm757_vm10, 1.0, %v7890_v30 }
 0x695   :  { %7887 = vst [vmem:[#allocation56_spill] sm:$0xff] %v6347_v63  ;;  %v6369_v63 = vmul.f32 1e+30, %v3824_v37  ;;  %v6389_v37 = vmul.f32 1e+30, %v3828_v22  ;;  %7896 = vst [vmem:[#allocation64_spill] sm:$0xff] %v6416_v50  ;;  %v6426_v11 = vpop.permute.xlu0 %368 }
 0x696   :  { %v6408_v22 = vmul.f32 1e+30, %v3836_v48  ;;  %7898 = vst [vmem:[#allocation66_spill] sm:$0xff] %v6426_v11  ;;  %v6445_v48 = vsel %vm755_vm12, 1.0, %v7890_v30 }
 0x697   :  { %7900 = vst [vmem:[#allocation68_spill] sm:$0xff] %v6445_v48 }
 0x698   :  { %v6375_v26 = vpop.permute.xlu1 %550  ;;  %7895 = vst [vmem:[#allocation63_spill] sm:$0xff] %v6408_v22 }
 0x699   :  { %7889 = vst [vmem:[#allocation58_spill] sm:$0xff] %v6375_v26  ;;  %v6459_v18 = vpop.permute.xlu0 %501 }
 0x69a   :  { %7904 = vst [vmem:[#allocation72_spill] sm:$0xff] %v6459_v18 }
 0x69c   :  { %v6418_v47 = vpop.permute.xlu1 %402 }
 0x69d   :  { %7897 = vst [vmem:[#allocation65_spill] sm:$0xff] %v6418_v47  ;;  %v6488_v59 = vpop.permute.xlu0 %387 }
 0x69e   :  { %7907 = vst [vmem:[#allocation75_spill] sm:$0xff] %v6488_v59 }
 0x6a0   :  { %v6454_v10 = vpop.permute.xlu1 %535 }
 0x6a1   :  { %7902 = vst [vmem:[#allocation70_spill] sm:$0xff] %v6454_v10 }
 0x6a4   :  { %v6484_v16 = vpop.permute.xlu1 %520 }
 0x6a5   :  { %7906 = vst [vmem:[#allocation74_spill] sm:$0xff] %v6484_v16 }
 0x6a8   :  { %v6533_v34 = vpop.permute.xlu1 %406 }
 0x6a9   :  { %7911 = vst [vmem:[#allocation79_spill] sm:$0xff] %v6533_v34 }
 0x6eb   :  { %v2059_v6 = vpop.f32.mrb[32].mxu1 }
 0x6ec   :  { %v6495_v18 = vadd.f32 %v2059_v6, %v6359_v35  ;;  %v2061_v61 = vpop.f32.mrb[33].mxu1 }
 0x6ed   :  { %v6501_v50 = vadd.f32 %v2061_v61, %v6355_v57 }
 0x6ee   :  { %7908 = vst [vmem:[#allocation76_spill] sm:$0xff] %v6495_v18  ;;  %v2231_v35 = vadd.f32 %v6495_v18, %v6385_v27  ;;  %v2227_v6 = vadd.f32 %v6495_v18, %v6332_v51  ;;  %v6512_v0 = vadd.f32 %v6495_v18, %v6210_v28  ;;  %v6516_v57 = vadd.f32 %v6495_v18, %v6197_v14 }
 0x6ef   :  { %7909 = vst [vmem:[#allocation77_spill] sm:$0xff] %v6501_v50  ;;  %v2065_v61 = vpop.f32.mrb[34].mxu1  ;;  %v2487_v60 = vadd.f32 %v6501_v50, %v6385_v27  ;;  %v2483_v12 = vadd.f32 %v6501_v50, %v6332_v51  ;;  %v6524_v30 = vadd.f32 %v6495_v18, %v6201_v19  ;;  %v6528_v9 = vadd.f32 %v6495_v18, %v6212_v43 }
 0x6f0   :  { %v6531_v16 = vadd.f32 %v2065_v61, %v6377_v8  ;;  %v2067_v22 = vpop.f32.mrb[35].mxu1  ;;  %v6537_v4 = vadd.f32 %v6495_v18, %v6226_v32  ;;  %v6541_v27 = vadd.f32 %v6495_v18, %v6246_v3  ;;  %v6545_v51 = vadd.f32 %v6495_v18, %v6286_v5  ;;  %v6550_v8 = vpop.permute.xlu0 %554 }
 0x6f1   :  { %v6548_v25 = vadd.f32 %v2067_v22, %v6361_v46  ;;  %7913 = vst [vmem:[#allocation81_spill] sm:$0xff] %v6550_v8  ;;  %v6554_v61 = vadd.f32 %v6495_v18, %v6324_v1  ;;  %v6558_v48 = vadd.f32 %v6501_v50, %v6210_v28  ;;  %v6562_v3 = vadd.f32 %v6501_v50, %v6197_v14 }
 0x6f2   :  { %7910 = vst [vmem:[#allocation78_spill] sm:$0xff] %v6531_v16  ;;  %v2232_v5 = vadd.f32 %v6531_v16, %v6375_v26  ;;  %v2228_v46 = vadd.f32 %v6531_v16, %v6338_v7  ;;  %v6570_v22 = vadd.f32 %v6531_v16, %v6208_v45  ;;  %v6574_v18 = vadd.f32 %v6531_v16, %v6195_v58 }
 0x6f3   :  { %7912 = vst [vmem:[#allocation80_spill] sm:$0xff] %v6548_v25  ;;  %7914 = vst [vmem:[#allocation82_spill] sm:$0xff] %v6558_v48  ;;  %v2071_v28 = vpop.f32.mrb[36].mxu1  ;;  %v2488_v48 = vadd.f32 %v6548_v25, %v6375_v26  ;;  %v2484_v14 = vadd.f32 %v6548_v25, %v6338_v7  ;;  %v6586_v1 = vadd.f32 %v6531_v16, %v6218_v31 }
 0x6f4   :  { %7915 = vst [vmem:[#allocation83_spill] sm:$0xff] %v6562_v3  ;;  %v6582_v3 = vadd.f32 %v6531_v16, %v6199_v13  ;;  %v6589_v32 = vadd.f32 %v2071_v28, %v6398_v17  ;;  %v2073_v43 = vpop.f32.mrb[37].mxu1  ;;  %v2370_v50 = vmax.f32 %v2231_v35, %v2232_v5  ;;  %v2361_v19 = vmax.f32 %v2227_v6, %v2228_v46  ;;  %v6604_v17 = vpop.permute.xlu1 %558 }
 0x6f5   :  { %v6593_v26 = vadd.f32 %v6531_v16, %v6224_v21  ;;  %v6596_v7 = vadd.f32 %v2073_v43, %v6387_v53  ;;  %v2626_v58 = vmax.f32 %v2487_v60, %v2488_v48  ;;  %v2617_v13 = vmax.f32 %v2483_v12, %v2484_v14  ;;  %7918 = vst [vmem:[#allocation86_spill] sm:$0xff] %v6604_v17  ;;  %v6620_v53 = vpop.permute.xlu0 %539 }
 0x6f6   :  { %7916 = vst [vmem:[#allocation84_spill] sm:$0xff] %v6589_v32  ;;  %v6600_v25 = vadd.f32 %v6531_v16, %v6244_v55  ;;  %v2233_v28 = vadd.f32 %v6589_v32, %v6550_v8  ;;  %v2229_v5 = vadd.f32 %v6589_v32, %v6454_v10  ;;  %v6610_v35 = vadd.f32 %v6589_v32, %v6236_v2 }
 0x6f7   :  { %7917 = vst [vmem:[#allocation85_spill] sm:$0xff] %v6596_v7  ;;  %v6614_v43 = vadd.f32 %v6589_v32, %v6214_v49  ;;  %v2489_v14 = vadd.f32 %v6596_v7, %v6550_v8  ;;  %v2077_v60 = vpop.f32.mrb[38].mxu1  ;;  %v2485_v12 = vadd.f32 %v6596_v7, %v6454_v10  ;;  %7919 = vst [vmem:[#allocation87_spill] sm:$0xff] %v6620_v53 }
 0x6f8   :  { %v6624_v48 = vadd.f32 %v6589_v32, %v6220_v54  ;;  %v6628_v6 = vadd.f32 %v6589_v32, %v6240_v20  ;;  %v6631_v46 = vadd.f32 %v2077_v60, %v6400_v62  ;;  %v2079_v55 = vpop.f32.mrb[39].mxu1  ;;  %v2371_v21 = vmax.f32 %v2370_v50, %v2233_v28 }
 0x6f9   :  { %v2362_v8 = vmax.f32 %v2361_v19, %v2229_v5  ;;  %v6635_v31 = vadd.f32 %v6589_v32, %v6288_v39  ;;  %v6638_v10 = vadd.f32 %v2079_v55, %v6391_v40  ;;  %v2627_v49 = vmax.f32 %v2626_v58, %v2489_v14 }
 0x6fa   :  { %7920 = vst [vmem:[#allocation88_spill] sm:$0xff] %v6631_v46  ;;  %v2618_v54 = vmax.f32 %v2617_v13, %v2485_v12  ;;  %v6642_v7 = vadd.f32 %v6589_v32, %v6326_v44  ;;  %v2234_v62 = vadd.f32 %v6631_v46, %v6604_v17  ;;  %v2230_v50 = vadd.f32 %v6631_v46, %v6620_v53 }
 0x6fb   :  { %7921 = vst [vmem:[#allocation89_spill] sm:$0xff] %v6638_v10  ;;  %v2174_v19 = vadd.f32 %v6631_v46, %v6322_v38  ;;  %v2178_v28 = vadd.f32 %v6631_v46, %v6242_v36  ;;  %v2490_v58 = vadd.f32 %v6638_v10, %v6604_v17  ;;  %v2486_v13 = vadd.f32 %v6638_v10, %v6620_v53  ;;  %v2148_v55 = vpop.f32.mrb[40].mxu1 }
 0x6fc   :  { %v6658_v40 = vadd.f32 %v6631_v46, %v6270_v52  ;;  %v6662_v5 = vadd.f32 %v6631_v46, %v6320_v24  ;;  %v2372_v14 = vmax.f32 %v2371_v21, %v2234_v62  ;;  %v2363_v60 = vmax.f32 %v2362_v8, %v2230_v50  ;;  %v2150_v44 = vpop.f32.mrb[41].mxu1 }
 0x6fd   :  { %v6665_v12 = vadd.f32 %v2148_v55, %v6369_v63  ;;  %v6669_v17 = vadd.f32 %v6631_v46, %v6336_v56  ;;  %v2628_v53 = vmax.f32 %v2627_v49, %v2490_v58  ;;  %v2619_v39 = vmax.f32 %v2618_v54, %v2486_v13 }
 0x6fe   :  { %v6672_v20 = vadd.f32 %v2150_v44, %v6371_v33  ;;  %v6676_v52 = vadd.f32 %v6631_v46, %v6426_v11  ;;  %v2373_v24 = vrot.slane %v2372_v14, 4  ;;  %v2364_v21 = vrot.slane %v2363_v60, 4  ;;  %v7924_v33 = vld [vmem:[#allocation49_spill] sm:$0xff] }
 0x6ff   :  { %7922 = vst [vmem:[#allocation90_spill] sm:$0xff] %v6665_v12  ;;  %v6680_v63 = vadd.f32 %v6531_v16, %v6298_v42  ;;  %v6684_v8 = vadd.f32 %v6589_v32, %v6342_v15  ;;  %v2629_v62 = vrot.slane %v2628_v53, 4  ;;  %v2620_v49 = vrot.slane %v2619_v39, 4  ;;  %v2154_v54 = vpop.f32.mrb[42].mxu1 }
 0x700   :  { %7923 = vst [vmem:[#allocation91_spill] sm:$0xff] %v6672_v20  ;;  %v6688_v44 = vadd.f32 %v6631_v46, %v6488_v59  ;;  %v6692_v50 = vadd.f32 %v6531_v16, %v7924_v33  ;;  %v2374_v58 = vmax.f32 %v2372_v14, %v2373_v24  ;;  %v2365_v13 = vmax.f32 %v2363_v60, %v2364_v21  ;;  %v2156_v20 = vpop.f32.mrb[43].mxu1 }
 0x701   :  { %v6695_v55 = vadd.f32 %v2154_v54, %v6389_v37  ;;  %v6699_v12 = vadd.f32 %v6589_v32, %v6418_v47  ;;  %v2630_v15 = vmax.f32 %v2628_v53, %v2629_v62  ;;  %v2621_v42 = vmax.f32 %v2619_v39, %v2620_v49 }
 0x702   :  { %v6702_v11 = vadd.f32 %v2156_v20, %v6379_v23  ;;  %v6706_v59 = vadd.f32 %v6631_v46, %v6533_v34  ;;  %v2375_v16 = vrot.slane %v2374_v58, 2  ;;  %v2366_v24 = vrot.slane %v2365_v13, 2 }
 0x703   :  { %7925 = vst [vmem:[#allocation92_spill] sm:$0xff] %v6695_v55  ;;  %v2235_v37 = vmax.f32 %v6512_v0, %v6570_v22  ;;  %v2244_v14 = vmax.f32 %v6516_v57, %v6574_v18  ;;  %v2631_v60 = vrot.slane %v2630_v15, 2  ;;  %v2622_v21 = vrot.slane %v2621_v42, 2  ;;  %v2160_v54 = vpop.f32.mrb[44].mxu1 }
 0x704   :  { %7926 = vst [vmem:[#allocation93_spill] sm:$0xff] %v6702_v11  ;;  %v2253_v39 = vmax.f32 %v6524_v30, %v6582_v3  ;;  %v2262_v20 = vmax.f32 %v6528_v9, %v6586_v1  ;;  %v2376_v23 = vmax.f32 %v2374_v58, %v2375_v16  ;;  %v2367_v53 = vmax.f32 %v2365_v13, %v2366_v24  ;;  %v2162_v49 = vpop.f32.mrb[45].mxu1 }
 0x705   :  { %v6717_v62 = vadd.f32 %v2160_v54, %v6406_v29  ;;  %v2236_v0 = vmax.f32 %v2235_v37, %v6610_v35  ;;  %v2632_v22 = vmax.f32 %v2630_v15, %v2631_v60  ;;  %v2623_v46 = vmax.f32 %v2621_v42, %v2622_v21  ;;  %v7929_v15 = vld [vmem:[#allocation63_spill] sm:$0xff] }
 0x706   :  { %v6721_v18 = vadd.f32 %v2162_v49, %v6393_v41  ;;  %v2245_v57 = vmax.f32 %v2244_v14, %v6614_v43  ;;  %v2377_v32 = vrot.slane %v2376_v23, 1  ;;  %v2368_v3 = vrot.slane %v2367_v53, 1  ;;  %v7931_v14 = vld [vmem:[#allocation61_spill] sm:$0xff] }
 0x707   :  { %7927 = vst [vmem:[#allocation94_spill] sm:$0xff] %v6717_v62  ;;  %v2237_v30 = vmax.f32 %v2236_v0, %v2174_v19  ;;  %v2254_v1 = vmax.f32 %v2253_v39, %v6624_v48  ;;  %v2633_v16 = vrot.slane %v2632_v22, 1  ;;  %v2624_v9 = vrot.slane %v2623_v46, 1  ;;  %v2166_v58 = vpop.f32.mrb[46].mxu1  ;;  %v7933_v48 = vld [vmem:[#allocation64_spill] sm:$0xff] }
 0x708   :  { %7928 = vst [vmem:[#allocation95_spill] sm:$0xff] %v6721_v18  ;;  %v2246_v29 = vmax.f32 %v2245_v57, %v2178_v28  ;;  %v2263_v13 = vmax.f32 %v2262_v20, %v6628_v6  ;;  %v2378_v24 = vmax.f32 %v2376_v23, %v2377_v32  ;;  %v2369_v35 = vmax.f32 %v2367_v53, %v2368_v3  ;;  %v2168_v41 = vpop.f32.mrb[47].mxu1  ;;  %v7938_v23 = vld [vmem:[#allocation67_spill] sm:$0xff]  ;;  %v7971_v18 = vld [vmem:[#allocation36_spill] sm:$0xff] }
 0x709   :  { %v6727_v42 = vadd.f32 %v2166_v58, %v7929_v15  ;;  %v2238_v37 = vrot.slane %v2237_v30, 4  ;;  %v2634_v60 = vmax.f32 %v2632_v22, %v2633_v16  ;;  %v2625_v43 = vmax.f32 %v2623_v46, %v2624_v9 }
 0x70a   :  { %v6730_v21 = vadd.f32 %v2168_v41, %v7931_v14  ;;  %v2247_v19 = vrot.slane %v2246_v29, 4  ;;  %v7934_v54 = vrot.slane %v7933_v48, 7  ;;  %v7936_v28 = vrot.slane %v7933_v48, 6  ;;  %v7970_v48 = vld [vmem:[#allocation66_spill] sm:$0xff] }
 0x70b   :  { %7930 = vst [vmem:[#allocation63_spill] sm:$0xff] %v6727_v42  ;;  %v2239_v32 = vmax.f32 %v2237_v30, %v2238_v37  ;;  %v2255_v20 = vmax.f32 %v2254_v1, %v6658_v40  ;;  %v7939_v53 = vrot.slane %v7938_v23, 7  ;;  %v7941_v46 = vrot.slane %v7938_v23, 6 }
 0x70c   :  { %7932 = vst [vmem:[#allocation61_spill] sm:$0xff] %v6730_v21  ;;  %v6734_v39 = vmul.f32 %v7934_v54, %v2378_v24  ;;  %v6738_v6 = vmul.f32 %v7936_v28, %v2369_v35  ;;  %v2248_v22 = vmax.f32 %v2246_v29, %v2247_v19  ;;  %v2264_v57 = vmax.f32 %v2263_v13, %v6662_v5 }
 0x70d   :  { %v6743_v49 = vmul.f32 %v7939_v53, %v2634_v60  ;;  %v6747_v0 = vmul.f32 %v7941_v46, %v2625_v43  ;;  %v2240_v3 = vrot.slane %v2239_v32, 2  ;;  %v2256_v16 = vrot.slane %v2255_v20, 4 }
 0x70e   :  { %7935 = vst [vmem:[#allocation96_spill] sm:$0xff] %v6734_v39  ;;  %7937 = vst [vmem:[#allocation97_spill] sm:$0xff] %v6738_v6  ;;  %v2271_v9 = vmax.f32 %v6537_v4, %v6593_v26  ;;  %v2280_v30 = vmax.f32 %v6541_v27, %v6600_v25  ;;  %v2249_v40 = vrot.slane %v2248_v22, 2  ;;  %v2265_v1 = vrot.slane %v2264_v57, 4  ;;  %v7967_v6 = vld [vmem:[#allocation31_spill] sm:$0xff] }
 0x70f   :  { %7940 = vst [vmem:[#allocation98_spill] sm:$0xff] %v6743_v49  ;;  %7942 = vst [vmem:[#allocation99_spill] sm:$0xff] %v6747_v0  ;;  %v2289_v58 = vmax.f32 %v6545_v51, %v6680_v63  ;;  %v2298_v24 = vmax.f32 %v6554_v61, %v6692_v50  ;;  %v2241_v35 = vmax.f32 %v2239_v32, %v2240_v3  ;;  %v7965_v49 = vld [vmem:[#allocation21_spill] sm:$0xff] }
 0x710   :  { %v2257_v29 = vmax.f32 %v2255_v20, %v2256_v16  ;;  %v2272_v5 = vmax.f32 %v2271_v9, %v6635_v31  ;;  %v2281_v13 = vmax.f32 %v2280_v30, %v6642_v7  ;;  %v2250_v15 = vmax.f32 %v2248_v22, %v2249_v40  ;;  %v7945_v9 = vld [vmem:[#allocation80_spill] sm:$0xff] }
 0x711   :  { %v2266_v41 = vmax.f32 %v2264_v57, %v2265_v1  ;;  %v2290_v26 = vmax.f32 %v2289_v58, %v6684_v8  ;;  %v2299_v27 = vmax.f32 %v2298_v24, %v6699_v12  ;;  %v2242_v25 = vrot.slane %v2241_v35, 1  ;;  %v7946_v24 = vld [vmem:[#allocation85_spill] sm:$0xff] }
 0x712   :  { %v2258_v4 = vrot.slane %v2257_v29, 2  ;;  %v2273_v37 = vmax.f32 %v2272_v5, %v6669_v17  ;;  %v2282_v51 = vmax.f32 %v2281_v13, %v6676_v52  ;;  %v2251_v63 = vrot.slane %v2250_v15, 1  ;;  %v7943_v17 = vld [vmem:[#allocation59_spill] sm:$0xff] }
 0x713   :  { %v2267_v61 = vrot.slane %v2266_v41, 2  ;;  %v2291_v50 = vmax.f32 %v2290_v26, %v6688_v44  ;;  %v2300_v31 = vmax.f32 %v2299_v27, %v6706_v59  ;;  %v2243_v60 = vmax.f32 %v2241_v35, %v2242_v25 }
 0x714   :  { %v2259_v7 = vmax.f32 %v2257_v29, %v2258_v4  ;;  %v2274_v43 = vrot.slane %v2273_v37, 4  ;;  %v2283_v14 = vrot.slane %v2282_v51, 4  ;;  %v2252_v19 = vmax.f32 %v2250_v15, %v2251_v63 }
 0x715   :  { %v2268_v8 = vmax.f32 %v2266_v41, %v2267_v61  ;;  %v2292_v54 = vrot.slane %v2291_v50, 4  ;;  %v2301_v12 = vrot.slane %v2300_v31, 4  ;;  %v6767_v53 = vmul.f32 %v7943_v17, %v2243_v60 }
 0x716   :  { %v2260_v28 = vrot.slane %v2259_v7, 1  ;;  %v2275_v32 = vmax.f32 %v2273_v37, %v2274_v43  ;;  %v2284_v20 = vmax.f32 %v2282_v51, %v2283_v14  ;;  %v7944_v44 = vrot.slane %v7943_v17, 1  ;;  %v7949_v37 = vld [vmem:[#allocation8_spill] sm:$0xff]  ;;  %v7951_v14 = vld [vmem:[#allocation11_spill] sm:$0xff] }
 0x717   :  { %v2269_v52 = vrot.slane %v2268_v8, 1  ;;  %v2293_v46 = vmax.f32 %v2291_v50, %v2292_v54  ;;  %v2302_v22 = vmax.f32 %v2300_v31, %v2301_v12  ;;  %v2428_v30 = vadd.f32 %v7945_v9, %v6208_v45  ;;  %v7950_v50 = vld [vmem:[#allocation16_spill] sm:$0xff]  ;;  %v7953_v54 = vld [vmem:[#allocation10_spill] sm:$0xff] }
 0x718   :  { %v6771_v59 = vmul.f32 %v7944_v44, %v2252_v19  ;;  %v2261_v57 = vmax.f32 %v2259_v7, %v2260_v28  ;;  %v2276_v3 = vrot.slane %v2275_v32, 2  ;;  %v2285_v16 = vrot.slane %v2284_v20, 2  ;;  %v7952_v19 = vld [vmem:[#allocation77_spill] sm:$0xff] }
 0x719   :  { %v2270_v40 = vmax.f32 %v2268_v8, %v2269_v52  ;;  %v2294_v1 = vrot.slane %v2293_v46, 2  ;;  %v2303_v58 = vrot.slane %v2302_v22, 2  ;;  %v2429_v35 = vadd.f32 %v7946_v24, %v6236_v2 }
 0x71a   :  { %v2277_v29 = vmax.f32 %v2275_v32, %v2276_v3  ;;  %v2286_v5 = vmax.f32 %v2284_v20, %v2285_v16  ;;  %v7947_v13 = vrot.slane %v7943_v17, 2  ;;  %v2430_v41 = vadd.f32 %v6638_v10, %v6322_v38  ;;  %v7954_v20 = vld [vmem:[#allocation19_spill] sm:$0xff] }
 0x71b   :  { %v2295_v26 = vmax.f32 %v2293_v46, %v2294_v1  ;;  %v2304_v27 = vmax.f32 %v2302_v22, %v2303_v58  ;;  %v7948_v25 = vrot.slane %v7943_v17, 3  ;;  %v2432_v51 = vadd.f32 %v7945_v9, %v7949_v37  ;;  %v7955_v46 = vld [vmem:[#allocation34_spill] sm:$0xff]  ;;  %v7956_v3 = vld [vmem:[#allocation15_spill] sm:$0xff] }
 0x71c   :  { %v6779_v15 = vmul.f32 %v7947_v13, %v2261_v57  ;;  %v2278_v63 = vrot.slane %v2277_v29, 1  ;;  %v2287_v61 = vrot.slane %v2286_v5, 1  ;;  %v2433_v31 = vadd.f32 %v7946_v24, %v7950_v50 }
 0x71d   :  { %v6785_v4 = vmul.f32 %v7948_v25, %v2270_v40  ;;  %v2434_v60 = vadd.f32 %v6638_v10, %v6242_v36  ;;  %v2296_v7 = vrot.slane %v2295_v26, 1  ;;  %v2305_v43 = vrot.slane %v2304_v27, 1  ;;  %v7957_v40 = vld [vmem:[#allocation18_spill] sm:$0xff]  ;;  %v7960_v25 = vld [vmem:[#allocation28_spill] sm:$0xff] }
 0x71e   :  { %v2435_v8 = vadd.f32 %v7952_v19, %v7951_v14  ;;  %v2436_v12 = vadd.f32 %v7945_v9, %v7953_v54  ;;  %v2279_v28 = vmax.f32 %v2277_v29, %v2278_v63  ;;  %v2288_v32 = vmax.f32 %v2286_v5, %v2287_v61  ;;  %v7961_v61 = vld [vmem:[#allocation44_spill] sm:$0xff] }
 0x71f   :  { %v2437_v52 = vadd.f32 %v7946_v24, %v7954_v20  ;;  %v2438_v22 = vadd.f32 %v6638_v10, %v7955_v46  ;;  %v2297_v44 = vmax.f32 %v2295_v26, %v2296_v7  ;;  %v2306_v57 = vmax.f32 %v2304_v27, %v2305_v43 }
 0x720   :  { %v2439_v16 = vadd.f32 %v7952_v19, %v7956_v3  ;;  %v2440_v1 = vadd.f32 %v7945_v9, %v7957_v40  ;;  %v7958_v58 = vrot.slane %v7943_v17, 4  ;;  %v7959_v29 = vrot.slane %v7943_v17, 5  ;;  %v7976_v40 = vld [vmem:[#allocation82_spill] sm:$0xff]  ;;  %v7977_v3 = vld [vmem:[#allocation83_spill] sm:$0xff] }
 0x721   :  { %v2441_v63 = vadd.f32 %v7946_v24, %v7960_v25  ;;  %v2442_v26 = vadd.f32 %v6638_v10, %v7961_v61  ;;  %v7962_v27 = vrot.slane %v7943_v17, 6  ;;  %v7963_v43 = vrot.slane %v7943_v17, 7  ;;  %v7974_v61 = vld [vmem:[#allocation75_spill] sm:$0xff]  ;;  %v7975_v25 = vld [vmem:[#allocation46_spill] sm:$0xff] }
 0x722   :  { %v6807_v13 = vmul.f32 %v7958_v58, %v2279_v28  ;;  %v6811_v5 = vmul.f32 %v7959_v29, %v2288_v32  ;;  %v7964_v28 = vld [vmem:[#allocation22_spill] sm:$0xff]  ;;  %v2444_v32 = vadd.f32 %v7945_v9, %v7965_v49  ;;  %v7966_v29 = vld [vmem:[#allocation37_spill] sm:$0xff]  ;;  %v2446_v0 = vadd.f32 %v6638_v10, %v6336_v56  ;;  %v7972_v49 = vld [vmem:[#allocation39_spill] sm:$0xff] }
 0x723   :  { %v6819_v7 = vmul.f32 %v7962_v27, %v2297_v44  ;;  %v6823_v23 = vmul.f32 %v7963_v43, %v2306_v57  ;;  %v2443_v58 = vadd.f32 %v7952_v19, %v7964_v28  ;;  %v2445_v39 = vadd.f32 %v7946_v24, %v7966_v29  ;;  %v7968_v27 = vld [vmem:[#allocation30_spill] sm:$0xff]  ;;  %v7969_v57 = vld [vmem:[#allocation47_spill] sm:$0xff] }
 0x724   :  { %v2447_v44 = vadd.f32 %v7952_v19, %v7967_v6  ;;  %v2448_v17 = vadd.f32 %v7945_v9, %v7968_v27  ;;  %v2449_v43 = vadd.f32 %v7946_v24, %v7969_v57  ;;  %v2450_v21 = vadd.f32 %v6638_v10, %v7970_v48  ;;  %v7973_v28 = vld [vmem:[#allocation55_spill] sm:$0xff] }
 0x725   :  { %v2451_v11 = vadd.f32 %v7952_v19, %v7971_v18  ;;  %v2452_v29 = vadd.f32 %v7945_v9, %v7972_v49  ;;  %v2453_v56 = vadd.f32 %v7946_v24, %v7973_v28  ;;  %v2454_v6 = vadd.f32 %v6638_v10, %v7974_v61 }
 0x726   :  { %v2455_v27 = vadd.f32 %v7952_v19, %v7975_v25  ;;  %v2456_v57 = vadd.f32 %v7945_v9, %v7924_v33  ;;  %v2457_v48 = vadd.f32 %v7946_v24, %v6418_v47  ;;  %v2458_v18 = vadd.f32 %v6638_v10, %v6533_v34 }
 0x727   :  { %v2491_v49 = vmax.f32 %v7976_v40, %v2428_v30  ;;  %v2500_v46 = vmax.f32 %v7977_v3, %v2432_v51  ;;  %v2509_v28 = vmax.f32 %v2435_v8, %v2436_v12  ;;  %v2518_v20 = vmax.f32 %v2439_v16, %v2440_v1 }
 0x728   :  { %v2527_v54 = vmax.f32 %v2443_v58, %v2444_v32  ;;  %v2536_v61 = vmax.f32 %v2447_v44, %v2448_v17  ;;  %v2545_v19 = vmax.f32 %v2451_v11, %v2452_v29  ;;  %v2554_v25 = vmax.f32 %v2455_v27, %v2456_v57 }
 0x729   :  { %v2492_v14 = vmax.f32 %v2491_v49, %v2429_v35  ;;  %v2501_v36 = vmax.f32 %v2500_v46, %v2433_v31  ;;  %v2510_v50 = vmax.f32 %v2509_v28, %v2437_v52  ;;  %v2519_v9 = vmax.f32 %v2518_v20, %v2441_v63 }
 0x72a   :  { %v2528_v33 = vmax.f32 %v2527_v54, %v2445_v39  ;;  %v2537_v37 = vmax.f32 %v2536_v61, %v2449_v43  ;;  %v2546_v42 = vmax.f32 %v2545_v19, %v2453_v56  ;;  %v2555_v10 = vmax.f32 %v2554_v25, %v2457_v48 }
 0x72b   :  { %v2493_v24 = vmax.f32 %v2492_v14, %v2430_v41  ;;  %v2502_v47 = vmax.f32 %v2501_v36, %v2434_v60  ;;  %v2511_v34 = vmax.f32 %v2510_v50, %v2438_v22  ;;  %v2520_v30 = vmax.f32 %v2519_v9, %v2442_v26 }
 0x72c   :  { %v2529_v40 = vmax.f32 %v2528_v33, %v2446_v0  ;;  %v2538_v51 = vmax.f32 %v2537_v37, %v2450_v21  ;;  %v2547_v3 = vmax.f32 %v2546_v42, %v2454_v6  ;;  %v2556_v16 = vmax.f32 %v2555_v10, %v2458_v18 }
 0x72d   :  { %v2494_v8 = vrot.slane %v2493_v24, 4  ;;  %v2503_v12 = vrot.slane %v2502_v47, 4  ;;  %v2512_v49 = vrot.slane %v2511_v34, 4  ;;  %v2521_v35 = vrot.slane %v2520_v30, 4 }
 0x72e   :  { %v2530_v11 = vrot.slane %v2529_v40, 4  ;;  %v2539_v31 = vrot.slane %v2538_v51, 4  ;;  %v2548_v39 = vrot.slane %v2547_v3, 4  ;;  %v2557_v54 = vrot.slane %v2556_v16, 4 }
 0x72f   :  { %v2495_v52 = vmax.f32 %v2493_v24, %v2494_v8  ;;  %v2504_v20 = vmax.f32 %v2502_v47, %v2503_v12  ;;  %v2513_v41 = vmax.f32 %v2511_v34, %v2512_v49  ;;  %v2522_v36 = vmax.f32 %v2520_v30, %v2521_v35 }
 0x730   :  { %v2531_v56 = vmax.f32 %v2529_v40, %v2530_v11  ;;  %v2540_v48 = vmax.f32 %v2538_v51, %v2539_v31  ;;  %v2549_v33 = vmax.f32 %v2547_v3, %v2548_v39  ;;  %v2558_v21 = vmax.f32 %v2556_v16, %v2557_v54  ;;  %v7978_v51 = vld [vmem:[#allocation62_spill] sm:$0xff] }
 0x731   :  { %v2496_v50 = vrot.slane %v2495_v52, 2  ;;  %v2505_v9 = vrot.slane %v2504_v20, 2  ;;  %v2514_v0 = vrot.slane %v2513_v41, 2  ;;  %v2523_v37 = vrot.slane %v2522_v36, 2 }
 0x732   :  { %v2532_v42 = vrot.slane %v2531_v56, 2  ;;  %v2541_v10 = vrot.slane %v2540_v48, 2  ;;  %v2550_v60 = vrot.slane %v2549_v33, 2  ;;  %v2559_v14 = vrot.slane %v2558_v21, 2 }
 0x733   :  { %v2497_v18 = vmax.f32 %v2495_v52, %v2496_v50  ;;  %v2506_v6 = vmax.f32 %v2504_v20, %v2505_v9  ;;  %v2515_v24 = vmax.f32 %v2513_v41, %v2514_v0  ;;  %v2524_v47 = vmax.f32 %v2522_v36, %v2523_v37 }
 0x734   :  { %v2533_v19 = vmax.f32 %v2531_v56, %v2532_v42  ;;  %v2542_v46 = vmax.f32 %v2540_v48, %v2541_v10  ;;  %v2551_v1 = vmax.f32 %v2549_v33, %v2550_v60  ;;  %v2560_v25 = vmax.f32 %v2558_v21, %v2559_v14  ;;  %v7987_v42 = vld [vmem:[#allocation90_spill] sm:$0xff] }
 0x735   :  { %v2498_v34 = vrot.slane %v2497_v18, 1  ;;  %v2507_v22 = vrot.slane %v2506_v6, 1  ;;  %v2516_v63 = vrot.slane %v2515_v24, 1  ;;  %v2525_v61 = vrot.slane %v2524_v47, 1 }
 0x736   :  { %v2534_v26 = vrot.slane %v2533_v19, 1  ;;  %v2543_v28 = vrot.slane %v2542_v46, 1  ;;  %v2552_v29 = vrot.slane %v2551_v1, 1  ;;  %v2561_v44 = vrot.slane %v2560_v25, 1 }
 0x737   :  { %v2499_v58 = vmax.f32 %v2497_v18, %v2498_v34  ;;  %v2508_v32 = vmax.f32 %v2506_v6, %v2507_v22  ;;  %v2517_v27 = vmax.f32 %v2515_v24, %v2516_v63  ;;  %v2526_v17 = vmax.f32 %v2524_v47, %v2525_v61  ;;  %v7992_v24 = vld [vmem:[#allocation29_spill] sm:$0xff]  ;;  %v7994_v34 = vld [vmem:[#allocation10_spill] sm:$0xff] }
 0x738   :  { %v2535_v57 = vmax.f32 %v2533_v19, %v2534_v26  ;;  %v2544_v43 = vmax.f32 %v2542_v46, %v2543_v28  ;;  %v2553_v30 = vmax.f32 %v2551_v1, %v2552_v29  ;;  %v2562_v40 = vmax.f32 %v2560_v25, %v2561_v44  ;;  %v7993_v19 = vld [vmem:[#allocation11_spill] sm:$0xff]  ;;  %v7996_v63 = vld [vmem:[#allocation34_spill] sm:$0xff]  ;;  %v7999_v29 = vld [vmem:[#allocation28_spill] sm:$0xff] }
 0x739   :  { %v2667_v8 = vmul.f32 %v7978_v51, %v2499_v58  ;;  %v7979_v12 = vrot.slane %v7978_v51, 1  ;;  %v7980_v16 = vrot.slane %v7978_v51, 2  ;;  %v7981_v35 = vrot.slane %v7978_v51, 3  ;;  %v7995_v1 = vld [vmem:[#allocation19_spill] sm:$0xff]  ;;  %v7998_v58 = vld [vmem:[#allocation18_spill] sm:$0xff] }
 0x73a   :  { %v7982_v31 = vrot.slane %v7978_v51, 4  ;;  %v7983_v20 = vrot.slane %v7978_v51, 5  ;;  %v7984_v54 = vrot.slane %v7978_v51, 6  ;;  %v7985_v36 = vrot.slane %v7978_v51, 7  ;;  %v7997_v26 = vld [vmem:[#allocation15_spill] sm:$0xff]  ;;  %v8003_v51 = vld [vmem:[#allocation37_spill] sm:$0xff] }
 0x73b   :  { %v2668_v3 = vmul.f32 %v7979_v12, %v2508_v32  ;;  %v2669_v49 = vmul.f32 %v7980_v16, %v2517_v27  ;;  %v2670_v11 = vmul.f32 %v7981_v35, %v2526_v17  ;;  %v6875_v48 = vadd.f32 %v2667_v8, %v6767_v53  ;;  %v8000_v27 = vld [vmem:[#allocation44_spill] sm:$0xff]  ;;  %v8005_v16 = vld [vmem:[#allocation31_spill] sm:$0xff]  ;;  %v8006_v35 = vld [vmem:[#allocation30_spill] sm:$0xff] }
 0x73c   :  { %v2671_v52 = vmul.f32 %v7982_v31, %v2535_v57  ;;  %v2672_v39 = vmul.f32 %v7983_v20, %v2544_v43  ;;  %v2673_v41 = vmul.f32 %v7984_v54, %v2553_v30  ;;  %v2674_v56 = vmul.f32 %v7985_v36, %v2562_v40  ;;  %v8001_v57 = vld [vmem:[#allocation22_spill] sm:$0xff]  ;;  %v8002_v30 = vld [vmem:[#allocation21_spill] sm:$0xff]  ;;  %v8004_v12 = vld [vmem:[#allocation52_spill] sm:$0xff] }
 0x73d   :  { %v6878_v50 = vadd.f32 %v2668_v3, %v6771_v59  ;;  %v6881_v9 = vadd.f32 %v2669_v49, %v6779_v15  ;;  %v6884_v33 = vadd.f32 %v2670_v11, %v6785_v4  ;;  %v7986_v59 = vld [vmem:[#allocation14_spill] sm:$0xff]  ;;  %v2700_v15 = vadd.f32 %v6695_v55, %v6208_v45  ;;  %v8007_v31 = vld [vmem:[#allocation47_spill] sm:$0xff]  ;;  %v8009_v54 = vld [vmem:[#allocation36_spill] sm:$0xff] }
 0x73e   :  { %v6887_v21 = vadd.f32 %v2671_v52, %v6807_v13  ;;  %v6890_v0 = vadd.f32 %v2672_v39, %v6811_v5  ;;  %v6893_v37 = vadd.f32 %v2673_v41, %v6819_v7  ;;  %v6896_v53 = vadd.f32 %v2674_v56, %v6823_v23  ;;  %v7988_v13 = vld [vmem:[#allocation63_spill] sm:$0xff]  ;;  %v7989_v5 = vld [vmem:[#allocation9_spill] sm:$0xff]  ;;  %v7990_v7 = vld [vmem:[#allocation8_spill] sm:$0xff] }
 0x73f   :  { %v2699_v10 = vadd.f32 %v7987_v42, %v7986_v59  ;;  %v2701_v4 = vadd.f32 %v6717_v62, %v6236_v2  ;;  %v2702_v18 = vadd.f32 %v7988_v13, %v6322_v38  ;;  %v2703_v6 = vadd.f32 %v7987_v42, %v7989_v5  ;;  %v7991_v23 = vld [vmem:[#allocation16_spill] sm:$0xff]  ;;  %v8008_v20 = vld [vmem:[#allocation66_spill] sm:$0xff]  ;;  %v8010_v36 = vld [vmem:[#allocation39_spill] sm:$0xff] }
 0x740   :  { %v2704_v60 = vadd.f32 %v6695_v55, %v7990_v7  ;;  %v2705_v14 = vadd.f32 %v6717_v62, %v7991_v23  ;;  %v2706_v47 = vadd.f32 %v7988_v13, %v7992_v24  ;;  %v2707_v46 = vadd.f32 %v7987_v42, %v7993_v19 }
 0x741   :  { %v2708_v22 = vadd.f32 %v6695_v55, %v7994_v34  ;;  %v2709_v25 = vadd.f32 %v6717_v62, %v7995_v1  ;;  %v2710_v61 = vadd.f32 %v7988_v13, %v7996_v63  ;;  %v2711_v28 = vadd.f32 %v7987_v42, %v7997_v26 }
 0x742   :  { %v2712_v32 = vadd.f32 %v6695_v55, %v7998_v58  ;;  %v2713_v44 = vadd.f32 %v6717_v62, %v7999_v29  ;;  %v2714_v17 = vadd.f32 %v7988_v13, %v8000_v27  ;;  %v2715_v43 = vadd.f32 %v7987_v42, %v8001_v57  ;;  %v8013_v57 = vld [vmem:[#allocation46_spill] sm:$0xff]  ;;  %v8014_v27 = vld [vmem:[#allocation49_spill] sm:$0xff]  ;;  %v8016_v58 = vld [vmem:[#allocation79_spill] sm:$0xff] }
 0x743   :  { %v2716_v40 = vadd.f32 %v6695_v55, %v8002_v30  ;;  %v2717_v8 = vadd.f32 %v6717_v62, %v8003_v51  ;;  %v2718_v3 = vadd.f32 %v7988_v13, %v8004_v12  ;;  %v2719_v49 = vadd.f32 %v7987_v42, %v8005_v16  ;;  %v8011_v51 = vld [vmem:[#allocation55_spill] sm:$0xff]  ;;  %v8015_v29 = vld [vmem:[#allocation65_spill] sm:$0xff] }
 0x744   :  { %v2720_v11 = vadd.f32 %v6695_v55, %v8006_v35  ;;  %v2721_v52 = vadd.f32 %v6717_v62, %v8007_v31  ;;  %v2722_v39 = vadd.f32 %v7988_v13, %v8008_v20  ;;  %v2723_v41 = vadd.f32 %v7987_v42, %v8009_v54  ;;  %v8012_v30 = vld [vmem:[#allocation75_spill] sm:$0xff] }
 0x745   :  { %v2724_v56 = vadd.f32 %v6695_v55, %v8010_v36  ;;  %v2725_v12 = vadd.f32 %v6717_v62, %v8011_v51  ;;  %v2726_v16 = vadd.f32 %v7988_v13, %v8012_v30  ;;  %v2727_v35 = vadd.f32 %v7987_v42, %v8013_v57 }
 0x746   :  { %v2728_v31 = vadd.f32 %v6695_v55, %v8014_v27  ;;  %v2729_v20 = vadd.f32 %v6717_v62, %v8015_v29  ;;  %v2730_v54 = vadd.f32 %v7988_v13, %v8016_v58  ;;  %v2763_v26 = vmax.f32 %v2699_v10, %v2700_v15 }
 0x747   :  { %v2772_v36 = vmax.f32 %v2703_v6, %v2704_v60  ;;  %v2781_v63 = vmax.f32 %v2707_v46, %v2708_v22  ;;  %v2790_v1 = vmax.f32 %v2711_v28, %v2712_v32  ;;  %v2799_v51 = vmax.f32 %v2715_v43, %v2716_v40 }
 0x748   :  { %v2808_v34 = vmax.f32 %v2719_v49, %v2720_v11  ;;  %v2764_v19 = vmax.f32 %v2763_v26, %v2701_v4  ;;  %v2817_v24 = vmax.f32 %v2723_v41, %v2724_v56  ;;  %v2826_v23 = vmax.f32 %v2727_v35, %v2728_v31 }
 0x749   :  { %v2773_v30 = vmax.f32 %v2772_v36, %v2705_v14  ;;  %v2782_v42 = vmax.f32 %v2781_v63, %v2709_v25  ;;  %v2791_v57 = vmax.f32 %v2790_v1, %v2713_v44  ;;  %v2800_v7 = vmax.f32 %v2799_v51, %v2717_v8 }
 0x74a   :  { %v2809_v55 = vmax.f32 %v2808_v34, %v2721_v52  ;;  %v2765_v27 = vmax.f32 %v2764_v19, %v2702_v18  ;;  %v2818_v62 = vmax.f32 %v2817_v24, %v2725_v12  ;;  %v2827_v29 = vmax.f32 %v2826_v23, %v2729_v20 }
 0x74b   :  { %v2774_v5 = vmax.f32 %v2773_v30, %v2706_v47  ;;  %v2783_v38 = vmax.f32 %v2782_v42, %v2710_v61  ;;  %v2792_v13 = vmax.f32 %v2791_v57, %v2714_v17  ;;  %v2801_v10 = vmax.f32 %v2800_v7, %v2718_v3 }
 0x74c   :  { %v2810_v15 = vmax.f32 %v2809_v55, %v2722_v39  ;;  %v2766_v6 = vrot.slane %v2765_v27, 4  ;;  %v2819_v46 = vmax.f32 %v2818_v62, %v2726_v16  ;;  %v2828_v22 = vmax.f32 %v2827_v29, %v2730_v54 }
 0x74d   :  { %v2775_v60 = vrot.slane %v2774_v5, 4  ;;  %v2784_v4 = vrot.slane %v2783_v38, 4  ;;  %v2793_v14 = vrot.slane %v2792_v13, 4  ;;  %v2802_v26 = vrot.slane %v2801_v10, 4 }
 0x74e   :  { %v2811_v28 = vrot.slane %v2810_v15, 4  ;;  %v2767_v25 = vmax.f32 %v2765_v27, %v2766_v6  ;;  %v2820_v63 = vrot.slane %v2819_v46, 4  ;;  %v2829_v34 = vrot.slane %v2828_v22, 4 }
 0x74f   :  { %v2776_v1 = vmax.f32 %v2774_v5, %v2775_v60  ;;  %v2785_v18 = vmax.f32 %v2783_v38, %v2784_v4  ;;  %v2794_v47 = vmax.f32 %v2792_v13, %v2793_v14  ;;  %v2803_v24 = vmax.f32 %v2801_v10, %v2802_v26  ;;  %v8017_v10 = vld [vmem:[#allocation68_spill] sm:$0xff] }
 0x750   :  { %v2812_v23 = vmax.f32 %v2810_v15, %v2811_v28  ;;  %v2768_v42 = vrot.slane %v2767_v25, 2  ;;  %v2821_v7 = vmax.f32 %v2819_v46, %v2820_v63  ;;  %v2830_v55 = vmax.f32 %v2828_v22, %v2829_v34 }
 0x751   :  { %v2777_v19 = vrot.slane %v2776_v1, 2  ;;  %v2786_v61 = vrot.slane %v2785_v18, 2  ;;  %v2795_v32 = vrot.slane %v2794_v47, 2  ;;  %v2804_v62 = vrot.slane %v2803_v24, 2 }
 0x752   :  { %v2813_v29 = vrot.slane %v2812_v23, 2  ;;  %v2769_v44 = vmax.f32 %v2767_v25, %v2768_v42  ;;  %v2822_v57 = vrot.slane %v2821_v7, 2  ;;  %v2831_v43 = vrot.slane %v2830_v55, 2 }
 0x753   :  { %v2778_v17 = vmax.f32 %v2776_v1, %v2777_v19  ;;  %v2787_v27 = vmax.f32 %v2785_v18, %v2786_v61  ;;  %v2796_v5 = vmax.f32 %v2794_v47, %v2795_v32  ;;  %v2805_v30 = vmax.f32 %v2803_v24, %v2804_v62 }
 0x754   :  { %v2814_v40 = vmax.f32 %v2812_v23, %v2813_v29  ;;  %v2770_v38 = vrot.slane %v2769_v44, 1  ;;  %v2823_v51 = vmax.f32 %v2821_v7, %v2822_v57  ;;  %v2832_v8 = vmax.f32 %v2830_v55, %v2831_v43 }
 0x755   :  { %v2779_v13 = vrot.slane %v2778_v17, 1  ;;  %v2788_v12 = vrot.slane %v2787_v27, 1  ;;  %v2797_v3 = vrot.slane %v2796_v5, 1  ;;  %v2806_v16 = vrot.slane %v2805_v30, 1 }
 0x756   :  { %v2815_v49 = vrot.slane %v2814_v40, 1  ;;  %v2771_v35 = vmax.f32 %v2769_v44, %v2770_v38  ;;  %v2824_v31 = vrot.slane %v2823_v51, 1  ;;  %v2833_v52 = vrot.slane %v2832_v8, 1  ;;  %v8029_v44 = vld [vmem:[#allocation61_spill] sm:$0xff]  ;;  %v8036_v38 = vld [vmem:[#allocation19_spill] sm:$0xff] }
 0x757   :  { %v2780_v11 = vmax.f32 %v2778_v17, %v2779_v13  ;;  %v2789_v20 = vmax.f32 %v2787_v27, %v2788_v12  ;;  %v2798_v39 = vmax.f32 %v2796_v5, %v2797_v3  ;;  %v2807_v54 = vmax.f32 %v2805_v30, %v2806_v16  ;;  %v8033_v5 = vld [vmem:[#allocation29_spill] sm:$0xff]  ;;  %v8034_v30 = vld [vmem:[#allocation11_spill] sm:$0xff]  ;;  %v8039_v16 = vld [vmem:[#allocation18_spill] sm:$0xff] }
 0x758   :  { %v2816_v41 = vmax.f32 %v2814_v40, %v2815_v49  ;;  %v2825_v36 = vmax.f32 %v2823_v51, %v2824_v31  ;;  %v2834_v56 = vmax.f32 %v2832_v8, %v2833_v52  ;;  %v2939_v15 = vmul.f32 %v8017_v10, %v2771_v35  ;;  %v8035_v40 = vld [vmem:[#allocation10_spill] sm:$0xff]  ;;  %v8038_v12 = vld [vmem:[#allocation15_spill] sm:$0xff]  ;;  %v8040_v35 = vld [vmem:[#allocation28_spill] sm:$0xff] }
 0x759   :  { %v8018_v6 = vrot.slane %v8017_v10, 1  ;;  %v8019_v46 = vrot.slane %v8017_v10, 2  ;;  %v8020_v4 = vrot.slane %v8017_v10, 3  ;;  %v8021_v26 = vrot.slane %v8017_v10, 4  ;;  %v8037_v51 = vld [vmem:[#allocation34_spill] sm:$0xff]  ;;  %v8041_v31 = vld [vmem:[#allocation44_spill] sm:$0xff] }
 0x75a   :  { %v8022_v25 = vrot.slane %v8017_v10, 5  ;;  %v8023_v63 = vrot.slane %v8017_v10, 6  ;;  %v8024_v18 = vrot.slane %v8017_v10, 7  ;;  %v6978_v24 = vadd.f32 %v2939_v15, %v6875_v48  ;;  %v8045_v10 = vld [vmem:[#allocation52_spill] sm:$0xff] }
 0x75b   :  { %v2940_v60 = vmul.f32 %v8018_v6, %v2780_v11  ;;  %v2941_v22 = vmul.f32 %v8019_v46, %v2789_v20  ;;  %v2942_v14 = vmul.f32 %v8020_v4, %v2798_v39  ;;  %v2943_v28 = vmul.f32 %v8021_v26, %v2807_v54  ;;  %v8042_v20 = vld [vmem:[#allocation22_spill] sm:$0xff]  ;;  %v8043_v54 = vld [vmem:[#allocation21_spill] sm:$0xff]  ;;  %v8046_v6 = vld [vmem:[#allocation31_spill] sm:$0xff] }
 0x75c   :  { %v2944_v1 = vmul.f32 %v8022_v25, %v2816_v41  ;;  %v2945_v34 = vmul.f32 %v8023_v63, %v2825_v36  ;;  %v2946_v47 = vmul.f32 %v8024_v18, %v2834_v56  ;;  %v2982_v8 = vadd.f32 %v8029_v44, %v8037_v51  ;;  %v8044_v36 = vld [vmem:[#allocation37_spill] sm:$0xff]  ;;  %v8047_v46 = vld [vmem:[#allocation30_spill] sm:$0xff]  ;;  %v8048_v4 = vld [vmem:[#allocation47_spill] sm:$0xff] }
 0x75d   :  { %v6981_v23 = vadd.f32 %v2940_v60, %v6878_v50  ;;  %v6984_v42 = vadd.f32 %v2941_v22, %v6881_v9  ;;  %v6987_v19 = vadd.f32 %v2942_v14, %v6884_v33  ;;  %v6990_v7 = vadd.f32 %v2943_v28, %v6887_v21  ;;  %v8025_v50 = vld [vmem:[#allocation91_spill] sm:$0xff]  ;;  %v8026_v9 = vld [vmem:[#allocation93_spill] sm:$0xff]  ;;  %v8049_v26 = vld [vmem:[#allocation66_spill] sm:$0xff] }
 0x75e   :  { %v6993_v55 = vadd.f32 %v2944_v1, %v6890_v0  ;;  %v6996_v61 = vadd.f32 %v2945_v34, %v6893_v37  ;;  %v6999_v48 = vadd.f32 %v2946_v47, %v6896_v53  ;;  %v2971_v32 = vadd.f32 %v8025_v50, %v7986_v59  ;;  %v8027_v33 = vld [vmem:[#allocation95_spill] sm:$0xff]  ;;  %v8028_v21 = vld [vmem:[#allocation45_spill] sm:$0xff]  ;;  %v8031_v37 = vld [vmem:[#allocation8_spill] sm:$0xff] }
 0x75f   :  { %v2972_v62 = vadd.f32 %v8026_v9, %v6208_v45  ;;  %v2973_v29 = vadd.f32 %v8027_v33, %v6236_v2  ;;  %v2974_v17 = vadd.f32 %v8029_v44, %v8028_v21  ;;  %v8030_v0 = vld [vmem:[#allocation9_spill] sm:$0xff]  ;;  %v2976_v43 = vadd.f32 %v8026_v9, %v8031_v37  ;;  %v8032_v53 = vld [vmem:[#allocation16_spill] sm:$0xff]  ;;  %v8051_v63 = vld [vmem:[#allocation39_spill] sm:$0xff] }
 0x760   :  { %v2975_v57 = vadd.f32 %v8025_v50, %v8030_v0  ;;  %v2977_v27 = vadd.f32 %v8027_v33, %v8032_v53  ;;  %v2978_v59 = vadd.f32 %v8029_v44, %v8033_v5  ;;  %v2979_v45 = vadd.f32 %v8025_v50, %v8034_v30  ;;  %v8050_v25 = vld [vmem:[#allocation36_spill] sm:$0xff]  ;;  %v8052_v18 = vld [vmem:[#allocation55_spill] sm:$0xff]  ;;  %v8054_v37 = vld [vmem:[#allocation46_spill] sm:$0xff] }
 0x761   :  { %v2980_v2 = vadd.f32 %v8026_v9, %v8035_v40  ;;  %v2981_v13 = vadd.f32 %v8027_v33, %v8036_v38  ;;  %v2983_v3 = vadd.f32 %v8025_v50, %v8038_v12  ;;  %v2984_v49 = vadd.f32 %v8026_v9, %v8039_v16  ;;  %v8053_v21 = vld [vmem:[#allocation75_spill] sm:$0xff]  ;;  %v8055_v5 = vld [vmem:[#allocation49_spill] sm:$0xff] }
 0x762   :  { %v2985_v11 = vadd.f32 %v8027_v33, %v8040_v35  ;;  %v2986_v52 = vadd.f32 %v8029_v44, %v8041_v31  ;;  %v2987_v39 = vadd.f32 %v8025_v50, %v8042_v20  ;;  %v2988_v41 = vadd.f32 %v8026_v9, %v8043_v54  ;;  %v8056_v40 = vld [vmem:[#allocation65_spill] sm:$0xff] }
 0x763   :  { %v2989_v56 = vadd.f32 %v8027_v33, %v8044_v36  ;;  %v2990_v15 = vadd.f32 %v8029_v44, %v8045_v10  ;;  %v2991_v60 = vadd.f32 %v8025_v50, %v8046_v6  ;;  %v2992_v22 = vadd.f32 %v8026_v9, %v8047_v46 }
 0x764   :  { %v2993_v14 = vadd.f32 %v8027_v33, %v8048_v4  ;;  %v2994_v28 = vadd.f32 %v8029_v44, %v8049_v26  ;;  %v2995_v1 = vadd.f32 %v8025_v50, %v8050_v25  ;;  %v2996_v34 = vadd.f32 %v8026_v9, %v8051_v63 }
 0x765   :  { %v2997_v47 = vadd.f32 %v8027_v33, %v8052_v18  ;;  %v2998_v0 = vadd.f32 %v8029_v44, %v8053_v21  ;;  %v2999_v53 = vadd.f32 %v8025_v50, %v8054_v37  ;;  %v3000_v30 = vadd.f32 %v8026_v9, %v8055_v5 }
 0x766   :  { %v3001_v38 = vadd.f32 %v8027_v33, %v8056_v40  ;;  %v3002_v51 = vadd.f32 %v8029_v44, %v8016_v58  ;;  %v3035_v12 = vmax.f32 %v2971_v32, %v2972_v62  ;;  %v3044_v16 = vmax.f32 %v2975_v57, %v2976_v43 }
 0x767   :  { %v3053_v35 = vmax.f32 %v2979_v45, %v2980_v2  ;;  %v3062_v31 = vmax.f32 %v2983_v3, %v2984_v49  ;;  %v3071_v20 = vmax.f32 %v2987_v39, %v2988_v41  ;;  %v3080_v54 = vmax.f32 %v2991_v60, %v2992_v22 }
 0x768   :  { %v3036_v36 = vmax.f32 %v3035_v12, %v2973_v29  ;;  %v3045_v10 = vmax.f32 %v3044_v16, %v2977_v27  ;;  %v3089_v6 = vmax.f32 %v2995_v1, %v2996_v34  ;;  %v3098_v46 = vmax.f32 %v2999_v53, %v3000_v30 }
 0x769   :  { %v3054_v4 = vmax.f32 %v3053_v35, %v2981_v13  ;;  %v3063_v26 = vmax.f32 %v3062_v31, %v2985_v11  ;;  %v3072_v25 = vmax.f32 %v3071_v20, %v2989_v56  ;;  %v3081_v63 = vmax.f32 %v3080_v54, %v2993_v14 }
 0x76a   :  { %v3037_v18 = vmax.f32 %v3036_v36, %v2974_v17  ;;  %v3046_v21 = vmax.f32 %v3045_v10, %v2978_v59  ;;  %v3090_v37 = vmax.f32 %v3089_v6, %v2997_v47  ;;  %v3099_v5 = vmax.f32 %v3098_v46, %v3001_v38 }
 0x76b   :  { %v3055_v40 = vmax.f32 %v3054_v4, %v2982_v8  ;;  %v3064_v58 = vmax.f32 %v3063_v26, %v2986_v52  ;;  %v3073_v32 = vmax.f32 %v3072_v25, %v2990_v15  ;;  %v3082_v62 = vmax.f32 %v3081_v63, %v2994_v28 }
 0x76c   :  { %v3038_v57 = vrot.slane %v3037_v18, 4  ;;  %v3047_v43 = vrot.slane %v3046_v21, 4  ;;  %v3091_v45 = vmax.f32 %v3090_v37, %v2998_v0  ;;  %v3100_v2 = vmax.f32 %v3099_v5, %v3002_v51 }
 0x76d   :  { %v3056_v29 = vrot.slane %v3055_v40, 4  ;;  %v3065_v27 = vrot.slane %v3064_v58, 4  ;;  %v3074_v3 = vrot.slane %v3073_v32, 4  ;;  %v3083_v49 = vrot.slane %v3082_v62, 4 }
 0x76e   :  { %v3039_v13 = vmax.f32 %v3037_v18, %v3038_v57  ;;  %v3048_v11 = vmax.f32 %v3046_v21, %v3047_v43  ;;  %v3092_v39 = vrot.slane %v3091_v45, 4  ;;  %v3101_v41 = vrot.slane %v3100_v2, 4 }
 0x76f   :  { %v3057_v17 = vmax.f32 %v3055_v40, %v3056_v29  ;;  %v3066_v59 = vmax.f32 %v3064_v58, %v3065_v27  ;;  %v3075_v56 = vmax.f32 %v3073_v32, %v3074_v3  ;;  %v3084_v60 = vmax.f32 %v3082_v62, %v3083_v49  ;;  %v8057_v32 = vld [vmem:[#allocation69_spill] sm:$0xff] }
 0x770   :  { %v3040_v8 = vrot.slane %v3039_v13, 2  ;;  %v3049_v52 = vrot.slane %v3048_v11, 2  ;;  %v3093_v15 = vmax.f32 %v3091_v45, %v3092_v39  ;;  %v3102_v22 = vmax.f32 %v3100_v2, %v3101_v41 }
 0x771   :  { %v3058_v14 = vrot.slane %v3057_v17, 2  ;;  %v3067_v28 = vrot.slane %v3066_v59, 2  ;;  %v3076_v1 = vrot.slane %v3075_v56, 2  ;;  %v3085_v34 = vrot.slane %v3084_v60, 2 }
 0x772   :  { %v3041_v47 = vmax.f32 %v3039_v13, %v3040_v8  ;;  %v3050_v0 = vmax.f32 %v3048_v11, %v3049_v52  ;;  %v3094_v53 = vrot.slane %v3093_v15, 2  ;;  %v3103_v30 = vrot.slane %v3102_v22, 2 }
 0x773   :  { %v3059_v38 = vmax.f32 %v3057_v17, %v3058_v14  ;;  %v3068_v51 = vmax.f32 %v3066_v59, %v3067_v28  ;;  %v3077_v12 = vmax.f32 %v3075_v56, %v3076_v1  ;;  %v3086_v16 = vmax.f32 %v3084_v60, %v3085_v34 }
 0x774   :  { %v3042_v35 = vrot.slane %v3041_v47, 1  ;;  %v3051_v31 = vrot.slane %v3050_v0, 1  ;;  %v3095_v20 = vmax.f32 %v3093_v15, %v3094_v53  ;;  %v3104_v54 = vmax.f32 %v3102_v22, %v3103_v30 }
 0x775   :  { %v3060_v36 = vrot.slane %v3059_v38, 1  ;;  %v3069_v10 = vrot.slane %v3068_v51, 1  ;;  %v3078_v6 = vrot.slane %v3077_v12, 1  ;;  %v3087_v46 = vrot.slane %v3086_v16, 1 }
 0x776   :  { %v3043_v4 = vmax.f32 %v3041_v47, %v3042_v35  ;;  %v3052_v26 = vmax.f32 %v3050_v0, %v3051_v31  ;;  %v3096_v25 = vrot.slane %v3095_v20, 1  ;;  %v3105_v63 = vrot.slane %v3104_v54, 1  ;;  %v8066_v0 = vld [vmem:[#allocation76_spill] sm:$0xff] }
 0x777   :  { %v3061_v18 = vmax.f32 %v3059_v38, %v3060_v36  ;;  %v3070_v21 = vmax.f32 %v3068_v51, %v3069_v10  ;;  %v3079_v37 = vmax.f32 %v3077_v12, %v3078_v6  ;;  %v3088_v5 = vmax.f32 %v3086_v16, %v3087_v46  ;;  %v8067_v38 = vld [vmem:[#allocation23_spill] sm:$0xff]  ;;  %v8068_v51 = vld [vmem:[#allocation78_spill] sm:$0xff]  ;;  %v8070_v35 = vld [vmem:[#allocation84_spill] sm:$0xff] }
 0x778   :  { %v3097_v40 = vmax.f32 %v3095_v20, %v3096_v25  ;;  %v3106_v58 = vmax.f32 %v3104_v54, %v3105_v63  ;;  %v3211_v62 = vmul.f32 %v8057_v32, %v3043_v4  ;;  %v8058_v57 = vrot.slane %v8057_v32, 1  ;;  %v8069_v16 = vld [vmem:[#allocation38_spill] sm:$0xff]  ;;  %v8072_v54 = vld [vmem:[#allocation88_spill] sm:$0xff]  ;;  %v8073_v6 = vld [vmem:[#allocation13_spill] sm:$0xff] }
 0x779   :  { %v8059_v45 = vrot.slane %v8057_v32, 2  ;;  %v8060_v29 = vrot.slane %v8057_v32, 3  ;;  %v8061_v3 = vrot.slane %v8057_v32, 4  ;;  %v8062_v13 = vrot.slane %v8057_v32, 5  ;;  %v8071_v20 = vld [vmem:[#allocation54_spill] sm:$0xff]  ;;  %v8074_v4 = vld [vmem:[#allocation12_spill] sm:$0xff] }
 0x77a   :  { %v3212_v43 = vmul.f32 %v8058_v57, %v3052_v26  ;;  %v8063_v39 = vrot.slane %v8057_v32, 6  ;;  %v8064_v17 = vrot.slane %v8057_v32, 7  ;;  %v3227_v56 = vadd.f32 %v3211_v62, %v6978_v24  ;;  %v8075_v25 = vld [vmem:[#allocation26_spill] sm:$0xff]  ;;  %v8079_v57 = vld [vmem:[#allocation33_spill] sm:$0xff] }
 0x77b   :  { %v3213_v2 = vmul.f32 %v8059_v45, %v3061_v18  ;;  %v3214_v27 = vmul.f32 %v8060_v29, %v3070_v21  ;;  %v3215_v49 = vmul.f32 %v8061_v3, %v3079_v37  ;;  %v3216_v11 = vmul.f32 %v8062_v13, %v3088_v5  ;;  %v8076_v21 = vld [vmem:[#allocation41_spill] sm:$0xff]  ;;  %v8080_v45 = vld [vmem:[#allocation48_spill] sm:$0xff]  ;;  %v8082_v3 = vld [vmem:[#allocation27_spill] sm:$0xff] }
 0x77c   :  { %v3217_v41 = vmul.f32 %v8063_v39, %v3097_v40  ;;  %v3218_v59 = vmul.f32 %v8064_v17, %v3106_v58  ;;  %v3228_v60 = vadd.f32 %v3212_v43, %v6981_v23  ;;  %v2204_v12 = vadd.f32 %v8068_v51, %v8067_v38  ;;  %v8077_v5 = vld [vmem:[#allocation17_spill] sm:$0xff]  ;;  %v8078_v58 = vld [vmem:[#allocation20_spill] sm:$0xff] }
 0x77d   :  { %v3229_v8 = vadd.f32 %v3213_v2, %v6984_v42  ;;  %v3230_v52 = vadd.f32 %v3214_v27, %v6987_v19  ;;  %v3231_v15 = vadd.f32 %v3215_v49, %v6990_v7  ;;  %v3232_v22 = vadd.f32 %v3216_v11, %v6993_v55  ;;  %v8081_v29 = vld [vmem:[#allocation25_spill] sm:$0xff]  ;;  %v8083_v13 = vld [vmem:[#allocation40_spill] sm:$0xff] }
 0x77e   :  { %v3233_v14 = vadd.f32 %v3217_v41, %v6996_v61  ;;  %v3234_v28 = vadd.f32 %v3218_v59, %v6999_v48  ;;  %v3371_v1 = vrot.slane %v3228_v60, 7  ;;  %v8065_v48 = vld [vmem:[#allocation24_spill] sm:$0xff]  ;;  %v2205_v31 = vadd.f32 %v8070_v35, %v8069_v16  ;;  %v8084_v39 = vld [vmem:[#allocation57_spill] sm:$0xff] }
 0x77f   :  { %v3374_v34 = vrot.slane %v3229_v8, 6  ;;  %v3377_v47 = vrot.slane %v3230_v52, 5  ;;  %v3380_v23 = vrot.slane %v3231_v15, 4  ;;  %v3383_v42 = vrot.slane %v3232_v22, 3  ;;  %v8085_v17 = vld [vmem:[#allocation32_spill] sm:$0xff]  ;;  %v8087_v8 = vld [vmem:[#allocation51_spill] sm:$0xff] }
 0x780   :  { %v3373_v24 = vsel %vm3372_vm7, %v3371_v1, %v3227_v56  ;;  %v3386_v7 = vrot.slane %v3233_v14, 2  ;;  %v3389_v61 = vrot.slane %v3234_v28, 1  ;;  %v2203_v53 = vadd.f32 %v8066_v0, %v8065_v48  ;;  %v8086_v56 = vld [vmem:[#allocation35_spill] sm:$0xff]  ;;  %v8088_v15 = vld [vmem:[#allocation72_spill] sm:$0xff]  ;;  %v8090_v1 = vld [vmem:[#allocation42_spill] sm:$0xff] }
 0x781   :  { %v3376_v19 = vsel %vm3375_vm9, %v3374_v34, %v3373_v24  ;;  %v2206_v36 = vadd.f32 %v8072_v54, %v8071_v20  ;;  %v2207_v46 = vadd.f32 %v8066_v0, %v8073_v6  ;;  %v2208_v26 = vadd.f32 %v8068_v51, %v8074_v4  ;;  %v8089_v14 = vld [vmem:[#allocation43_spill] sm:$0xff] }
 0x782   :  { %v3379_v55 = vsel %vm3378_vm14, %v3377_v47, %v3376_v19  ;;  %v2209_v63 = vadd.f32 %v8070_v35, %v8075_v25  ;;  %v2210_v37 = vadd.f32 %v8072_v54, %v8076_v21  ;;  %v2211_v40 = vadd.f32 %v8066_v0, %v8077_v5  ;;  %v8091_v47 = vld [vmem:[#allocation56_spill] sm:$0xff] }
 0x783   :  { %v3382_v30 = vsel %vm3381_vm15, %v3380_v23, %v3379_v55  ;;  %v2212_v32 = vadd.f32 %v8068_v51, %v8078_v58  ;;  %v2213_v43 = vadd.f32 %v8070_v35, %v8079_v57  ;;  %v2214_v2 = vadd.f32 %v8072_v54, %v8080_v45  ;;  %v8092_v23 = vld [vmem:[#allocation74_spill] sm:$0xff] }
 0x784   :  { %v3385_v10 = vsel %vm3384_vm8, %v3383_v42, %v3382_v30  ;;  %v2215_v27 = vadd.f32 %v8066_v0, %v8081_v29  ;;  %v2216_v49 = vadd.f32 %v8068_v51, %v8082_v3  ;;  %v2217_v11 = vadd.f32 %v8070_v35, %v8083_v13 }
 0x785   :  { %v3388_v18 = vsel %vm3387_vm4, %v3386_v7, %v3385_v10  ;;  %v2218_v41 = vadd.f32 %v8072_v54, %v8084_v39  ;;  %v2219_v59 = vadd.f32 %v8066_v0, %v8085_v17  ;;  %v2220_v60 = vadd.f32 %v8068_v51, %v8086_v56 }
 0x786   :  { %v3391_v62 = vsel %vm3390_vm0, %v3389_v61, %v3388_v18  ;;  %v2221_v52 = vadd.f32 %v8070_v35, %v8087_v8  ;;  %v2222_v22 = vadd.f32 %v8072_v54, %v8088_v15  ;;  %v2223_v28 = vadd.f32 %v8066_v0, %v8089_v14  ;;  %v8094_v0 = vld [vmem:[#allocation80_spill] sm:$0xff] }
 0x787   :  { %4340 = vmatprep.mubr.f32.mxu0 %v3391_v62  ;;  %v2224_v34 = vadd.f32 %v8068_v51, %v8090_v1  ;;  %v2225_v24 = vadd.f32 %v8070_v35, %v8091_v47  ;;  %v2226_v42 = vadd.f32 %v8072_v54, %v8092_v23  ;;  %v2307_v19 = vmax.f32 %v2203_v53, %v2204_v12  ;;  %v8093_v62 = vld [vmem:[#allocation77_spill] sm:$0xff] }
 0x788   :  { %v2316_v7 = vmax.f32 %v2207_v46, %v2208_v26  ;;  %v2325_v55 = vmax.f32 %v2211_v40, %v2212_v32  ;;  %v2334_v61 = vmax.f32 %v2215_v27, %v2216_v49  ;;  %v2343_v30 = vmax.f32 %v2219_v59, %v2220_v60  ;;  %v8095_v12 = vld [vmem:[#allocation85_spill] sm:$0xff] }
 0x789   :  { %v2308_v10 = vmax.f32 %v2307_v19, %v2205_v31  ;;  %v2352_v18 = vmax.f32 %v2223_v28, %v2224_v34  ;;  %v7145_v44 = vadd.f32 %v8093_v62, %v8065_v48  ;;  %v7149_v51 = vadd.f32 %v8094_v0, %v8067_v38  ;;  %v8096_v31 = vld [vmem:[#allocation89_spill] sm:$0xff] }
 0x78a   :  { %v2317_v33 = vmax.f32 %v2316_v7, %v2209_v63  ;;  %v2326_v35 = vmax.f32 %v2325_v55, %v2213_v43  ;;  %v2335_v9 = vmax.f32 %v2334_v61, %v2217_v11  ;;  %v2344_v50 = vmax.f32 %v2343_v30, %v2221_v52 }
 0x78b   :  { %v2309_v54 = vmax.f32 %v2308_v10, %v2206_v36  ;;  %v2353_v53 = vmax.f32 %v2352_v18, %v2225_v24  ;;  %v7153_v46 = vadd.f32 %v8095_v12, %v8069_v16  ;;  %v7157_v26 = vadd.f32 %v8096_v31, %v8071_v20 }
 0x78c   :  { %v2318_v40 = vmax.f32 %v2317_v33, %v2210_v37  ;;  %v2327_v32 = vmax.f32 %v2326_v35, %v2214_v2  ;;  %v2336_v27 = vmax.f32 %v2335_v9, %v2218_v41  ;;  %v2345_v49 = vmax.f32 %v2344_v50, %v2222_v22 }
 0x78d   :  { %v2310_v59 = vrot.slane %v2309_v54, 4  ;;  %v2354_v60 = vmax.f32 %v2353_v53, %v2226_v42  ;;  %v7161_v63 = vadd.f32 %v8093_v62, %v8073_v6  ;;  %v7165_v36 = vadd.f32 %v8094_v0, %v8074_v4 }
 0x78e   :  { %v2319_v43 = vrot.slane %v2318_v40, 4  ;;  %v2328_v11 = vrot.slane %v2327_v32, 4  ;;  %v2337_v52 = vrot.slane %v2336_v27, 4  ;;  %v2346_v28 = vrot.slane %v2345_v49, 4 }
 0x78f   :  { %v2311_v34 = vmax.f32 %v2309_v54, %v2310_v59  ;;  %v2355_v24 = vrot.slane %v2354_v60, 4  ;;  %v2465_v9 = vadd.f32 %v8095_v12, %v8075_v25  ;;  %v7171_v50 = vadd.f32 %v8096_v31, %v8076_v21 }
 0x790   :  { %v2320_v33 = vmax.f32 %v2318_v40, %v2319_v43  ;;  %v2329_v37 = vmax.f32 %v2327_v32, %v2328_v11  ;;  %v2338_v2 = vmax.f32 %v2336_v27, %v2337_v52  ;;  %v2347_v41 = vmax.f32 %v2345_v49, %v2346_v28 }
 0x791   :  { %v2312_v22 = vrot.slane %v2311_v34, 2  ;;  %v2356_v42 = vmax.f32 %v2354_v60, %v2355_v24  ;;  %v2467_v19 = vadd.f32 %v8093_v62, %v8077_v5  ;;  %v2468_v7 = vadd.f32 %v8094_v0, %v8078_v58 }
 0x792   :  { %v2321_v55 = vrot.slane %v2320_v33, 2  ;;  %v2330_v61 = vrot.slane %v2329_v37, 2  ;;  %v2339_v30 = vrot.slane %v2338_v2, 2  ;;  %v2348_v10 = vrot.slane %v2347_v41, 2 }
 0x793   :  { %v2313_v18 = vmax.f32 %v2311_v34, %v2312_v22  ;;  %v2357_v35 = vrot.slane %v2356_v42, 2  ;;  %v2469_v54 = vadd.f32 %v8095_v12, %v8079_v57  ;;  %v2470_v53 = vadd.f32 %v8096_v31, %v8080_v45 }
 0x794   :  { %v2322_v40 = vmax.f32 %v2320_v33, %v2321_v55  ;;  %v2331_v32 = vmax.f32 %v2329_v37, %v2330_v61  ;;  %v2340_v27 = vmax.f32 %v2338_v2, %v2339_v30  ;;  %v2349_v49 = vmax.f32 %v2347_v41, %v2348_v10  ;;  %v8097_v30 = vld [vmem:[#allocation64_spill] sm:$0xff] }
 0x795   :  { %v2314_v59 = vrot.slane %v2313_v18, 1  ;;  %v2358_v60 = vmax.f32 %v2356_v42, %v2357_v35  ;;  %v2471_v43 = vadd.f32 %v8093_v62, %v8081_v29  ;;  %v2472_v11 = vadd.f32 %v8094_v0, %v8082_v3 }
 0x796   :  { %v2323_v52 = vrot.slane %v2322_v40, 1  ;;  %v2332_v28 = vrot.slane %v2331_v32, 1  ;;  %v2341_v34 = vrot.slane %v2340_v27, 1  ;;  %v2350_v24 = vrot.slane %v2349_v49, 1 }
 0x797   :  { %v2315_v22 = vmax.f32 %v2313_v18, %v2314_v59  ;;  %v2359_v57 = vrot.slane %v2358_v60, 1  ;;  %v2473_v33 = vadd.f32 %v8095_v12, %v8083_v13  ;;  %v2474_v37 = vadd.f32 %v8096_v31, %v8084_v39 }
 0x798   :  { %v2324_v2 = vmax.f32 %v2322_v40, %v2323_v52  ;;  %v2333_v41 = vmax.f32 %v2331_v32, %v2332_v28  ;;  %v2342_v42 = vmax.f32 %v2340_v27, %v2341_v34  ;;  %v2351_v55 = vmax.f32 %v2349_v49, %v2350_v24 }
 0x799   :  { %v2360_v61 = vmax.f32 %v2358_v60, %v2359_v57  ;;  %v7190_v10 = vmul.f32 %v8097_v30, %v2315_v22  ;;  %v2475_v35 = vadd.f32 %v8093_v62, %v8085_v17  ;;  %v2476_v18 = vadd.f32 %v8094_v0, %v8086_v56 }
 0x79a   :  { %v8098_v59 = vrot.slane %v8097_v30, 1  ;;  %v8099_v39 = vrot.slane %v8097_v30, 2  ;;  %v8100_v32 = vrot.slane %v8097_v30, 3  ;;  %v8101_v27 = vrot.slane %v8097_v30, 4 }
 0x79b   :  { %v8102_v60 = vrot.slane %v8097_v30, 5  ;;  %v2477_v28 = vadd.f32 %v8095_v12, %v8087_v8  ;;  %v2478_v34 = vadd.f32 %v8096_v31, %v8088_v15  ;;  %v2480_v24 = vadd.f32 %v8094_v0, %v8090_v1  ;;  %v8104_v0 = vld [vmem:[#allocation99_spill] sm:$0xff] }
 0x79c   :  { %v7198_v13 = vmul.f32 %v8098_v59, %v2324_v2  ;;  %v7202_v40 = vmul.f32 %v8099_v39, %v2333_v41  ;;  %v7206_v57 = vmul.f32 %v8100_v32, %v2342_v42  ;;  %v7210_v49 = vmul.f32 %v8101_v27, %v2351_v55  ;;  %v8103_v32 = vld [vmem:[#allocation97_spill] sm:$0xff] }
 0x79d   :  { %v7214_v52 = vmul.f32 %v8102_v60, %v2360_v61  ;;  %v2479_v39 = vadd.f32 %v8093_v62, %v8089_v14  ;;  %v2481_v22 = vadd.f32 %v8095_v12, %v8091_v47  ;;  %v2482_v2 = vadd.f32 %v8096_v31, %v8092_v23  ;;  %v8105_v12 = vld [vmem:[#allocation96_spill] sm:$0xff]  ;;  %v8106_v60 = vld [vmem:[#allocation98_spill] sm:$0xff] }
 0x79e   :  { %v2563_v41 = vmax.f32 %v7145_v44, %v7149_v51  ;;  %v2572_v42 = vmax.f32 %v7161_v63, %v7165_v36  ;;  %v2581_v55 = vmax.f32 %v2467_v19, %v2468_v7  ;;  %v2590_v61 = vmax.f32 %v2471_v43, %v2472_v11  ;;  %v8107_v19 = vld [vmem:[#allocation90_spill] sm:$0xff] }
 0x79f   :  { %v2599_v30 = vmax.f32 %v2475_v35, %v2476_v18  ;;  %v2608_v59 = vmax.f32 %v2479_v39, %v2480_v24  ;;  %v7235_v27 = vadd.f32 %v8104_v0, %v8103_v32  ;;  %v7239_v47 = vadd.f32 %v8106_v60, %v8105_v12 }
 0x7a0   :  { %v2564_v62 = vmax.f32 %v2563_v41, %v7153_v46  ;;  %v2573_v31 = vmax.f32 %v2572_v42, %v2465_v9  ;;  %v2582_v23 = vmax.f32 %v2581_v55, %v2469_v54  ;;  %v2591_v44 = vmax.f32 %v2590_v61, %v2473_v33  ;;  %v8108_v46 = vld [vmem:[#allocation92_spill] sm:$0xff]  ;;  %v8109_v33 = vld [vmem:[#allocation94_spill] sm:$0xff] }
 0x7a1   :  { %v2600_v51 = vmax.f32 %v2599_v30, %v2477_v28  ;;  %v2609_v36 = vmax.f32 %v2608_v59, %v2481_v22  ;;  %v7244_v7 = vadd.f32 %v8107_v19, %v8065_v48  ;;  %v7248_v43 = vadd.f32 %v8108_v46, %v8067_v38 }
 0x7a2   :  { %v2565_v63 = vmax.f32 %v2564_v62, %v7157_v26  ;;  %v2574_v11 = vmax.f32 %v2573_v31, %v7171_v50  ;;  %v2583_v35 = vmax.f32 %v2582_v23, %v2470_v53  ;;  %v2592_v18 = vmax.f32 %v2591_v44, %v2474_v37  ;;  %v8110_v26 = vld [vmem:[#allocation63_spill] sm:$0xff] }
 0x7a3   :  { %v2601_v39 = vmax.f32 %v2600_v51, %v2478_v34  ;;  %v2610_v54 = vmax.f32 %v2609_v36, %v2482_v2  ;;  %v7253_v28 = vadd.f32 %v8109_v33, %v8069_v16  ;;  %v7257_v24 = vadd.f32 %v8110_v26, %v8071_v20 }
 0x7a4   :  { %v2566_v9 = vrot.slane %v2565_v63, 4  ;;  %v2575_v22 = vrot.slane %v2574_v11, 4  ;;  %v2584_v41 = vrot.slane %v2583_v35, 4  ;;  %v2593_v42 = vrot.slane %v2592_v18, 4 }
 0x7a5   :  { %v2602_v55 = vrot.slane %v2601_v39, 4  ;;  %v2611_v30 = vrot.slane %v2610_v54, 4  ;;  %v7261_v23 = vadd.f32 %v8107_v19, %v8073_v6  ;;  %v7265_v50 = vadd.f32 %v8108_v46, %v8074_v4 }
 0x7a6   :  { %v2567_v61 = vmax.f32 %v2565_v63, %v2566_v9  ;;  %v2576_v53 = vmax.f32 %v2574_v11, %v2575_v22  ;;  %v2585_v37 = vmax.f32 %v2583_v35, %v2584_v41  ;;  %v2594_v34 = vmax.f32 %v2592_v18, %v2593_v42  ;;  %v8111_v41 = vld [vmem:[#allocation33_spill] sm:$0xff] }
 0x7a7   :  { %v2603_v2 = vmax.f32 %v2601_v39, %v2602_v55  ;;  %v2612_v59 = vmax.f32 %v2610_v54, %v2611_v30  ;;  %v7269_v32 = vadd.f32 %v8109_v33, %v8075_v25  ;;  %v7273_v0 = vadd.f32 %v8110_v26, %v8076_v21 }
 0x7a8   :  { %v2568_v62 = vrot.slane %v2567_v61, 2  ;;  %v2577_v12 = vrot.slane %v2576_v53, 2  ;;  %v2586_v60 = vrot.slane %v2585_v37, 2  ;;  %v2595_v31 = vrot.slane %v2594_v34, 2 }
 0x7a9   :  { %v2604_v44 = vrot.slane %v2603_v2, 2  ;;  %v2613_v63 = vrot.slane %v2612_v59, 2  ;;  %v7277_v36 = vadd.f32 %v8107_v19, %v8077_v5  ;;  %v7281_v11 = vadd.f32 %v8108_v46, %v8078_v58 }
 0x7aa   :  { %v2569_v51 = vmax.f32 %v2567_v61, %v2568_v62  ;;  %v2578_v35 = vmax.f32 %v2576_v53, %v2577_v12  ;;  %v2587_v18 = vmax.f32 %v2585_v37, %v2586_v60  ;;  %v2596_v39 = vmax.f32 %v2594_v34, %v2595_v31  ;;  %v8112_v31 = vld [vmem:[#allocation67_spill] sm:$0xff] }
 0x7ab   :  { %v2605_v9 = vmax.f32 %v2603_v2, %v2604_v44  ;;  %v2614_v22 = vmax.f32 %v2612_v59, %v2613_v63  ;;  %v2741_v42 = vadd.f32 %v8109_v33, %v8111_v41  ;;  %v2742_v55 = vadd.f32 %v8110_v26, %v8080_v45  ;;  %v8113_v63 = vld [vmem:[#allocation40_spill] sm:$0xff]  ;;  %v8114_v41 = vld [vmem:[#allocation57_spill] sm:$0xff] }
 0x7ac   :  { %v2570_v54 = vrot.slane %v2569_v51, 1  ;;  %v2579_v61 = vrot.slane %v2578_v35, 1  ;;  %v2588_v30 = vrot.slane %v2587_v18, 1  ;;  %v2597_v62 = vrot.slane %v2596_v39, 1 }
 0x7ad   :  { %v2606_v5 = vrot.slane %v2605_v9, 1  ;;  %v2615_v25 = vrot.slane %v2614_v22, 1  ;;  %v2743_v53 = vadd.f32 %v8107_v19, %v8081_v29  ;;  %v2744_v37 = vadd.f32 %v8108_v46, %v8082_v3 }
 0x7ae   :  { %v2571_v21 = vmax.f32 %v2569_v51, %v2570_v54  ;;  %v2580_v34 = vmax.f32 %v2578_v35, %v2579_v61  ;;  %v2589_v2 = vmax.f32 %v2587_v18, %v2588_v30  ;;  %v2598_v59 = vmax.f32 %v2596_v39, %v2597_v62 }
 0x7af   :  { %v2607_v12 = vmax.f32 %v2605_v9, %v2606_v5  ;;  %v2616_v60 = vmax.f32 %v2614_v22, %v2615_v25  ;;  %v2745_v45 = vadd.f32 %v8109_v33, %v8113_v63  ;;  %v2746_v51 = vadd.f32 %v8110_v26, %v8114_v41 }
 0x7b0   :  { %v2675_v44 = vmul.f32 %v8112_v31, %v2571_v21  ;;  %v8115_v54 = vrot.slane %v8112_v31, 1  ;;  %v8116_v29 = vrot.slane %v8112_v31, 2  ;;  %v8117_v35 = vrot.slane %v8112_v31, 3 }
 0x7b1   :  { %v8118_v5 = vrot.slane %v8112_v31, 4  ;;  %v8119_v21 = vrot.slane %v8112_v31, 5  ;;  %v2747_v22 = vadd.f32 %v8107_v19, %v8085_v17  ;;  %v2748_v61 = vadd.f32 %v8108_v46, %v8086_v56 }
 0x7b2   :  { %v2676_v58 = vmul.f32 %v8115_v54, %v2580_v34  ;;  %v2677_v4 = vmul.f32 %v8116_v29, %v2589_v2  ;;  %v2678_v18 = vmul.f32 %v8117_v35, %v2598_v59  ;;  %v7307_v9 = vadd.f32 %v2675_v44, %v7190_v10  ;;  %v8124_v44 = vld [vmem:[#allocation70_spill] sm:$0xff]  ;;  %v8125_v35 = vld [vmem:[#allocation87_spill] sm:$0xff] }
 0x7b3   :  { %v2679_v25 = vmul.f32 %v8118_v5, %v2607_v12  ;;  %v2680_v39 = vmul.f32 %v8119_v21, %v2616_v60  ;;  %v2749_v2 = vadd.f32 %v8109_v33, %v8087_v8  ;;  %v2750_v59 = vadd.f32 %v8110_v26, %v8088_v15  ;;  %v8123_v60 = vld [vmem:[#allocation53_spill] sm:$0xff]  ;;  %v8126_v5 = vld [vmem:[#allocation60_spill] sm:$0xff]  ;;  %v8127_v21 = vld [vmem:[#allocation58_spill] sm:$0xff] }
 0x7b4   :  { %v7314_v29 = vadd.f32 %v2676_v58, %v7198_v13  ;;  %v7317_v30 = vadd.f32 %v2677_v4, %v7202_v40  ;;  %v7320_v62 = vadd.f32 %v2678_v18, %v7206_v57  ;;  %v2751_v58 = vadd.f32 %v8107_v19, %v8089_v14  ;;  %v8120_v13 = vld [vmem:[#allocation56_spill] sm:$0xff]  ;;  %v8121_v57 = vld [vmem:[#allocation74_spill] sm:$0xff] }
 0x7b5   :  { %v7323_v34 = vadd.f32 %v2679_v25, %v7210_v49  ;;  %v7326_v10 = vadd.f32 %v2680_v39, %v7214_v52  ;;  %v2752_v4 = vadd.f32 %v8108_v46, %v8090_v1  ;;  %v2753_v40 = vadd.f32 %v8109_v33, %v8120_v13  ;;  %v8122_v52 = vld [vmem:[#allocation50_spill] sm:$0xff]  ;;  %v8128_v13 = vld [vmem:[#allocation81_spill] sm:$0xff] }
 0x7b6   :  { %v2754_v49 = vadd.f32 %v8110_v26, %v8121_v57  ;;  %v2755_v12 = vadd.f32 %v8107_v19, %v8122_v52  ;;  %v2756_v31 = vadd.f32 %v8108_v46, %v8123_v60  ;;  %v2757_v54 = vadd.f32 %v8109_v33, %v8124_v44  ;;  %v8129_v1 = vld [vmem:[#allocation86_spill] sm:$0xff] }
 0x7b7   :  { %v2758_v18 = vadd.f32 %v8110_v26, %v8125_v35  ;;  %v2759_v25 = vadd.f32 %v8107_v19, %v8126_v5  ;;  %v2760_v39 = vadd.f32 %v8108_v46, %v8127_v21  ;;  %v2761_v57 = vadd.f32 %v8109_v33, %v8128_v13 }
 0x7b8   :  { %v2762_v52 = vadd.f32 %v8110_v26, %v8129_v1  ;;  %v2835_v60 = vmax.f32 %v7244_v7, %v7248_v43  ;;  %v2844_v44 = vmax.f32 %v7261_v23, %v7265_v50  ;;  %v2853_v35 = vmax.f32 %v7277_v36, %v7281_v11 }
 0x7b9   :  { %v2862_v14 = vmax.f32 %v2743_v53, %v2744_v37  ;;  %v2871_v19 = vmax.f32 %v2747_v22, %v2748_v61  ;;  %v2880_v46 = vmax.f32 %v2751_v58, %v2752_v4  ;;  %v2889_v21 = vmax.f32 %v2755_v12, %v2756_v31 }
 0x7ba   :  { %v2836_v5 = vmax.f32 %v2835_v60, %v7253_v28  ;;  %v2898_v15 = vmax.f32 %v2759_v25, %v2760_v39  ;;  %v2845_v33 = vmax.f32 %v2844_v44, %v7269_v32  ;;  %v2854_v13 = vmax.f32 %v2853_v35, %v2741_v42 }
 0x7bb   :  { %v2863_v26 = vmax.f32 %v2862_v14, %v2745_v45  ;;  %v2872_v1 = vmax.f32 %v2871_v19, %v2749_v2  ;;  %v2881_v43 = vmax.f32 %v2880_v46, %v2753_v40  ;;  %v2890_v8 = vmax.f32 %v2889_v21, %v2757_v54 }
 0x7bc   :  { %v2837_v7 = vmax.f32 %v2836_v5, %v7257_v24  ;;  %v2899_v23 = vmax.f32 %v2898_v15, %v2761_v57  ;;  %v2846_v50 = vmax.f32 %v2845_v33, %v7273_v0  ;;  %v2855_v36 = vmax.f32 %v2854_v13, %v2742_v55 }
 0x7bd   :  { %v2864_v11 = vmax.f32 %v2863_v26, %v2746_v51  ;;  %v2873_v53 = vmax.f32 %v2872_v1, %v2750_v59  ;;  %v2882_v28 = vmax.f32 %v2881_v43, %v2754_v49  ;;  %v2891_v22 = vmax.f32 %v2890_v8, %v2758_v18 }
 0x7be   :  { %v2838_v37 = vrot.slane %v2837_v7, 4  ;;  %v2900_v61 = vmax.f32 %v2899_v23, %v2762_v52  ;;  %v2847_v58 = vrot.slane %v2846_v50, 4  ;;  %v2856_v4 = vrot.slane %v2855_v36, 4 }
 0x7bf   :  { %v2865_v32 = vrot.slane %v2864_v11, 4  ;;  %v2874_v42 = vrot.slane %v2873_v53, 4  ;;  %v2883_v14 = vrot.slane %v2882_v28, 4  ;;  %v2892_v2 = vrot.slane %v2891_v22, 4 }
 0x7c0   :  { %v2839_v45 = vmax.f32 %v2837_v7, %v2838_v37  ;;  %v2901_v24 = vrot.slane %v2900_v61, 4  ;;  %v2848_v40 = vmax.f32 %v2846_v50, %v2847_v58  ;;  %v2857_v12 = vmax.f32 %v2855_v36, %v2856_v4  ;;  %v8130_v4 = vld [vmem:[#allocation71_spill] sm:$0xff] }
 0x7c1   :  { %v2866_v15 = vmax.f32 %v2864_v11, %v2865_v32  ;;  %v2875_v57 = vmax.f32 %v2873_v53, %v2874_v42  ;;  %v2884_v55 = vmax.f32 %v2882_v28, %v2883_v14  ;;  %v2893_v51 = vmax.f32 %v2891_v22, %v2892_v2 }
 0x7c2   :  { %v2840_v0 = vrot.slane %v2839_v45, 2  ;;  %v2902_v1 = vmax.f32 %v2900_v61, %v2901_v24  ;;  %v2849_v59 = vrot.slane %v2848_v40, 2  ;;  %v2858_v13 = vrot.slane %v2857_v12, 2 }
 0x7c3   :  { %v2867_v8 = vrot.slane %v2866_v15, 2  ;;  %v2876_v49 = vrot.slane %v2875_v57, 2  ;;  %v2885_v60 = vrot.slane %v2884_v55, 2  ;;  %v2894_v31 = vrot.slane %v2893_v51, 2 }
 0x7c4   :  { %v2841_v52 = vmax.f32 %v2839_v45, %v2840_v0  ;;  %v2903_v44 = vrot.slane %v2902_v1, 2  ;;  %v2850_v54 = vmax.f32 %v2848_v40, %v2849_v59  ;;  %v2859_v35 = vmax.f32 %v2857_v12, %v2858_v13 }
 0x7c5   :  { %v2868_v18 = vmax.f32 %v2866_v15, %v2867_v8  ;;  %v2877_v5 = vmax.f32 %v2875_v57, %v2876_v49  ;;  %v2886_v21 = vmax.f32 %v2884_v55, %v2885_v60  ;;  %v2895_v39 = vmax.f32 %v2893_v51, %v2894_v31 }
 0x7c6   :  { %v2842_v25 = vrot.slane %v2841_v52, 1  ;;  %v2904_v19 = vmax.f32 %v2902_v1, %v2903_v44  ;;  %v2851_v46 = vrot.slane %v2850_v54, 1  ;;  %v2860_v33 = vrot.slane %v2859_v35, 1 }
 0x7c7   :  { %v2869_v26 = vrot.slane %v2868_v18, 1  ;;  %v2878_v7 = vrot.slane %v2877_v5, 1  ;;  %v2887_v23 = vrot.slane %v2886_v21, 1  ;;  %v2896_v50 = vrot.slane %v2895_v39, 1 }
 0x7c8   :  { %v2843_v43 = vmax.f32 %v2841_v52, %v2842_v25  ;;  %v2905_v36 = vrot.slane %v2904_v19, 1  ;;  %v2852_v11 = vmax.f32 %v2850_v54, %v2851_v46  ;;  %v2861_v53 = vmax.f32 %v2859_v35, %v2860_v33  ;;  %v8146_v46 = vld [vmem:[#allocation20_spill] sm:$0xff]  ;;  %v8147_v33 = vld [vmem:[#allocation33_spill] sm:$0xff] }
 0x7c9   :  { %v2870_v37 = vmax.f32 %v2868_v18, %v2869_v26  ;;  %v2879_v28 = vmax.f32 %v2877_v5, %v2878_v7  ;;  %v2888_v22 = vmax.f32 %v2886_v21, %v2887_v23  ;;  %v2897_v61 = vmax.f32 %v2895_v39, %v2896_v50  ;;  %v8144_v39 = vld [vmem:[#allocation41_spill] sm:$0xff]  ;;  %v8148_v26 = vld [vmem:[#allocation48_spill] sm:$0xff] }
 0x7ca   :  { %v2906_v58 = vmax.f32 %v2904_v19, %v2905_v36  ;;  %v2947_v32 = vmul.f32 %v8130_v4, %v2843_v43  ;;  %v8131_v42 = vrot.slane %v8130_v4, 1  ;;  %v8132_v14 = vrot.slane %v8130_v4, 2  ;;  %v8145_v19 = vld [vmem:[#allocation17_spill] sm:$0xff] }
 0x7cb   :  { %v8133_v24 = vrot.slane %v8130_v4, 3  ;;  %v8134_v12 = vrot.slane %v8130_v4, 4  ;;  %v8135_v57 = vrot.slane %v8130_v4, 5  ;;  %v8136_v55 = vrot.slane %v8130_v4, 6  ;;  %v8149_v7 = vld [vmem:[#allocation25_spill] sm:$0xff] }
 0x7cc   :  { %v2948_v45 = vmul.f32 %v8131_v42, %v2852_v11  ;;  %v2949_v2 = vmul.f32 %v8132_v14, %v2861_v53  ;;  %v8137_v1 = vrot.slane %v8130_v4, 7  ;;  %v7382_v13 = vadd.f32 %v2947_v32, %v7307_v9  ;;  %v8153_v4 = vld [vmem:[#allocation42_spill] sm:$0xff]  ;;  %v8154_v32 = vld [vmem:[#allocation56_spill] sm:$0xff]  ;;  %v8157_v14 = vld [vmem:[#allocation53_spill] sm:$0xff] }
 0x7cd   :  { %v2950_v40 = vmul.f32 %v8133_v24, %v2870_v37  ;;  %v2951_v15 = vmul.f32 %v8134_v12, %v2879_v28  ;;  %v2952_v0 = vmul.f32 %v8135_v57, %v2888_v22  ;;  %v2953_v51 = vmul.f32 %v8136_v55, %v2897_v61  ;;  %v8150_v37 = vld [vmem:[#allocation51_spill] sm:$0xff]  ;;  %v8151_v22 = vld [vmem:[#allocation72_spill] sm:$0xff]  ;;  %v8155_v42 = vld [vmem:[#allocation74_spill] sm:$0xff] }
 0x7ce   :  { %v2954_v59 = vmul.f32 %v8137_v1, %v2906_v58  ;;  %v7385_v8 = vadd.f32 %v2948_v45, %v7314_v29  ;;  %v7388_v49 = vadd.f32 %v2949_v2, %v7317_v30  ;;  %v8138_v29 = vld [vmem:[#allocation91_spill] sm:$0xff]  ;;  %v8139_v30 = vld [vmem:[#allocation93_spill] sm:$0xff]  ;;  %v8156_v45 = vld [vmem:[#allocation50_spill] sm:$0xff] }
 0x7cf   :  { %v7391_v52 = vadd.f32 %v2950_v40, %v7320_v62  ;;  %v7394_v60 = vadd.f32 %v2951_v15, %v7323_v34  ;;  %v7397_v31 = vadd.f32 %v2952_v0, %v7326_v10  ;;  %v7400_v44 = vadd.f32 %v2953_v51, %v7235_v27  ;;  %v8140_v62 = vld [vmem:[#allocation95_spill] sm:$0xff]  ;;  %v8141_v34 = vld [vmem:[#allocation61_spill] sm:$0xff]  ;;  %v8142_v27 = vld [vmem:[#allocation12_spill] sm:$0xff] }
 0x7d0   :  { %v7403_v9 = vadd.f32 %v2954_v59, %v7239_v47  ;;  %v3003_v54 = vadd.f32 %v8138_v29, %v8065_v48  ;;  %v3004_v35 = vadd.f32 %v8139_v30, %v8067_v38  ;;  %v3005_v18 = vadd.f32 %v8140_v62, %v8069_v16  ;;  %v8143_v47 = vld [vmem:[#allocation26_spill] sm:$0xff]  ;;  %v8152_v58 = vld [vmem:[#allocation43_spill] sm:$0xff]  ;;  %v8160_v57 = vld [vmem:[#allocation60_spill] sm:$0xff] }
 0x7d1   :  { %v3006_v5 = vadd.f32 %v8141_v34, %v8071_v20  ;;  %v3007_v10 = vadd.f32 %v8138_v29, %v8073_v6  ;;  %v3008_v25 = vadd.f32 %v8139_v30, %v8142_v27  ;;  %v3009_v21 = vadd.f32 %v8140_v62, %v8143_v47  ;;  %v8158_v24 = vld [vmem:[#allocation70_spill] sm:$0xff]  ;;  %v8159_v12 = vld [vmem:[#allocation87_spill] sm:$0xff]  ;;  %v8162_v1 = vld [vmem:[#allocation81_spill] sm:$0xff] }
 0x7d2   :  { %v3010_v48 = vadd.f32 %v8141_v34, %v8144_v39  ;;  %v3011_v38 = vadd.f32 %v8138_v29, %v8145_v19  ;;  %v3012_v16 = vadd.f32 %v8139_v30, %v8146_v46  ;;  %v3013_v20 = vadd.f32 %v8140_v62, %v8147_v33  ;;  %v8161_v55 = vld [vmem:[#allocation58_spill] sm:$0xff] }
 0x7d3   :  { %v3014_v6 = vadd.f32 %v8141_v34, %v8148_v26  ;;  %v3015_v43 = vadd.f32 %v8138_v29, %v8149_v7  ;;  %v3016_v23 = vadd.f32 %v8139_v30, %v8082_v3  ;;  %v3017_v50 = vadd.f32 %v8140_v62, %v8113_v63  ;;  %v8163_v27 = vld [vmem:[#allocation86_spill] sm:$0xff] }
 0x7d4   :  { %v3018_v36 = vadd.f32 %v8141_v34, %v8114_v41  ;;  %v3019_v11 = vadd.f32 %v8138_v29, %v8085_v17  ;;  %v3020_v53 = vadd.f32 %v8139_v30, %v8086_v56  ;;  %v3021_v28 = vadd.f32 %v8140_v62, %v8150_v37 }
 0x7d5   :  { %v3022_v61 = vadd.f32 %v8141_v34, %v8151_v22  ;;  %v3023_v3 = vadd.f32 %v8138_v29, %v8152_v58  ;;  %v3024_v63 = vadd.f32 %v8139_v30, %v8153_v4  ;;  %v3025_v41 = vadd.f32 %v8140_v62, %v8154_v32 }
 0x7d6   :  { %v3026_v17 = vadd.f32 %v8141_v34, %v8155_v42  ;;  %v3027_v56 = vadd.f32 %v8138_v29, %v8156_v45  ;;  %v3028_v2 = vadd.f32 %v8139_v30, %v8157_v14  ;;  %v3029_v40 = vadd.f32 %v8140_v62, %v8158_v24 }
 0x7d7   :  { %v3030_v15 = vadd.f32 %v8141_v34, %v8159_v12  ;;  %v3031_v0 = vadd.f32 %v8138_v29, %v8160_v57  ;;  %v3032_v51 = vadd.f32 %v8139_v30, %v8161_v55  ;;  %v3033_v59 = vadd.f32 %v8140_v62, %v8162_v1 }
 0x7d8   :  { %v3034_v47 = vadd.f32 %v8141_v34, %v8163_v27  ;;  %v3107_v39 = vmax.f32 %v3003_v54, %v3004_v35  ;;  %v3116_v19 = vmax.f32 %v3007_v10, %v3008_v25  ;;  %v3125_v46 = vmax.f32 %v3011_v38, %v3012_v16 }
 0x7d9   :  { %v3134_v33 = vmax.f32 %v3015_v43, %v3016_v23  ;;  %v3143_v26 = vmax.f32 %v3019_v11, %v3020_v53  ;;  %v3152_v37 = vmax.f32 %v3023_v3, %v3024_v63  ;;  %v3161_v22 = vmax.f32 %v3027_v56, %v3028_v2 }
 0x7da   :  { %v3108_v7 = vmax.f32 %v3107_v39, %v3005_v18  ;;  %v3170_v58 = vmax.f32 %v3031_v0, %v3032_v51  ;;  %v3117_v4 = vmax.f32 %v3116_v19, %v3009_v21  ;;  %v3126_v29 = vmax.f32 %v3125_v46, %v3013_v20 }
 0x7db   :  { %v3135_v32 = vmax.f32 %v3134_v33, %v3017_v50  ;;  %v3144_v42 = vmax.f32 %v3143_v26, %v3021_v28  ;;  %v3153_v45 = vmax.f32 %v3152_v37, %v3025_v41  ;;  %v3162_v14 = vmax.f32 %v3161_v22, %v3029_v40 }
 0x7dc   :  { %v3109_v30 = vmax.f32 %v3108_v7, %v3006_v5  ;;  %v3171_v62 = vmax.f32 %v3170_v58, %v3033_v59  ;;  %v3118_v24 = vmax.f32 %v3117_v4, %v3010_v48  ;;  %v3127_v12 = vmax.f32 %v3126_v29, %v3014_v6 }
 0x7dd   :  { %v3136_v34 = vmax.f32 %v3135_v32, %v3018_v36  ;;  %v3145_v54 = vmax.f32 %v3144_v42, %v3022_v61  ;;  %v3154_v10 = vmax.f32 %v3153_v45, %v3026_v17  ;;  %v3163_v25 = vmax.f32 %v3162_v14, %v3030_v15 }
 0x7de   :  { %v3110_v35 = vrot.slane %v3109_v30, 4  ;;  %v3172_v38 = vmax.f32 %v3171_v62, %v3034_v47  ;;  %v3119_v18 = vrot.slane %v3118_v24, 4  ;;  %v3128_v16 = vrot.slane %v3127_v12, 4  ;;  %v8164_v62 = vld [vmem:[#allocation73_spill] sm:$0xff] }
 0x7df   :  { %v3137_v43 = vrot.slane %v3136_v34, 4  ;;  %v3146_v23 = vrot.slane %v3145_v54, 4  ;;  %v3155_v20 = vrot.slane %v3154_v10, 4  ;;  %v3164_v50 = vrot.slane %v3163_v25, 4 }
 0x7e0   :  { %v3111_v21 = vmax.f32 %v3109_v30, %v3110_v35  ;;  %v3173_v11 = vrot.slane %v3172_v38, 4  ;;  %v3120_v5 = vmax.f32 %v3118_v24, %v3119_v18  ;;  %v3129_v53 = vmax.f32 %v3127_v12, %v3128_v16  ;;  %v3487_v16 = vld [vmem:[%s7593_s18] sm:$0xff] }
 0x7e1   :  { %v3138_v28 = vmax.f32 %v3136_v34, %v3137_v43  ;;  %v3147_v3 = vmax.f32 %v3145_v54, %v3146_v23  ;;  %v3156_v6 = vmax.f32 %v3154_v10, %v3155_v20  ;;  %v3165_v36 = vmax.f32 %v3163_v25, %v3164_v50  ;;  %v3488_v43 = vld [vmem:[%s7593_s18 + $0x8] sm:$0xff] }
 0x7e2   :  { %v3112_v48 = vrot.slane %v3111_v21, 2  ;;  %v3174_v61 = vmax.f32 %v3172_v38, %v3173_v11  ;;  %v3121_v63 = vrot.slane %v3120_v5, 2  ;;  %v3130_v41 = vrot.slane %v3129_v53, 2 }
 0x7e3   :  { %v3139_v17 = vrot.slane %v3138_v28, 2  ;;  %v3148_v56 = vrot.slane %v3147_v3, 2  ;;  %v3157_v40 = vrot.slane %v3156_v6, 2  ;;  %v3166_v15 = vrot.slane %v3165_v36, 2 }
 0x7e4   :  { %v3113_v2 = vmax.f32 %v3111_v21, %v3112_v48  ;;  %v3175_v57 = vrot.slane %v3174_v61, 2  ;;  %v3122_v0 = vmax.f32 %v3120_v5, %v3121_v63  ;;  %v3131_v55 = vmax.f32 %v3129_v53, %v3130_v41 }
 0x7e5   :  { %v3140_v51 = vmax.f32 %v3138_v28, %v3139_v17  ;;  %v3149_v1 = vmax.f32 %v3147_v3, %v3148_v56  ;;  %v3158_v27 = vmax.f32 %v3156_v6, %v3157_v40  ;;  %v3167_v47 = vmax.f32 %v3165_v36, %v3166_v15  ;;  %v3489_v36 = vld [vmem:[%s7593_s18 + $0x10] sm:$0xff] }
 0x7e6   :  { %v3114_v59 = vrot.slane %v3113_v2, 1  ;;  %v3176_v39 = vmax.f32 %v3174_v61, %v3175_v57  ;;  %v3123_v19 = vrot.slane %v3122_v0, 1  ;;  %v3132_v46 = vrot.slane %v3131_v55, 1  ;;  %v3490_v61 = vld [vmem:[%s7593_s18 + $0x18] sm:$0xff] }
 0x7e7   :  { %v3141_v33 = vrot.slane %v3140_v51, 1  ;;  %v3150_v26 = vrot.slane %v3149_v1, 1  ;;  %v3159_v37 = vrot.slane %v3158_v27, 1  ;;  %v3168_v22 = vrot.slane %v3167_v47, 1 }
 0x7e8   :  { %v3115_v7 = vmax.f32 %v3113_v2, %v3114_v59  ;;  %v3177_v58 = vrot.slane %v3176_v39, 1  ;;  %v3124_v4 = vmax.f32 %v3122_v0, %v3123_v19  ;;  %v3133_v29 = vmax.f32 %v3131_v55, %v3132_v46  ;;  %v3678_v46 = vld [vmem:[%s7596_s21] sm:$0xff] }
 0x7e9   :  { %v3142_v32 = vmax.f32 %v3140_v51, %v3141_v33  ;;  %v3151_v42 = vmax.f32 %v3149_v1, %v3150_v26  ;;  %v3160_v30 = vmax.f32 %v3158_v27, %v3159_v37  ;;  %v3169_v45 = vmax.f32 %v3167_v47, %v3168_v22  ;;  %v3493_v47 = vld [vmem:[%s7593_s18 + $0x30] sm:$0xff]  ;;  %v3679_v33 = vld [vmem:[%s7596_s21 + $0x8] sm:$0xff]  ;;  %v3681_v37 = vld [vmem:[%s7596_s21 + $0x18] sm:$0xff] }
 0x7ea   :  { %v3178_v14 = vmax.f32 %v3176_v39, %v3177_v58  ;;  %v3219_v24 = vmul.f32 %v8164_v62, %v3115_v7  ;;  %v8165_v12 = vrot.slane %v8164_v62, 1  ;;  %v8166_v54 = vrot.slane %v8164_v62, 2  ;;  %v3494_v39 = vld [vmem:[%s7593_s18 + $0x38] sm:$0xff]  ;;  %v3680_v26 = vld [vmem:[%s7596_s21 + $0x10] sm:$0xff]  ;;  %v3682_v58 = vld [vmem:[%s7596_s21 + $0x20] sm:$0xff] }
 0x7eb   :  { %v8167_v10 = vrot.slane %v8164_v62, 3  ;;  %v8168_v38 = vrot.slane %v8164_v62, 4  ;;  %v8169_v23 = vrot.slane %v8164_v62, 5  ;;  %v8170_v20 = vrot.slane %v8164_v62, 6 }
 0x7ec   :  { %v3220_v34 = vmul.f32 %v8165_v12, %v3124_v4  ;;  %v3221_v35 = vmul.f32 %v8166_v54, %v3133_v29  ;;  %v8171_v11 = vrot.slane %v8164_v62, 7  ;;  %v3235_v53 = vadd.f32 %v3219_v24, %v7382_v13  ;;  %v3683_v4 = vld [vmem:[%s7596_s21 + $0x28] sm:$0xff]  ;;  %v3684_v12 = vld [vmem:[%s7596_s21 + $0x30] sm:$0xff] }
 0x7ed   :  { %v3222_v25 = vmul.f32 %v8167_v10, %v3142_v32  ;;  %v3223_v18 = vmul.f32 %v8168_v38, %v3151_v42  ;;  %v3224_v21 = vmul.f32 %v8169_v23, %v3160_v30  ;;  %v3225_v50 = vmul.f32 %v8170_v20, %v3169_v45  ;;  %v3891_v32 = vld [vmem:[%s7590_s15] ss:$0 sm:$0xff] }
 0x7ee   :  { %v3226_v5 = vmul.f32 %v8171_v11, %v3178_v14  ;;  %v3236_v28 = vadd.f32 %v3220_v34, %v7385_v8  ;;  %v3237_v3 = vadd.f32 %v3221_v35, %v7388_v49  ;;  %v4792_v41 = vpack.c.bf16 %v3488_v43, %v3487_v16  ;;  %v3685_v34 = vld [vmem:[%s7596_s21 + $0x38] sm:$0xff]  ;;  %v3896_v35 = vld [vmem:[%s7595_s20] ss:$0 sm:$0xff]  ;;  %s4899_s20 = smov [#allocation5]  }
 0x7ef   :  { %v3238_v48 = vadd.f32 %v3222_v25, %v7391_v52  ;;  %v3239_v6 = vadd.f32 %v3223_v18, %v7394_v60  ;;  %v3240_v63 = vadd.f32 %v3224_v21, %v7397_v31  ;;  %v3241_v13 = vadd.f32 %v3225_v50, %v7400_v44  ;;  %v3491_v52 = vld [vmem:[%s7593_s18 + $0x20] sm:$0xff]  ;;  %v3492_v60 = vld [vmem:[%s7593_s18 + $0x28] sm:$0xff]  ;;  %s3785_s21 = sshll.u32 %s4899_s20, 4  ;;  %s3786_s21 = int_to_ptr.vmem [resolvable:$true] %s3785_s21 }
 0x7f0   :  { %v3242_v8 = vadd.f32 %v3226_v5, %v7403_v9  ;;  %v3392_v49 = vrot.slane %v3236_v28, 7  ;;  %v3394_v17 = vrot.slane %v3237_v3, 6  ;;  %4793 = vmatprep.subr.bf16.mxu1 %v4792_v41  ;;  %v4796_v56 = vpack.c.bf16 %v3490_v61, %v3489_v36  ;;  %v3897_v23 = vld [vmem:[%s7597_s22] ss:$0 sm:$0xff]  ;;  %s4867_s19 = scalar_lea.vmem %s3786_s21, 256  ;;  %p4872_p9 = scmp.lt.s32.totalorder %s3786_s21, %s3786_s21 }
 0x7f1   :  { %v3396_v31 = vrot.slane %v3238_v48, 5  ;;  %4795 = vmatpush3.bf16.msra.mxu1 %v4792_v41  ;;  %v3398_v9 = vrot.slane %v3239_v6, 4  ;;  %v4800_v40 = vpack.c.bf16 %v3492_v60, %v3491_v52  ;;  %v3400_v57 = vrot.slane %v3240_v63, 3  ;;  %p4868_p8 = scmp.ne.s32.totalorder %s3786_s21, %s4867_s19  ;;  %p4873_p10 = scmp.lt.s32.totalorder %s4867_s19, %s4867_s19 }
 0x7f2   :  { %v3393_v2 = vsel %vm3372_vm7, %v3392_v49, %v3235_v53  ;;  %4797 = vmatprep.subr.bf16.mxu1 %v4796_v56  ;;  %v3402_v55 = vrot.slane %v3241_v13, 2  ;;  %v3404_v1 = vrot.slane %v3242_v8, 1  ;;  %v4804_v19 = vpack.c.bf16 %v3494_v39, %v3493_v47 }
 0x7f3   :  { %v3395_v44 = vsel %vm3375_vm9, %v3394_v17, %v3393_v2  ;;  %v4808_v7 = vpack.c.bf16 %v3679_v33, %v3678_v46  ;;  %v4812_v22 = vpack.c.bf16 %v3681_v37, %v3680_v26  ;;  %v4816_v29 = vpack.c.bf16 %v3683_v4, %v3682_v58  ;;  %p4874_p11 = por %p4873_p10, %p4872_p9 }
 0x7f4   :  { %v3397_v15 = vsel %vm3378_vm14, %v3396_v31, %v3395_v44  ;;  %v4820_v54 = vpack.c.bf16 %v3685_v34, %v3684_v12 }
 0x7f5   :  { %v3399_v0 = vsel %vm3381_vm15, %v3398_v9, %v3397_v15  ;;  %4799 = vmatpush3.bf16.msra.mxu1 %v4796_v56  ;;  %4809 = vmatprep.subr.bf16.mxu0 %v4808_v7  ;;  %p4875_p12 = pnand %p4874_p11, %p4868_p8 }
 0x7f6   :  { %v3401_v51 = vsel %vm3384_vm8, %v3400_v57, %v3399_v0  ;;  %4801 = vmatprep.subr.bf16.mxu1 %v4800_v40 }
 0x7f7   :  { %v3403_v59 = vsel %vm3387_vm4, %v3402_v55, %v3401_v51 }
 0x7f8   :  { %v3405_v27 = vsel %vm3390_vm0, %v3404_v1, %v3403_v59 }
 0x7f9   :  { %4341 = vmatmul.mubr.f32.vlgmr.msra.gmra.mrb[28].mxu0 %v3405_v27  ;;  %4803 = vmatpush3.bf16.msra.mxu1 %v4800_v40 }
 0x7fa   :  { %4805 = vmatprep.subr.bf16.mxu1 %v4804_v19  ;;  %4811 = vmatpush3.bf16.msra.mxu0 %v4808_v7 }
 0x7fb   :  { %4813 = vmatprep.subr.bf16.mxu0 %v4812_v22 }
 0x7fd   :  { %4807 = vmatpush3.bf16.msra.mxu1 %v4804_v19 }
 0x7fe   :  { %4815 = vmatpush3.bf16.msra.mxu0 %v4812_v22 }
 0x7ff   :  { %4817 = vmatprep.subr.bf16.mxu0 %v4816_v29 }
 0x802   :  { %4819 = vmatpush3.bf16.msra.mxu0 %v4816_v29 }
 0x803   :  { %4821 = vmatprep.subr.bf16.mxu0 %v4820_v54 }
 0x806   :  { %4823 = vmatpush3.bf16.msra.mxu0 %v4820_v54 }
 0x8cc   :  { %v4342_v42 = vpop.f32.mrb[28].mxu0 }
 0x8cd   :  { %v4824_v30 = vadd.f32 %v4342_v42, %v3891_v32  ;;  %v3474_v45 = vpop.f32.mrb[29].mxu0 }
 0x8ce   :  { %v4825_v14 = vadd.f32 %v3891_v32, %v3474_v45 }
 0x8cf   :  { %v3486_v24 = vmax.f32 %v4824_v30, 0.0 }
 0x8d0   :  { %v3485_v62 = vmax.f32 %v4825_v14, 0.0 }
 0x8d2   :  { %4394 = vmatprep.mubr.msk.f32.mxu1 %vm1980_vm1, %v3485_v62 }
 0x8d3   :  { %4395 = vmatmul.mubr.msk.f32.vlgmr.msra.gmra.mrb[48].mxu1 %vm1980_vm1, %v3486_v24 }
 0x9a6   :  { %v4396_v10 = vpop.f32.mrb[48].mxu1 }
 0x9a7   :  { %v3675_v25 = vadd.f32 %v4396_v10, %v3896_v35  ;;  %v3658_v38 = vpop.f32.mrb[49].mxu1 }
 0x9a8   :  { %v3674_v18 = vadd.f32 %v3896_v35, %v3658_v38 }
 0x9a9   :  { %v3677_v43 = vmax.f32 %v3675_v25, 0.0 }
 0x9aa   :  { %v3676_v16 = vmax.f32 %v3674_v18, 0.0 }
 0x9ac   :  { %4413 = vmatprep.mubr.msk.f32.mxu0 %vm1980_vm1, %v3676_v16 }
 0x9ad   :  { %4414 = vmatmul.mubr.msk.f32.vlgmr.msra.gmra.mrb[30].mxu0 %vm1980_vm1, %v3677_v43 }
 0xa80   :  { %v4415_v21 = vpop.f32.mrb[30].mxu0 }
 0xa81   :  { %v3771_v20 = vadd.f32 %v4415_v21, %v3897_v23  ;;  %v3765_v50 = vpop.f32.mrb[31].mxu0 }
 0xa82   :  { %v3766_v11 = vadd.f32 %v3897_v23, %v3765_v50 }
 0xa83   :  { %4841 = vtanh.f32 %v3771_v20 }
 0xa84   :  { %4843 = vtanh.f32 %v3766_v11 }
 0xa8d   :  { %v4842_v5 = vpop.eup %4841 }
 0xa8e   :  { %v4844_v53 = vpop.eup %4843  ;;  %v3777_v28 = vmul.f32 5.0, %v4842_v5 }
 0xa8f   :  { %v3776_v3 = vmul.f32 5.0, %v4844_v53 }
 0xa90   :  { %3779 = vst [vmem:[#allocation5 + $0x8] sm:$0xff] %v3777_v28 }
 0xa91   :  { %3778 = vst [vmem:[#allocation5] sm:$0xff] %v3776_v3 }
 0xa92   :  { %4878 = shalt.err (!%p4875_p12)
}
 0xa93   :  { %s4879_s9 = scalar_lea.hbm %s7598_s23, 256 }
 0xa94   :  { %p4880_p13 = scmp.ne.s32.totalorder %s7598_s23, %s4879_s9  ;;  %p4883_p0 = scmp.lt.u32.totalorder %s4879_s9, %s7598_s23 }
 0xa96   :  { %p4885_p1 = pnand %p4883_p0, %p4880_p13 }
 0xa98   :  { %4888 = shalt.err (!%p4885_p1)
}
 0xa99   :  { %3791 = dma.vmem_to_hbm [thread:$0]  %s3786_s21, 256, %s7598_s23, [#allocation4], %s4894_s28, %s4894_s28, %s4895_s29  }
 0xa9a   :  { %4891 = dma.done.wait [#allocation4], 256  }
 0xa9b   :  { %4892 = vsyncadd [#allocation4], 4294967040 }
 0xa9c   :  { %3795 = vsyncpa [#allocation3], 1 }
 0xa9d   :  { %3796 = vsyncpa [#allocation4], 1 }

</bundles_post_ra>
